<compile_context>
chip_gen: v7x
topology: tpu7x:2x2x1
jax: 0.10.0
libtpu: 0.0.40
codegen_flags: <defaults>
</compile_context>

<pallas_src>
import functools

import jax
import jax.numpy as jnp
from jax.experimental import pallas as pl
from jax.experimental.pallas import tpu as pltpu

EPS = 1e-5


def _round_up(x, m):
    return (x + m - 1) // m * m


# ------------------------------ Pallas kernel -------------------------------


def _dense_block_kernel(nk_ref, slot_ref, x_ref, s1_ref, b1_ref, w1_ref,
                        b2_ref, w2_ref, o_ref, *, W):
    """One dense layer per grid step; grid = (batch, layer).

    o_ref : (1, NB, HW, 128) resident channel-blocked concat slab (f32).
    x_ref : (1, NXB, HW, 128) initial features (only ceil(C0/128) blocks).
    s1/b1 : (L, NB, 1, 128)  folded BN1 scale / shift per slab block.
    w1    : (L, NB, 128, MP) 1x1 conv weight (BN2 scale folded), bf16.
    b2    : (L, 1, MP)       BN2 shift.
    w2    : (L, 3, 3*MP, 128) 3x3 conv weight, column taps stacked along K,
            output growth columns placed inside one 128-lane block, bf16.
    nk    : (L,) number of active slab K-blocks for the layer (SMEM).
    slot  : (L,) slab block index receiving this layer's growth channels.
    """
    NB, HW = o_ref.shape[1], o_ref.shape[2]
    NXB = x_ref.shape[1]
    MP = w1_ref.shape[-1]
    l = pl.program_id(1)

    # ---- layer 0: initialise the resident slab for this image. -------------
    @pl.when(l == 0)
    def _init():
        o_ref[0, :NXB] = x_ref[0]
        if NXB < NB:                                   # static (Python) branch
            o_ref[0, NXB:] = jnp.zeros((NB - NXB, HW, 128), o_ref.dtype)

    # ---- BN1 -> ReLU -> 1x1 conv (BN2 scale pre-folded), K-tiled over only
    # the active slab blocks (padded / not-yet-written lanes have zero
    # scale/shift and zero weight rows, so they contribute exactly 0).
    def kbody(k, acc):
        feat_k = o_ref[0, k]                                     # (HW, 128) f32
        h_k = jnp.maximum(feat_k * s1_ref[l, k] + b1_ref[l, k],
                          0.0).astype(jnp.bfloat16)
        return acc + jnp.dot(h_k, w1_ref[l, k],
                             preferred_element_type=jnp.float32)

    acc1 = jax.lax.fori_loop(0, nk_ref[l], kbody,
                             jnp.zeros((HW, MP), jnp.float32))

    # BN2 shift -> ReLU (f32, VPU).
    h2 = jnp.maximum(acc1 + b2_ref[l], 0.0)                      # (HW, MP)

    # ---- 3x3 "same" conv on the flattened (HW, MP) activation. -------------
    # Column taps (kx) are lane-concatenated into one K = 3*MP operand; row
    # taps (ky) are whole-row sublane rolls (XLU).  Border masks are (HW, 1).
    p_idx = jax.lax.broadcasted_iota(jnp.int32, (HW, 1), 0)      # flat position
    col = p_idx % W
    left = jnp.where(col >= 1, pltpu.roll(h2, 1, axis=0), 0.0)       # in col w-1
    right = jnp.where(col <= W - 2, pltpu.roll(h2, HW - 1, axis=0), 0.0)  # w+1
    h2cat = jnp.concatenate([left, h2, right], axis=-1)          # (HW, 3*MP)

    acc2 = jnp.zeros((HW, 128), jnp.float32)
    for ky in range(3):
        if ky == 1:
            patch = h2cat
        else:
            patch = pltpu.roll(h2cat, (-(ky - 1) * W) % HW, axis=0)
            row_ok = (p_idx >= W) if ky == 0 else (p_idx < HW - W)
            patch = jnp.where(row_ok, patch, 0.0)
        acc2 = acc2 + jnp.dot(patch.astype(jnp.bfloat16), w2_ref[l, ky],
                              preferred_element_type=jnp.float32)

    # ---- "concat": the new growth channels live inside a single 128-lane
    # slab block (placement baked into w2's columns, which are zero outside
    # the growth range), so the update is one aligned read-add-store.
    slot = slot_ref[l]
    o_ref[0, slot] = o_ref[0, slot] + acc2


# -------------------------------- wrappers ----------------------------------


def _dense_block_call(nk, slot, x_blk, s1_all, b1_all, w1_all, b2_all, w2_all,
                      *, W):
    N, NXB, HW, _ = x_blk.shape
    L, NB = s1_all.shape[0], s1_all.shape[1]
    MP = w1_all.shape[-1]
    kernel = functools.partial(_dense_block_kernel, W=W)

    def _bytes(a):
        return a.size * a.dtype.itemsize

    est = (2 * NB * HW * 128 * 4 + 2 * NXB * HW * 128 * 4
           + 2 * (_bytes(s1_all) + _bytes(b1_all) + _bytes(w1_all)
                  + _bytes(b2_all) + _bytes(w2_all))
           + (8 << 20))
    vmem_limit = int(min(100 << 20, max(32 << 20, est)))

    return pl.pallas_call(
        kernel,
        out_shape=jax.ShapeDtypeStruct((N, NB, HW, 128), jnp.float32),
        grid_spec=pltpu.PrefetchScalarGridSpec(
            num_scalar_prefetch=2,                  # nk, slot -> SMEM
            grid=(N, L),                            # layer innermost (resident slab)
            in_specs=[
                # initial features: fetched once per image, only NXB blocks
                pl.BlockSpec((1, NXB, HW, 128), lambda n, l, *_: (n, 0, 0, 0)),
                # per-layer weights: constant index_map -> resident for the
                # whole grid (DMA'd once, not once per image)
                pl.BlockSpec((L, NB, 1, 128), lambda n, l, *_: (0, 0, 0, 0)),
                pl.BlockSpec((L, NB, 1, 128), lambda n, l, *_: (0, 0, 0, 0)),
                pl.BlockSpec((L, NB, 128, MP), lambda n, l, *_: (0, 0, 0, 0)),
                pl.BlockSpec((L, 1, MP), lambda n, l, *_: (0, 0, 0)),
                pl.BlockSpec((L, 3, 3 * MP, 128), lambda n, l, *_: (0, 0, 0, 0)),
            ],
            out_specs=pl.BlockSpec((1, NB, HW, 128), lambda n, l, *_: (n, 0, 0, 0)),
        ),
        compiler_params=pltpu.CompilerParams(
            dimension_semantics=("parallel", "arbitrary"),
            vmem_limit_bytes=vmem_limit),
    )(nk, slot, x_blk, s1_all, b1_all, w1_all, b2_all, w2_all)


def _bn_scale_shift(bn):
    scale = bn["gamma"] / jnp.sqrt(bn["var"] + EPS)
    shift = bn["beta"] - bn["mean"] * scale
    return scale, shift


def _slab_layout(c0, growth, num_layers):
    """Per-layer slab offsets such that no growth slot straddles a 128-lane
    boundary (so each layer's output fits in a single 128-lane slab block)."""
    assert growth <= 128, "growth_rate > 128 not supported by the slot layout"
    offs, end = [], c0
    for _ in range(num_layers):
        start = end
        if start // 128 != (start + growth - 1) // 128:
            start = _round_up(start, 128)             # bump past the boundary
        offs.append(start)
        end = start + growth
    cp = _round_up(end, 128)
    lane_of = list(range(c0))                          # original ch -> slab lane
    for o in offs:
        lane_of.extend(range(o, o + growth))
    return offs, cp, lane_of


def _pack_block_params(params, c0, growth, offs, lane_of, cp, mp):
    """Fold BN params, scatter rows to slab lanes, block the K dim, and place
    the 3x3 output columns inside their 128-lane slot."""
    nb = cp // 128
    s1s, b1s, w1s, b2s, w2s = [], [], [], [], []
    for i, (bn1, w1, bn2, w2) in enumerate(params):
        cin = c0 + i * growth
        cmid = w1.shape[0]
        lanes = jnp.asarray(lane_of[:cin], dtype=jnp.int32)

        s1, b1 = _bn_scale_shift(bn1)                      # (cin,)
        s2, b2 = _bn_scale_shift(bn2)                      # (cmid,)
        # BN2 scale folded into the 1x1-conv weight columns.
        w1m = jnp.transpose(w1) * s2[None, :]              # (cin, cmid)
        w1m = jnp.pad(w1m, ((0, 0), (0, mp - cmid)))       # (cin, mp)

        s1p = jnp.zeros((cp,), jnp.float32).at[lanes].set(s1)
        b1p = jnp.zeros((cp,), jnp.float32).at[lanes].set(b1)
        w1p = jnp.zeros((cp, mp), jnp.float32).at[lanes].set(w1m)

        # 3x3 conv: OIHW -> (ky, kx, in, out); column taps stacked along K,
        # growth output columns placed at this layer's in-block offset.
        off_blk = offs[i] % 128
        w2r = jnp.transpose(w2, (2, 3, 1, 0))              # (3, 3, cmid, growth)
        w2p = jnp.zeros((3, 3 * mp, 128), jnp.float32)
        for kx in range(3):
            w2p = w2p.at[:, kx * mp:kx * mp + cmid,
                         off_blk:off_blk + growth].set(w2r[:, kx])

        s1s.append(s1p.reshape(nb, 1, 128))
        b1s.append(b1p.reshape(nb, 1, 128))
        w1s.append(w1p.reshape(nb, 128, mp))
        b2s.append(jnp.pad(b2, (0, mp - cmid))[None, :])
        w2s.append(w2p)

    s1_all = jnp.stack(s1s)                                # (L, NB, 1, 128) f32
    b1_all = jnp.stack(b1s)                                # (L, NB, 1, 128) f32
    w1_all = jnp.stack(w1s).astype(jnp.bfloat16)           # (L, NB, 128, MP)
    b2_all = jnp.stack(b2s)                                # (L, 1, MP) f32
    w2_all = jnp.stack(w2s).astype(jnp.bfloat16)           # (L, 3, 3*MP, 128)
    return s1_all, b1_all, w1_all, b2_all, w2_all


@jax.jit
def dense_block_forward(x_nhwc, params):
    N, H, W, c0 = x_nhwc.shape
    growth = params[0][3].shape[0]
    L = len(params)
    cmid = params[0][1].shape[0]
    mp = _round_up(cmid, 128)
    offs, cp, lane_of = _slab_layout(c0, growth, L)
    c0p = _round_up(c0, 128)
    nxb = c0p // 128
    HW = H * W

    s1_all, b1_all, w1_all, b2_all, w2_all = _pack_block_params(
        params, c0, growth, offs, lane_of, cp, mp)

    # Per-layer scalar metadata (scalar-prefetched into SMEM).
    extents = [c0 if i == 0 else offs[i - 1] + growth for i in range(L)]
    nk = jnp.asarray([(e + 127) // 128 for e in extents], dtype=jnp.int32)
    slot = jnp.asarray([o // 128 for o in offs], dtype=jnp.int32)

    # Initial features: channel-blocked, padded only up to ceil(c0/128)*128.
    x_blk = jnp.pad(x_nhwc.reshape(N, HW, c0), ((0, 0), (0, 0), (0, c0p - c0)))
    x_blk = x_blk.reshape(N, HW, nxb, 128).transpose(0, 2, 1, 3)

    slab = _dense_block_call(nk, slot, x_blk, s1_all, b1_all, w1_all,
                             b2_all, w2_all, W=W)
    # (N, NB, HW, 128) -> (N, HW, CP) -> gather back to original concat order.
    slab = slab.transpose(0, 2, 1, 3).reshape(N, HW, cp)
    out = jnp.take(slab, jnp.asarray(lane_of, dtype=jnp.int32), axis=-1)
    return out.reshape(N, H, W, len(lane_of))


# -------------------------- parameter initialization ------------------------


def init_dense_block_params(key, num_layers, num_input_features, bn_size,
                            growth_rate):
    params = []
    for i in range(num_layers):
        cin = num_input_features + i * growth_rate
        cmid = bn_size * growth_rate
        cout = growth_rate
        key, *ks = jax.random.split(key, 10)
        bn1 = dict(
            gamma=1.0 + 0.1 * jax.random.normal(ks[0], (cin,), jnp.float32),
            beta=0.1 * jax.random.normal(ks[1], (cin,), jnp.float32),
            mean=0.1 * jax.random.normal(ks[2], (cin,), jnp.float32),
            var=jnp.abs(1.0 + 0.1 * jax.random.normal(ks[3], (cin,), jnp.float32)),
        )
        w1 = jax.random.normal(ks[4], (cmid, cin), jnp.float32) / jnp.sqrt(cin)
        bn2 = dict(
            gamma=1.0 + 0.1 * jax.random.normal(ks[5], (cmid,), jnp.float32),
            beta=0.1 * jax.random.normal(ks[6], (cmid,), jnp.float32),
            mean=0.1 * jax.random.normal(ks[7], (cmid,), jnp.float32),
            var=jnp.abs(1.0 + 0.1 * jax.random.normal(ks[8], (cmid,), jnp.float32)),
        )
        w2 = (jax.random.normal(key, (cout, cmid, 3, 3), jnp.float32)
              / jnp.sqrt(cmid * 9.0))
        params.append((bn1, w1, bn2, w2))
    return params


# ------------------------------ JAX references -------------------------------


def reference_forward(x_nchw, params, *, bf16_matmul=False):
    """Module semantics.  bf16_matmul=True mirrors the kernel's MXU numerics."""
    feats = [x_nchw]
    for bn1, w1, bn2, w2 in params:
        inp = jnp.concatenate(feats, axis=1)
        s1, b1 = _bn_scale_shift(bn1)
        s2, b2 = _bn_scale_shift(bn2)
        h = jnp.maximum(inp * s1.reshape(1, -1, 1, 1) + b1.reshape(1, -1, 1, 1), 0.0)
        if bf16_matmul:
            w1f = (w1 * s2[:, None]).astype(jnp.bfloat16)
            bott = jnp.einsum("nchw,oc->nohw", h.astype(jnp.bfloat16), w1f,
                              preferred_element_type=jnp.float32)
            h2 = jnp.maximum(bott + b2.reshape(1, -1, 1, 1), 0.0)
            new = jax.lax.conv_general_dilated(
                h2.astype(jnp.bfloat16), w2.astype(jnp.bfloat16),
                window_strides=(1, 1), padding=((1, 1), (1, 1)),
                dimension_numbers=("NCHW", "OIHW", "NCHW"),
                preferred_element_type=jnp.float32)
        else:
            bott = jnp.einsum("nchw,oc->nohw", h, w1,
                              precision=jax.lax.Precision.HIGHEST)
            h2 = jnp.maximum(bott * s2.reshape(1, -1, 1, 1)
                             + b2.reshape(1, -1, 1, 1), 0.0)
            new = jax.lax.conv_general_dilated(
                h2, w2, window_strides=(1, 1), padding=((1, 1), (1, 1)),
                dimension_numbers=("NCHW", "OIHW", "NCHW"),
                precision=jax.lax.Precision.HIGHEST)
        feats.append(new)
    return jnp.concatenate(feats, axis=1)


# ---------------------------------- main -------------------------------------


if __name__ == "__main__":

    def run_case(key, N, c0, H, W, L, bn_size, growth, tight_tol, loose_tol):
        key, xkey = jax.random.split(key)
        x_nchw = jax.random.normal(xkey, (N, c0, H, W), jnp.float32)
        params = init_dense_block_params(key, L, c0, bn_size, growth)

        x_nhwc = jnp.transpose(x_nchw, (0, 2, 3, 1))
        out_nhwc = dense_block_forward(x_nhwc, params)
        out_nchw = jnp.transpose(out_nhwc, (0, 3, 1, 2))
        jax.block_until_ready(out_nchw)

        assert out_nchw.shape == (N, c0 + L * growth, H, W), out_nchw.shape

        # Tight check against a JAX reference mirroring the kernel's bf16-MXU
        # numerics (catches indexing / layout / slot-placement bugs).
        ref_bf16 = reference_forward(x_nchw, params, bf16_matmul=True)
        err_tight = float(jnp.max(jnp.abs(out_nchw - ref_bf16)))
        assert err_tight < tight_tol, err_tight

        # Looser check against exact f32 module semantics (bf16 matmul tol).
        ref_f32 = reference_forward(x_nchw, params, bf16_matmul=False)
        err_f32 = float(jnp.max(jnp.abs(out_nchw - ref_f32)))
        assert err_f32 < loose_tol, err_f32

    key = jax.random.PRNGKey(0)
    k1, k2 = jax.random.split(key)

    # Config 1: small demo matching the original shapes (single slab block;
    # batch=2 also exercises the v7x dual-core 'parallel' batch axis).
    run_case(k1, N=2, c0=4, H=16, W=16, L=3, bn_size=2, growth=4,
             tight_tol=3e-2, loose_tol=1e-1)

    # Config 2: exercises the multi-block slab path (2 channel blocks), a
    # 128-boundary straddle bump, a non-zero slot id, and nk > 1 K-tiling.
    run_case(k2, N=1, c0=100, H=8, W=8, L=3, bn_size=2, growth=20,
             tight_tol=3e-2, loose_tol=2e-1)

    print("KERNEL_OK")
</pallas_src>

<mosaic_0001>
module attributes {stable_mosaic.version = 11 : i64} {
  func.func @_dense_block_kernel(%arg0: i32, %arg1: i32, %arg2: memref<3xi32, #tpu.memory_space<smem>>, %arg3: memref<3xi32, #tpu.memory_space<smem>>, %arg4: memref<1x1x256x128xf32, #tpu.memory_space<vmem>>, %arg5: memref<3x1x1x128xf32, #tpu.memory_space<vmem>>, %arg6: memref<3x1x1x128xf32, #tpu.memory_space<vmem>>, %arg7: memref<3x1x128x128xbf16, #tpu.memory_space<vmem>>, %arg8: memref<3x1x128xf32, #tpu.memory_space<vmem>>, %arg9: memref<3x3x384x128xbf16, #tpu.memory_space<vmem>>, %arg10: memref<1x1x256x128xf32, #tpu.memory_space<vmem>>) attributes {dimension_semantics = [#tpu.dimension_semantics<parallel>, #tpu.dimension_semantics<arbitrary>], iteration_bounds = array<i64: 2, 3>, scalar_prefetch = 2 : i64, scratch_operands = 0 : i64, tpu.core_type = #tpu.core_type<tc>, window_params = [{transform_indices = @transform_0, window_bounds = array<i64: 1, 1, 256, 128>}, {pipeline_mode = #tpu.pipeline_mode<synchronous>, transform_indices = @transform_1, window_bounds = array<i64: 3, 1, 1, 128>}, {pipeline_mode = #tpu.pipeline_mode<synchronous>, transform_indices = @transform_2, window_bounds = array<i64: 3, 1, 1, 128>}, {pipeline_mode = #tpu.pipeline_mode<synchronous>, transform_indices = @transform_3, window_bounds = array<i64: 3, 1, 128, 128>}, {pipeline_mode = #tpu.pipeline_mode<synchronous>, transform_indices = @transform_4, window_bounds = array<i64: 3, 1, 128>}, {pipeline_mode = #tpu.pipeline_mode<synchronous>, transform_indices = @transform_5, window_bounds = array<i64: 3, 3, 384, 128>}, {transform_indices = @transform_6, window_bounds = array<i64: 1, 1, 256, 128>}]} {
    %c0_i32 = arith.constant 0 : i32
    %0 = arith.cmpi eq, %arg1, %c0_i32 : i32
    %1 = arith.extui %0 : i1 to i32
    %c0_i32_0 = arith.constant 0 : i32
    %2 = arith.cmpi ne, %1, %c0_i32_0 : i32
    scf.if %2 {
      %c0_35 = arith.constant 0 : index
      %c0_36 = arith.constant 0 : index
      %c0_37 = arith.constant 0 : index
      %c0_38 = arith.constant 0 : index
      %91 = vector.load %arg4[%c0_35, %c0_36, %c0_37, %c0_38] : memref<1x1x256x128xf32, #tpu.memory_space<vmem>>, vector<1x1x256x128xf32>
      %92 = vector.shape_cast %91 : vector<1x1x256x128xf32> to vector<1x256x128xf32>
      %c0_39 = arith.constant 0 : index
      %c0_40 = arith.constant 0 : index
      %c0_41 = arith.constant 0 : index
      %c0_42 = arith.constant 0 : index
      %93 = vector.load %arg10[%c0_39, %c0_40, %c0_41, %c0_42] : memref<1x1x256x128xf32, #tpu.memory_space<vmem>>, vector<1x1x256x128xf32>
      %94 = vector.shape_cast %93 : vector<1x1x256x128xf32> to vector<1x256x128xf32>
      %95 = vector.shape_cast %92 : vector<1x256x128xf32> to vector<1x1x256x128xf32>
      tpu.vector_store %arg10[%c0_39, %c0_40, %c0_41, %c0_42], %95 {strides = array<i32>} : memref<1x1x256x128xf32, #tpu.memory_space<vmem>>, vector<1x1x256x128xf32>,
    } else {
    }
    %3 = arith.index_cast %arg1 : i32 to index
    %4 = memref.load %arg2[%3] : memref<3xi32, #tpu.memory_space<smem>>
    %cst = arith.constant 0.000000e+00 : f32
    %5 = vector.broadcast %cst : f32 to vector<256x128xf32>
    %c0_i32_1 = arith.constant 0 : i32
    %6 = arith.subi %4, %c0_i32_1 : i32
    %7 = arith.addi %c0_i32_1, %6 : i32
    %c1_i32 = arith.constant 1 : i32
    %8 = scf.for %arg11 = %c0_i32_1 to %7 step %c1_i32 iter_args(%arg12 = %5) -> (vector<256x128xf32>)  : i32 {
      %c0_35 = arith.constant 0 : index
      %91 = arith.index_cast %arg11 : i32 to index
      %c0_36 = arith.constant 0 : index
      %c0_37 = arith.constant 0 : index
      %92 = vector.load %arg10[%c0_35, %91, %c0_36, %c0_37] : memref<1x1x256x128xf32, #tpu.memory_space<vmem>>, vector<1x1x256x128xf32>
      %93 = vector.shape_cast %92 : vector<1x1x256x128xf32> to vector<256x128xf32>
      %94 = arith.index_cast %arg1 : i32 to index
      %95 = arith.index_cast %arg11 : i32 to index
      %c0_38 = arith.constant 0 : index
      %c0_39 = arith.constant 0 : index
      %96 = vector.load %arg5[%94, %95, %c0_38, %c0_39] : memref<3x1x1x128xf32, #tpu.memory_space<vmem>>, vector<1x1x1x128xf32>
      %97 = vector.shape_cast %96 : vector<1x1x1x128xf32> to vector<1x128xf32>
      %98 = vector.broadcast %97 : vector<1x128xf32> to vector<256x128xf32>
      %99 = arith.mulf %93, %98 : vector<256x128xf32>
      %100 = arith.index_cast %arg1 : i32 to index
      %101 = arith.index_cast %arg11 : i32 to index
      %c0_40 = arith.constant 0 : index
      %c0_41 = arith.constant 0 : index
      %102 = vector.load %arg6[%100, %101, %c0_40, %c0_41] : memref<3x1x1x128xf32, #tpu.memory_space<vmem>>, vector<1x1x1x128xf32>
      %103 = vector.shape_cast %102 : vector<1x1x1x128xf32> to vector<1x128xf32>
      %104 = vector.broadcast %103 : vector<1x128xf32> to vector<256x128xf32>
      %105 = arith.addf %99, %104 : vector<256x128xf32>
      %cst_42 = arith.constant 0.000000e+00 : f32
      %106 = vector.broadcast %cst_42 : f32 to vector<256x128xf32>
      %107 = arith.maximumf %105, %106 : vector<256x128xf32>
      %108 = arith.truncf %107 : vector<256x128xf32> to vector<256x128xbf16>
      %109 = arith.index_cast %arg1 : i32 to index
      %110 = arith.index_cast %arg11 : i32 to index
      %c0_43 = arith.constant 0 : index
      %c0_44 = arith.constant 0 : index
      %111 = vector.load %arg7[%109, %110, %c0_43, %c0_44] : memref<3x1x128x128xbf16, #tpu.memory_space<vmem>>, vector<1x1x128x128xbf16>
      %112 = vector.shape_cast %111 : vector<1x1x128x128xbf16> to vector<128x128xbf16>
      %cst_45 = arith.constant dense<0.000000e+00> : vector<256x128xf32>
      %113 = tpu.matmul %108, %112, %cst_45 {dimension_numbers = #tpu.dot_dimension_numbers<[1], [0], [0], [1], [0, 0, 1, 1], [], []>} : vector<256x128xbf16>, vector<128x128xbf16>, vector<256x128xf32> -> vector<256x128xf32>
      %114 = arith.addf %arg12, %113 : vector<256x128xf32>
      scf.yield %114 : vector<256x128xf32>
    }
    %9 = arith.index_cast %arg1 : i32 to index
    %c0 = arith.constant 0 : index
    %c0_2 = arith.constant 0 : index
    %10 = vector.load %arg8[%9, %c0, %c0_2] : memref<3x1x128xf32, #tpu.memory_space<vmem>>, vector<1x1x128xf32>
    %11 = vector.shape_cast %10 : vector<1x1x128xf32> to vector<1x128xf32>
    %12 = vector.broadcast %11 : vector<1x128xf32> to vector<256x128xf32>
    %13 = arith.addf %8, %12 : vector<256x128xf32>
    %cst_3 = arith.constant 0.000000e+00 : f32
    %14 = vector.broadcast %cst_3 : f32 to vector<256x128xf32>
    %15 = arith.maximumf %13, %14 : vector<256x128xf32>
    %16 = tpu.iota {dimensions = array<i32: 0>} : vector<256x1xi32>
    %c16_i32 = arith.constant 16 : i32
    %c0_i32_4 = arith.constant 0 : i32
    %17 = arith.cmpi eq, %c16_i32, %c0_i32_4 : i32
    %c1_i32_5 = arith.constant 1 : i32
    %18 = arith.select %17, %c1_i32_5, %c16_i32 : i32
    %19 = vector.broadcast %18 : i32 to vector<256x1xi32>
    %20 = arith.remsi %16, %19 : vector<256x1xi32>
    %c0_i32_6 = arith.constant 0 : i32
    %21 = vector.broadcast %c0_i32_6 : i32 to vector<256x1xi32>
    %22 = arith.cmpi ne, %20, %21 : vector<256x1xi32>
    %c0_i32_7 = arith.constant 0 : i32
    %23 = vector.broadcast %c0_i32_7 : i32 to vector<256x1xi32>
    %24 = arith.cmpi slt, %20, %23 : vector<256x1xi32>
    %c0_i32_8 = arith.constant 0 : i32
    %25 = arith.cmpi slt, %18, %c0_i32_8 : i32
    %26 = vector.broadcast %25 : i1 to vector<256x1xi1>
    %27 = vector.broadcast %26 : vector<256x1xi1> to vector<256x1xi1>
    %28 = arith.xori %24, %27 : vector<256x1xi1>
    %29 = arith.andi %28, %22 : vector<256x1xi1>
    %30 = vector.broadcast %18 : i32 to vector<256x1xi32>
    %31 = arith.addi %20, %30 : vector<256x1xi32>
    %32 = arith.select %29, %31, %20 : vector<256x1xi1>, vector<256x1xi32>
    %c1_i32_9 = arith.constant 1 : i32
    %33 = vector.broadcast %c1_i32_9 : i32 to vector<256x1xi32>
    %34 = arith.cmpi sge, %32, %33 : vector<256x1xi32>
    %c1_i32_10 = arith.constant 1 : i32
    %35 = tpu.dynamic_rotate %15 by %c1_i32_10 dim 0 : vector<256x128xf32>, i32 -> vector<256x128xf32>
    %cst_11 = arith.constant 0.000000e+00 : f32
    %36 = vector.shape_cast %34 : vector<256x1xi1> to vector<256x1xi1>
    %37 = vector.broadcast %36 : vector<256x1xi1> to vector<256x128xi1>
    %38 = vector.broadcast %cst_11 : f32 to vector<256x128xf32>
    %39 = arith.select %37, %35, %38 : vector<256x128xi1>, vector<256x128xf32>
    %c14_i32 = arith.constant 14 : i32
    %40 = vector.broadcast %c14_i32 : i32 to vector<256x1xi32>
    %41 = arith.cmpi sle, %32, %40 : vector<256x1xi32>
    %c255_i32 = arith.constant 255 : i32
    %42 = tpu.dynamic_rotate %15 by %c255_i32 dim 0 : vector<256x128xf32>, i32 -> vector<256x128xf32>
    %cst_12 = arith.constant 0.000000e+00 : f32
    %43 = vector.shape_cast %41 : vector<256x1xi1> to vector<256x1xi1>
    %44 = vector.broadcast %43 : vector<256x1xi1> to vector<256x128xi1>
    %45 = vector.broadcast %cst_12 : f32 to vector<256x128xf32>
    %46 = arith.select %44, %42, %45 : vector<256x128xi1>, vector<256x128xf32>
    %47 = tpu.concatenate %39, %15, %46 in 1 : vector<256x128xf32>, vector<256x128xf32>, vector<256x128xf32> -> vector<256x384xf32>
    %cst_13 = arith.constant 0.000000e+00 : f32
    %48 = vector.broadcast %cst_13 : f32 to vector<256x128xf32>
    %c16_i32_14 = arith.constant 16 : i32
    %49 = tpu.dynamic_rotate %47 by %c16_i32_14 dim 0 : vector<256x384xf32>, i32 -> vector<256x384xf32>
    %c16_i32_15 = arith.constant 16 : i32
    %50 = vector.broadcast %c16_i32_15 : i32 to vector<256x1xi32>
    %51 = arith.cmpi sge, %16, %50 : vector<256x1xi32>
    %cst_16 = arith.constant 0.000000e+00 : f32
    %52 = vector.shape_cast %51 : vector<256x1xi1> to vector<256x1xi1>
    %53 = vector.broadcast %52 : vector<256x1xi1> to vector<256x384xi1>
    %54 = vector.broadcast %cst_16 : f32 to vector<256x384xf32>
    %55 = arith.select %53, %49, %54 : vector<256x384xi1>, vector<256x384xf32>
    %56 = arith.truncf %55 : vector<256x384xf32> to vector<256x384xbf16>
    %57 = arith.index_cast %arg1 : i32 to index
    %c0_17 = arith.constant 0 : index
    %c0_18 = arith.constant 0 : index
    %c0_19 = arith.constant 0 : index
    %58 = vector.load %arg9[%57, %c0_17, %c0_18, %c0_19] : memref<3x3x384x128xbf16, #tpu.memory_space<vmem>>, vector<1x1x384x128xbf16>
    %59 = vector.shape_cast %58 : vector<1x1x384x128xbf16> to vector<384x128xbf16>
    %cst_20 = arith.constant dense<0.000000e+00> : vector<256x128xf32>
    %60 = tpu.matmul %56, %59, %cst_20 {dimension_numbers = #tpu.dot_dimension_numbers<[1], [0], [0], [1], [0, 0, 1, 1], [], []>} : vector<256x384xbf16>, vector<384x128xbf16>, vector<256x128xf32> -> vector<256x128xf32>
    %61 = arith.addf %48, %60 : vector<256x128xf32>
    %62 = arith.truncf %47 : vector<256x384xf32> to vector<256x384xbf16>
    %63 = arith.index_cast %arg1 : i32 to index
    %c1 = arith.constant 1 : index
    %c0_21 = arith.constant 0 : index
    %c0_22 = arith.constant 0 : index
    %64 = vector.load %arg9[%63, %c1, %c0_21, %c0_22] : memref<3x3x384x128xbf16, #tpu.memory_space<vmem>>, vector<1x1x384x128xbf16>
    %65 = vector.shape_cast %64 : vector<1x1x384x128xbf16> to vector<384x128xbf16>
    %cst_23 = arith.constant dense<0.000000e+00> : vector<256x128xf32>
    %66 = tpu.matmul %62, %65, %cst_23 {dimension_numbers = #tpu.dot_dimension_numbers<[1], [0], [0], [1], [0, 0, 1, 1], [], []>} : vector<256x384xbf16>, vector<384x128xbf16>, vector<256x128xf32> -> vector<256x128xf32>
    %67 = arith.addf %61, %66 : vector<256x128xf32>
    %c240_i32 = arith.constant 240 : i32
    %68 = tpu.dynamic_rotate %47 by %c240_i32 dim 0 : vector<256x384xf32>, i32 -> vector<256x384xf32>
    %c240_i32_24 = arith.constant 240 : i32
    %69 = vector.broadcast %c240_i32_24 : i32 to vector<256x1xi32>
    %70 = arith.cmpi slt, %16, %69 : vector<256x1xi32>
    %cst_25 = arith.constant 0.000000e+00 : f32
    %71 = vector.shape_cast %70 : vector<256x1xi1> to vector<256x1xi1>
    %72 = vector.broadcast %71 : vector<256x1xi1> to vector<256x384xi1>
    %73 = vector.broadcast %cst_25 : f32 to vector<256x384xf32>
    %74 = arith.select %72, %68, %73 : vector<256x384xi1>, vector<256x384xf32>
    %75 = arith.truncf %74 : vector<256x384xf32> to vector<256x384xbf16>
    %76 = arith.index_cast %arg1 : i32 to index
    %c2 = arith.constant 2 : index
    %c0_26 = arith.constant 0 : index
    %c0_27 = arith.constant 0 : index
    %77 = vector.load %arg9[%76, %c2, %c0_26, %c0_27] : memref<3x3x384x128xbf16, #tpu.memory_space<vmem>>, vector<1x1x384x128xbf16>
    %78 = vector.shape_cast %77 : vector<1x1x384x128xbf16> to vector<384x128xbf16>
    %cst_28 = arith.constant dense<0.000000e+00> : vector<256x128xf32>
    %79 = tpu.matmul %75, %78, %cst_28 {dimension_numbers = #tpu.dot_dimension_numbers<[1], [0], [0], [1], [0, 0, 1, 1], [], []>} : vector<256x384xbf16>, vector<384x128xbf16>, vector<256x128xf32> -> vector<256x128xf32>
    %80 = arith.addf %67, %79 : vector<256x128xf32>
    %81 = arith.index_cast %arg1 : i32 to index
    %82 = memref.load %arg3[%81] : memref<3xi32, #tpu.memory_space<smem>>
    %c0_29 = arith.constant 0 : index
    %83 = arith.index_cast %82 : i32 to index
    %c0_30 = arith.constant 0 : index
    %c0_31 = arith.constant 0 : index
    %84 = vector.load %arg10[%c0_29, %83, %c0_30, %c0_31] : memref<1x1x256x128xf32, #tpu.memory_space<vmem>>, vector<1x1x256x128xf32>
    %85 = vector.shape_cast %84 : vector<1x1x256x128xf32> to vector<256x128xf32>
    %86 = arith.addf %85, %80 : vector<256x128xf32>
    %c0_32 = arith.constant 0 : index
    %87 = arith.index_cast %82 : i32 to index
    %c0_33 = arith.constant 0 : index
    %c0_34 = arith.constant 0 : index
    %88 = vector.load %arg10[%c0_32, %87, %c0_33, %c0_34] : memref<1x1x256x128xf32, #tpu.memory_space<vmem>>, vector<1x1x256x128xf32>
    %89 = vector.shape_cast %88 : vector<1x1x256x128xf32> to vector<256x128xf32>
    %90 = vector.shape_cast %86 : vector<256x128xf32> to vector<1x1x256x128xf32>
    tpu.vector_store %arg10[%c0_32, %87, %c0_33, %c0_34], %90 {strides = array<i32>} : memref<1x1x256x128xf32, #tpu.memory_space<vmem>>, vector<1x1x256x128xf32>,
    return
  }
  func.func @transform_0(%arg0: i32, %arg1: i32, %arg2: memref<3xi32, #tpu.memory_space<smem>>, %arg3: memref<3xi32, #tpu.memory_space<smem>>) -> (i32, i32, i32, i32) {
    %c0_i32 = arith.constant 0 : i32
    %c0_i32_0 = arith.constant 0 : i32
    %c0_i32_1 = arith.constant 0 : i32
    %c0_i32_2 = arith.constant 0 : i32
    return %arg0, %c0_i32, %c0_i32_0, %c0_i32_1 : i32, i32, i32, i32
  }
  func.func @transform_1(%arg0: i32, %arg1: i32, %arg2: memref<3xi32, #tpu.memory_space<smem>>, %arg3: memref<3xi32, #tpu.memory_space<smem>>) -> (i32, i32, i32, i32) {
    %c0_i32 = arith.constant 0 : i32
    %c0_i32_0 = arith.constant 0 : i32
    %c0_i32_1 = arith.constant 0 : i32
    %c0_i32_2 = arith.constant 0 : i32
    %c0_i32_3 = arith.constant 0 : i32
    return %c0_i32, %c0_i32_0, %c0_i32_1, %c0_i32_2 : i32, i32, i32, i32
  }
  func.func @transform_2(%arg0: i32, %arg1: i32, %arg2: memref<3xi32, #tpu.memory_space<smem>>, %arg3: memref<3xi32, #tpu.memory_space<smem>>) -> (i32, i32, i32, i32) {
    %c0_i32 = arith.constant 0 : i32
    %c0_i32_0 = arith.constant 0 : i32
    %c0_i32_1 = arith.constant 0 : i32
    %c0_i32_2 = arith.constant 0 : i32
    %c0_i32_3 = arith.constant 0 : i32
    return %c0_i32, %c0_i32_0, %c0_i32_1, %c0_i32_2 : i32, i32, i32, i32
  }
  func.func @transform_3(%arg0: i32, %arg1: i32, %arg2: memref<3xi32, #tpu.memory_space<smem>>, %arg3: memref<3xi32, #tpu.memory_space<smem>>) -> (i32, i32, i32, i32) {
    %c0_i32 = arith.constant 0 : i32
    %c0_i32_0 = arith.constant 0 : i32
    %c0_i32_1 = arith.constant 0 : i32
    %c0_i32_2 = arith.constant 0 : i32
    %c0_i32_3 = arith.constant 0 : i32
    return %c0_i32, %c0_i32_0, %c0_i32_1, %c0_i32_2 : i32, i32, i32, i32
  }
  func.func @transform_4(%arg0: i32, %arg1: i32, %arg2: memref<3xi32, #tpu.memory_space<smem>>, %arg3: memref<3xi32, #tpu.memory_space<smem>>) -> (i32, i32, i32) {
    %c0_i32 = arith.constant 0 : i32
    %c0_i32_0 = arith.constant 0 : i32
    %c0_i32_1 = arith.constant 0 : i32
    %c0_i32_2 = arith.constant 0 : i32
    return %c0_i32, %c0_i32_0, %c0_i32_1 : i32, i32, i32
  }
  func.func @transform_5(%arg0: i32, %arg1: i32, %arg2: memref<3xi32, #tpu.memory_space<smem>>, %arg3: memref<3xi32, #tpu.memory_space<smem>>) -> (i32, i32, i32, i32) {
    %c0_i32 = arith.constant 0 : i32
    %c0_i32_0 = arith.constant 0 : i32
    %c0_i32_1 = arith.constant 0 : i32
    %c0_i32_2 = arith.constant 0 : i32
    %c0_i32_3 = arith.constant 0 : i32
    return %c0_i32, %c0_i32_0, %c0_i32_1, %c0_i32_2 : i32, i32, i32, i32
  }
  func.func @transform_6(%arg0: i32, %arg1: i32, %arg2: memref<3xi32, #tpu.memory_space<smem>>, %arg3: memref<3xi32, #tpu.memory_space<smem>>) -> (i32, i32, i32, i32) {
    %c0_i32 = arith.constant 0 : i32
    %c0_i32_0 = arith.constant 0 : i32
    %c0_i32_1 = arith.constant 0 : i32
    %c0_i32_2 = arith.constant 0 : i32
    return %arg0, %c0_i32, %c0_i32_0, %c0_i32_1 : i32, i32, i32, i32
  }
}

</mosaic_0001>

<bundles_post_ra>
// kernel: dense_block_forward.1
= control target key start
LH: loop header
LB: loop body
LE: loop exit
PB: predicated region body
PF: predicated region fallthrough
CT: control target
= control target key end

     0   :  { %s9113_s0 = inlined_call_operand.vmem [shape: s32[3], index: 0, kind: input, shape index: {}]   ;;  %s9114_s2 = inlined_call_operand.vmem [shape: f32[2,1,256,128], index: 2, kind: input, shape index: {}]   ;;  %s9115_s3 = inlined_call_operand.vmem [shape: f32[3,1,1,128], index: 3, kind: input, shape index: {}]   ;;  %s9116_s4 = inlined_call_operand.vmem [shape: f32[3,1,1,128], index: 4, kind: input, shape index: {}]   ;;  %s9117_s5 = inlined_call_operand.vmem [shape: bf16[3,1,128,128], index: 5, kind: input, shape index: {}]   ;;  %s9118_s6 = inlined_call_operand.vmem [shape: f32[3,1,128], index: 6, kind: input, shape index: {}]   ;;  %s9119_s7 = inlined_call_operand.vmem [shape: bf16[3,3,384,128], index: 7, kind: input, shape index: {}]   ;;  %s9120_s8 = inlined_call_operand.vmem [shape: f32[2,1,256,128], index: 8, kind: output, shape index: {}]   ;;  %s9121_s1 = inlined_call_operand.vmem [shape: s32[3], index: 1, kind: input, shape index: {}]  }
   0x1   :  { %s13_s29 = sshll.u32 %s9113_s0, 4  ;;  %s17_s10 = sshll.u32 %s9121_s1, 4  ;;  %s14_s29 = int_to_ptr.vmem [resolvable:$true] %s13_s29  ;;  %s18_s10 = int_to_ptr.vmem [resolvable:$true] %s17_s10 }
   0x2   :  { %s6024_s11 = scalar_lea.vmem %s14_s29, 16  ;;  %p6029_p1 = scmp.lt.s32.totalorder %s14_s29, %s14_s29 }
   0x3   :  { %p6025_p0 = scmp.ne.s32.totalorder %s14_s29, %s6024_s11  ;;  %p6030_p2 = scmp.lt.s32.totalorder %s6024_s11, %s6024_s11 }
   0x5   :  { %p6031_p3 = por %p6030_p2, %p6029_p1 }
   0x7   :  { %p6032_p4 = pnand %p6031_p3, %p6025_p0 }
   0x9   :  { %6035 = shalt.err (!%p6032_p4)  }
   0xa   :  { %s6610_s12 = smov [#allocation3]   ;;  %s6036_s13 = scalar_lea.vmem %s18_s10, 16 }
   0xb   :  { %16 = dma.vmem_to_smem %s14_s29, 16, %s6610_s12, [#allocation2] }
   0xc   :  { %p6037_p5 = scmp.ne.s32.totalorder %s18_s10, %s6036_s13  ;;  %p6041_p6 = scmp.lt.s32.totalorder %s18_s10, %s18_s10 }
   0xd   :  { %p6042_p7 = scmp.lt.s32.totalorder %s6036_s13, %s6036_s13 }
   0xf   :  { %p6043_p8 = por %p6042_p7, %p6041_p6 }
  0x11   :  { %p6044_p9 = pnand %p6043_p8, %p6037_p5 }
  0x13   :  { %6047 = shalt.err (!%p6044_p9)  }
  0x14   :  { %s6611_s0 = smov [#allocation4]  }
  0x15   :  { %20 = dma.vmem_to_smem %s18_s10, 16, %s6611_s0, [#allocation2] }
  0x16   :  { %6328 = dma.done.wait [#allocation2], 32 }
  0x17   :  { %6329 = vsyncadd [#allocation2], 4294967264 }
  0x18   :  { %22 = sfence }
  0x19   :  { %s6665_s1 = smov 0   ;;  %s6667_s14 = smov 0  }
  0x1a   :  { %s6669_s15 = smov 0   ;;  %s6671_s16 = smov 0  }
  0x1b   :  { %s6673_s17 = smov 0  }
  0x1c LB: > { %s37_s18 = sadd.s32 1, %s6340_s15  ;;  %s40_s19 = sadd.s32 1, %s6344_s16  ;;  %s6348_s17 = sphi %s6673_s17, %s28_s17   ;;  %s6344_s16 = sphi %s6671_s16, %s9507_s16   ;;  %s6340_s15 = sphi %s6669_s15, %s9506_s15   ;;  %s6336_s14 = sphi %s6667_s14, %s9505_s14   ;;  %s6332_s1 = sphi %s6665_s1, %s9504_s1  }
  0x1d   : > { %p38_p10 = scmp.ge.s32.totalorder %s37_s18, 3  ;;  %p4089_p11 = scmp.ge.s32.totalorder %s6348_s17, 1 }
  0x1e   : > { %p236_p12 = scmp.lt.s32.totalorder %s6348_s17, 7 }
  0x1f   : > { %s9509_s18 = smov (%p38_p10, %s37_s18), 0  ;;  %s9511_s19 = smov (!%p38_p10, %s40_s19), %s6344_s16 }
  0x20   : > { %p237_p13 = pnand %p4089_p11, %p236_p12  ;;  %p42_p0 = scmp.ge.s32.totalorder %s9511_s19, 2 }
  0x22   : > { %s9513_s19 = smov (%p42_p0, %s9511_s19), 0  ;;  %240 = sbr.rel (%p237_p13) target bundleno = 914 (0x392), region = 44 }
  0x29   : > { %p266_p1 = scmp.lt.s32.totalorder %s6336_s14, 1  ;;  %p4094_p2 = scmp.ne.s32.totalorder %s6332_s1, 0 }
  0x2b   : > { %s9515_s14 = smov (!%p266_p1, %s6336_s14), 1  ;;  %280 = sbr.rel (%p4094_p2) target bundleno = 63 (0x3f), region = 48 }
  0x2c   : > { %s4561_s20 = sshll.u32 %s9515_s14, 8 }
  0x2d   : > { %s6700_s23 = scalar_lea.vmem %s9114_s2, %s4561_s20  ;;  %s6705_s26 = scalar_lea.vmem %s9120_s8, %s4561_s20 }
  0x2e   : > { %v281_v0 = vld [vmem:[%s6700_s23] sm:$0xff] (!%p4094_p2)  ;;  %v282_v1 = vld [vmem:[%s6700_s23 + $0x8] sm:$0xff] (!%p4094_p2)  ;;  %v283_v2 = vld [vmem:[%s6700_s23 + $0x10] sm:$0xff] (!%p4094_p2) }
  0x2f   : > { %313 = vst [vmem:[%s6705_s26] sm:$0xff] (!%p4094_p2), %v281_v0  ;;  %314 = vst [vmem:[%s6705_s26 + $0x8] sm:$0xff] (!%p4094_p2), %v282_v1  ;;  %v284_v3 = vld [vmem:[%s6700_s23 + $0x18] sm:$0xff] (!%p4094_p2)  ;;  %v285_v4 = vld [vmem:[%s6700_s23 + $0x20] sm:$0xff] (!%p4094_p2) }
  0x30   : > { %315 = vst [vmem:[%s6705_s26 + $0x10] sm:$0xff] (!%p4094_p2), %v283_v2  ;;  %v286_v5 = vld [vmem:[%s6700_s23 + $0x28] sm:$0xff] (!%p4094_p2)  ;;  %316 = vst [vmem:[%s6705_s26 + $0x18] sm:$0xff] (!%p4094_p2), %v284_v3  ;;  %v287_v6 = vld [vmem:[%s6700_s23 + $0x30] sm:$0xff] (!%p4094_p2) }
  0x31   : > { %317 = vst [vmem:[%s6705_s26 + $0x20] sm:$0xff] (!%p4094_p2), %v285_v4  ;;  %318 = vst [vmem:[%s6705_s26 + $0x28] sm:$0xff] (!%p4094_p2), %v286_v5  ;;  %v288_v7 = vld [vmem:[%s6700_s23 + $0x38] sm:$0xff] (!%p4094_p2)  ;;  %v289_v8 = vld [vmem:[%s6700_s23 + $0x40] sm:$0xff] (!%p4094_p2) }
  0x32   : > { %319 = vst [vmem:[%s6705_s26 + $0x30] sm:$0xff] %v287_v6  ;;  %320 = vst [vmem:[%s6705_s26 + $0x38] sm:$0xff] %v288_v7  ;;  %v290_v9 = vld [vmem:[%s6700_s23 + $0x48] sm:$0xff]  ;;  %v291_v10 = vld [vmem:[%s6700_s23 + $0x50] sm:$0xff] }
  0x33   : > { %321 = vst [vmem:[%s6705_s26 + $0x40] sm:$0xff] %v289_v8  ;;  %v292_v11 = vld [vmem:[%s6700_s23 + $0x58] sm:$0xff]  ;;  %322 = vst [vmem:[%s6705_s26 + $0x48] sm:$0xff] %v290_v9  ;;  %v293_v12 = vld [vmem:[%s6700_s23 + $0x60] sm:$0xff] }
  0x34   : > { %323 = vst [vmem:[%s6705_s26 + $0x50] sm:$0xff] %v291_v10  ;;  %324 = vst [vmem:[%s6705_s26 + $0x58] sm:$0xff] %v292_v11  ;;  %v294_v13 = vld [vmem:[%s6700_s23 + $0x68] sm:$0xff]  ;;  %v295_v14 = vld [vmem:[%s6700_s23 + $0x70] sm:$0xff] }
  0x35   : > { %325 = vst [vmem:[%s6705_s26 + $0x60] sm:$0xff] %v293_v12  ;;  %326 = vst [vmem:[%s6705_s26 + $0x68] sm:$0xff] %v294_v13  ;;  %v296_v15 = vld [vmem:[%s6700_s23 + $0x78] sm:$0xff]  ;;  %v297_v16 = vld [vmem:[%s6700_s23 + $0x80] sm:$0xff] }
  0x36   : > { %327 = vst [vmem:[%s6705_s26 + $0x70] sm:$0xff] %v295_v14  ;;  %v298_v17 = vld [vmem:[%s6700_s23 + $0x88] sm:$0xff]  ;;  %328 = vst [vmem:[%s6705_s26 + $0x78] sm:$0xff] %v296_v15  ;;  %v299_v18 = vld [vmem:[%s6700_s23 + $0x90] sm:$0xff] }
  0x37   : > { %329 = vst [vmem:[%s6705_s26 + $0x80] sm:$0xff] %v297_v16  ;;  %330 = vst [vmem:[%s6705_s26 + $0x88] sm:$0xff] %v298_v17  ;;  %v300_v19 = vld [vmem:[%s6700_s23 + $0x98] sm:$0xff]  ;;  %v301_v20 = vld [vmem:[%s6700_s23 + $0xa0] sm:$0xff] }
  0x38   : > { %331 = vst [vmem:[%s6705_s26 + $0x90] sm:$0xff] %v299_v18  ;;  %332 = vst [vmem:[%s6705_s26 + $0x98] sm:$0xff] %v300_v19  ;;  %v302_v21 = vld [vmem:[%s6700_s23 + $0xa8] sm:$0xff]  ;;  %v303_v22 = vld [vmem:[%s6700_s23 + $0xb0] sm:$0xff] }
  0x39   : > { %333 = vst [vmem:[%s6705_s26 + $0xa0] sm:$0xff] %v301_v20  ;;  %v304_v23 = vld [vmem:[%s6700_s23 + $0xb8] sm:$0xff]  ;;  %334 = vst [vmem:[%s6705_s26 + $0xa8] sm:$0xff] %v302_v21  ;;  %v305_v24 = vld [vmem:[%s6700_s23 + $0xc0] sm:$0xff] }
  0x3a   : > { %335 = vst [vmem:[%s6705_s26 + $0xb0] sm:$0xff] %v303_v22  ;;  %336 = vst [vmem:[%s6705_s26 + $0xb8] sm:$0xff] %v304_v23  ;;  %v306_v25 = vld [vmem:[%s6700_s23 + $0xc8] sm:$0xff]  ;;  %v307_v26 = vld [vmem:[%s6700_s23 + $0xd0] sm:$0xff] }
  0x3b   : > { %337 = vst [vmem:[%s6705_s26 + $0xc0] sm:$0xff] %v305_v24  ;;  %338 = vst [vmem:[%s6705_s26 + $0xc8] sm:$0xff] %v306_v25  ;;  %v308_v27 = vld [vmem:[%s6700_s23 + $0xd8] sm:$0xff]  ;;  %v309_v28 = vld [vmem:[%s6700_s23 + $0xe0] sm:$0xff] }
  0x3c   : > { %339 = vst [vmem:[%s6705_s26 + $0xd0] sm:$0xff] %v307_v26  ;;  %v310_v29 = vld [vmem:[%s6700_s23 + $0xe8] sm:$0xff]  ;;  %340 = vst [vmem:[%s6705_s26 + $0xd8] sm:$0xff] %v308_v27  ;;  %v311_v30 = vld [vmem:[%s6700_s23 + $0xf0] sm:$0xff] }
  0x3d   : > { %341 = vst [vmem:[%s6705_s26 + $0xe0] sm:$0xff] %v309_v28  ;;  %342 = vst [vmem:[%s6705_s26 + $0xe8] sm:$0xff] %v310_v29  ;;  %v312_v31 = vld [vmem:[%s6700_s23 + $0xf8] sm:$0xff] }
  0x3e   : > { %343 = vst [vmem:[%s6705_s26 + $0xf0] sm:$0xff] %v311_v30  ;;  %344 = vst [vmem:[%s6705_s26 + $0xf8] sm:$0xff] %v312_v31 }
  0x3f PF: > { %s6773_s27 = sld [smem:[#allocation3 + %s6332_s1]]  ;;  %v6776_v32 = vmov 0.0   ;;  %v6778_v33 = vmov 0.0   ;;  %v6780_v34 = vmov 0.0   ;;  %v6782_v35 = vmov 0.0  }
  0x40   : > { %v6784_v36 = vmov 0.0   ;;  %v6786_v37 = vmov 0.0   ;;  %v6788_v38 = vmov 0.0   ;;  %v6790_v39 = vmov 0.0  }
  0x41   : > { %v6792_v40 = vmov 0.0   ;;  %v6794_v41 = vmov 0.0   ;;  %v6796_v42 = vmov 0.0   ;;  %v6798_v43 = vmov 0.0  }
  0x42   : > { %v6800_v44 = vmov 0.0   ;;  %v6802_v45 = vmov 0.0   ;;  %v6804_v46 = vmov 0.0   ;;  %v6806_v47 = vmov 0.0  }
  0x43   : > { %v6808_v48 = vmov 0.0   ;;  %v6810_v49 = vmov 0.0   ;;  %v6812_v50 = vmov 0.0   ;;  %v6814_v51 = vmov 0.0  }
  0x44   : > { %v6816_v52 = vmov 0.0   ;;  %v6818_v53 = vmov 0.0   ;;  %v6820_v54 = vmov 0.0   ;;  %v6822_v55 = vmov 0.0  }
  0x45   : > { %p4095_p3 = scmp.le.s32.totalorder %s6773_s27, 0  ;;  %v6824_v56 = vmov 0.0   ;;  %v6826_v57 = vmov 0.0   ;;  %v6828_v58 = vmov 0.0   ;;  %v6830_v59 = vmov 0.0  }
  0x46   : > { %v6832_v60 = vmov 0.0   ;;  %v6834_v61 = vmov 0.0   ;;  %v6836_v62 = vmov 0.0   ;;  %v6838_v63 = vmov 0.0  }
  0x47   : > { %3987 = sbr.rel (%p4095_p3) target bundleno = 373 (0x175), region = 88 }
  0x4e   : > { %v6842_v0 = vmov 0.0   ;;  %v6844_v1 = vmov 0.0   ;;  %v6846_v2 = vmov 0.0   ;;  %v6848_v3 = vmov 0.0   ;;  %s6906_s28 = smov 0  }
  0x4f   : > { %v6850_v4 = vmov 0.0   ;;  %v6852_v5 = vmov 0.0   ;;  %v6854_v6 = vmov 0.0   ;;  %v6856_v7 = vmov 0.0  }
  0x50   : > { %v6858_v8 = vmov 0.0   ;;  %v6860_v9 = vmov 0.0   ;;  %v6862_v10 = vmov 0.0   ;;  %v6864_v11 = vmov 0.0  }
  0x51   : > { %v6866_v12 = vmov 0.0   ;;  %v6868_v13 = vmov 0.0   ;;  %v6870_v14 = vmov 0.0   ;;  %v6872_v15 = vmov 0.0  }
  0x52   : > { %v6874_v16 = vmov 0.0   ;;  %v6876_v17 = vmov 0.0   ;;  %v6878_v18 = vmov 0.0   ;;  %v6880_v19 = vmov 0.0  }
  0x53   : > { %v6882_v20 = vmov 0.0   ;;  %v6884_v21 = vmov 0.0   ;;  %v6886_v22 = vmov 0.0   ;;  %v6888_v23 = vmov 0.0  }
  0x54   : > { %v6890_v24 = vmov 0.0   ;;  %v6892_v25 = vmov 0.0   ;;  %v6894_v26 = vmov 0.0   ;;  %v6896_v27 = vmov 0.0  }
  0x55   : > { %9202 = vst [vmem:[#allocation6_spill] sm:$0xff] %v6896_v27  ;;  %v6898_v28 = vmov 0.0   ;;  %v6900_v29 = vmov 0.0   ;;  %v6902_v30 = vmov 0.0   ;;  %v6904_v31 = vmov 0.0  }
  0x56   : > { %9203 = vst [vmem:[#allocation7_spill] sm:$0xff] %v6902_v30 }
  0x57 LB: >> { %9206 = vst [vmem:[#allocation8_spill] sm:$0xff] %v6352_v0  ;;  %9207 = vst [vmem:[#allocation9_spill] sm:$0xff] %v6360_v2  ;;  %s4100_s29 = sshll.u32 %s6332_s1, 4  ;;  %s4096_s30 = sshll.u32 %s6480_s28, 8  ;;  %s6480_s28 = sphi %s6906_s28, %s9278_s28   ;;  %v6476_v31 = vphi %v6904_v31, %v9277_v31   ;;  %v6468_v29 = vphi %v6900_v29, %v9274_v29   ;;  %v6464_v28 = vphi %v6898_v28, %v9273_v28   ;;  %v6456_v26 = vphi %v6894_v26, %v9271_v26   ;;  %v6452_v25 = vphi %v6892_v25, %v9270_v25   ;;  %v6448_v24 = vphi %v6890_v24, %v9269_v24   ;;  %v6444_v23 = vphi %v6888_v23, %v9268_v23   ;;  %v6440_v22 = vphi %v6886_v22, %v9267_v22   ;;  %v6436_v21 = vphi %v6884_v21, %v9266_v21   ;;  %v6432_v20 = vphi %v6882_v20, %v9265_v20   ;;  %v6428_v19 = vphi %v6880_v19, %v9264_v19   ;;  %v6424_v18 = vphi %v6878_v18, %v9263_v18   ;;  %v6420_v17 = vphi %v6876_v17, %v9262_v17   ;;  %v6416_v16 = vphi %v6874_v16, %v9261_v16   ;;  %v6412_v15 = vphi %v6872_v15, %v9260_v15   ;;  %v6408_v14 = vphi %v6870_v14, %v9259_v14   ;;  %v6404_v13 = vphi %v6868_v13, %v9258_v13   ;;  %v6400_v12 = vphi %v6866_v12, %v9257_v12   ;;  %v6396_v11 = vphi %v6864_v11, %v9256_v11   ;;  %v6392_v10 = vphi %v6862_v10, %v9255_v10   ;;  %v6388_v9 = vphi %v6860_v9, %v9254_v9   ;;  %v6384_v8 = vphi %v6858_v8, %v9253_v8   ;;  %v6380_v7 = vphi %v6856_v7, %v9252_v7   ;;  %v6376_v6 = vphi %v6854_v6, %v9251_v6   ;;  %v6372_v5 = vphi %v6852_v5, %v9250_v5   ;;  %v6368_v4 = vphi %v6850_v4, %v9249_v4   ;;  %v6364_v3 = vphi %v6848_v3, %v9248_v3   ;;  %v6360_v2 = vphi %v6846_v2, %v9247_v2   ;;  %v6356_v1 = vphi %v6844_v1, %v9246_v1   ;;  %v6352_v0 = vphi %v6842_v0, %v9245_v0  }
  0x58   : >> { %9208 = vst [vmem:[#allocation10_spill] sm:$0xff] %v6416_v16  ;;  %9209 = vst [vmem:[#allocation11_spill] sm:$0xff] %v6424_v18  ;;  %s418_s9 = sadd.s32 %s6480_s28, %s6332_s1  ;;  %s7012_s10 = scalar_lea.vmem %s6705_s26, %s4096_s30 }
  0x59   : >> { %s419_s13 = scalar_lea.vmem %s9115_s3, %s418_s9  ;;  %s459_s20 = scalar_lea.vmem %s9116_s4, %s418_s9  ;;  %v386_v33 = vld [vmem:[%s7012_s10] sm:$0xff]  ;;  %v387_v34 = vld [vmem:[%s7012_s10 + $0x8] sm:$0xff]  ;;  %v388_v57 = vld [vmem:[%s7012_s10 + $0x10] sm:$0xff] }
  0x5a   : >> { %v7017_v32 = vld [vmem:[%s419_s13] ss:$0 sm:$0xff]  ;;  %s4099_s21 = sshll.u32 %s6480_s28, 4  ;;  %v403_v39 = vld [vmem:[%s7012_s10 + $0x88] sm:$0xff]  ;;  %v389_v58 = vld [vmem:[%s7012_s10 + $0x18] sm:$0xff] }
  0x5b   : >> { %v7025_v35 = vld [vmem:[%s459_s20] ss:$0 sm:$0xff]  ;;  %s549_s22 = sadd.s32 %s4100_s29, %s4099_s21  ;;  %v427_v36 = vmul.f32 %v7017_v32, %v386_v33  ;;  %v428_v37 = vmul.f32 %v7017_v32, %v387_v34  ;;  %v444_v41 = vmul.f32 %v7017_v32, %v403_v39  ;;  %v404_v59 = vld [vmem:[%s7012_s10 + $0x90] sm:$0xff]  ;;  %v405_v60 = vld [vmem:[%s7012_s10 + $0x98] sm:$0xff]  ;;  %v429_v33 = vmul.f32 %v7017_v32, %v388_v57  ;;  %s349_s29 = sadd.s32 1, %s6480_s28  }
  0x5c   : >> { %v9210_v27 = vld [vmem:[#allocation6_spill] sm:$0xff]  ;;  %v402_v38 = vld [vmem:[%s7012_s10 + $0x80] sm:$0xff]  ;;  %s4101_s23 = sshll.u32 %s549_s22, 2  ;;  %v391_v62 = vld [vmem:[%s7012_s10 + $0x28] sm:$0xff]  ;;  %v446_v39 = vmul.f32 %v7017_v32, %v405_v60  ;;  %p7218_p4 = scmp.ge.s32.totalorder %s349_s29, %s6773_s27 }
  0x5d   : >> { %9211 = vst [vmem:[#allocation6_spill] sm:$0xff] %v9210_v27  ;;  %v9212_v30 = vld [vmem:[#allocation7_spill] sm:$0xff]  ;;  %v443_v40 = vmul.f32 %v7017_v32, %v402_v38  ;;  %s7036_s30 = scalar_lea.vmem %s9117_s5, %s4101_s23  ;;  %v467_v42 = vadd.f32 %v7025_v35, %v427_v36  ;;  %v468_v43 = vadd.f32 %v7025_v35, %v428_v37  ;;  %v484_v46 = vadd.f32 %v7025_v35, %v444_v41  ;;  %v390_v61 = vld [vmem:[%s7012_s10 + $0x20] sm:$0xff]  ;;  %v407_v36 = vld [vmem:[%s7012_s10 + $0xa8] sm:$0xff]  ;;  %s9278_s28 = smov %s349_s29 }
  0x5e   : >> { %9213 = vst [vmem:[#allocation7_spill] sm:$0xff] %v9212_v30  ;;  %v5944_v44 = vld [vmem:[%s7036_s30] sm:$0xff]   ;;  %v5945_v47 = vld [vmem:[%s7036_s30 + $0x8] sm:$0xff]   ;;  %v5946_v51 = vld [vmem:[%s7036_s30 + $0x10] sm:$0xff]   ;;  %v430_v37 = vmul.f32 %v7017_v32, %v389_v58  ;;  %v445_v38 = vmul.f32 %v7017_v32, %v404_v59  ;;  %v432_v41 = vmul.f32 %v7017_v32, %v391_v62 }
  0x5f   : >> { %v483_v45 = vadd.f32 %v7025_v35, %v443_v40  ;;  %v499_v48 = vmax.f32 %v467_v42, 0.0  ;;  %4996 = vmatprep.subr.bf16.mxu0 %v5944_v44  ;;  %5188 = vmatprep.subr.bf16.mxu1 %v5944_v44  ;;  %v500_v49 = vmax.f32 %v468_v43, 0.0  ;;  %v516_v53 = vmax.f32 %v484_v46, 0.0  ;;  %v5947_v55 = vld [vmem:[%s7036_s30 + $0x18] sm:$0xff]   ;;  %v5948_v56 = vld [vmem:[%s7036_s30 + $0x20] sm:$0xff]   ;;  %v5949_v63 = vld [vmem:[%s7036_s30 + $0x28] sm:$0xff]  }
  0x60   : >> { %4997 = vmatpush3.bf16.msra.mxu0 %v5944_v44  ;;  %5196 = vmatpush3.bf16.msra.mxu1 %v5944_v44  ;;  %v406_v34 = vld [vmem:[%s7012_s10 + $0xa0] sm:$0xff]  ;;  %v431_v40 = vmul.f32 %v7017_v32, %v390_v61  ;;  %v448_v43 = vmul.f32 %v7017_v32, %v407_v36  ;;  %v5950_v44 = vld [vmem:[%s7036_s30 + $0x30] sm:$0xff]   ;;  %v395_v59 = vld [vmem:[%s7012_s10 + $0x48] sm:$0xff] }
  0x61   : >> { %v515_v50 = vmax.f32 %v483_v45, 0.0  ;;  %4998 = vmatprep.subr.bf16.mxu0 %v5945_v47  ;;  %5189 = vmatprep.subr.bf16.mxu1 %v5945_v47  ;;  %v531_v52 = vpack.c.bf16 %v500_v49, %v499_v48  ;;  %v447_v42 = vmul.f32 %v7017_v32, %v406_v34  ;;  %v469_v45 = vadd.f32 %v7025_v35, %v429_v33  ;;  %v392_v46 = vld [vmem:[%s7012_s10 + $0x30] sm:$0xff]  ;;  %v410_v60 = vld [vmem:[%s7012_s10 + $0xc0] sm:$0xff]  ;;  %v411_v61 = vld [vmem:[%s7012_s10 + $0xc8] sm:$0xff] }
  0x62   : >> { %v485_v48 = vadd.f32 %v7025_v35, %v445_v38  ;;  %v486_v49 = vadd.f32 %v7025_v35, %v446_v39  ;;  %v488_v57 = vadd.f32 %v7025_v35, %v448_v43  ;;  %v433_v58 = vmul.f32 %v7017_v32, %v392_v46  ;;  %v5951_v62 = vld [vmem:[%s7036_s30 + $0x38] sm:$0xff]   ;;  %v415_v2 = vld [vmem:[%s7012_s10 + $0xe8] sm:$0xff] }
  0x63   : >> { %5012 = vmatprep.mubr.bf16.mxu0 %v531_v52  ;;  %v539_v54 = vpack.c.bf16 %v516_v53, %v515_v50  ;;  %v393_v50 = vld [vmem:[%s7012_s10 + $0x38] sm:$0xff]  ;;  %v471_v53 = vadd.f32 %v7025_v35, %v431_v40  ;;  %v501_v33 = vmax.f32 %v469_v45, 0.0  ;;  %v451_v43 = vmul.f32 %v7017_v32, %v410_v60  ;;  %v412_v60 = vld [vmem:[%s7012_s10 + $0xd0] sm:$0xff] }
  0x64   : >> { %4999 = vmatpush3.bf16.msra.mxu0 %v5945_v47  ;;  %5197 = vmatpush3.bf16.msra.mxu1 %v5945_v47  ;;  %v470_v47 = vadd.f32 %v7025_v35, %v430_v37  ;;  %v409_v52 = vld [vmem:[%s7012_s10 + $0xb8] sm:$0xff]  ;;  %v434_v34 = vmul.f32 %v7017_v32, %v393_v50  ;;  %v517_v38 = vmax.f32 %v485_v48, 0.0  ;;  %v518_v39 = vmax.f32 %v486_v49, 0.0 }
  0x65   : >> { %5000 = vmatprep.subr.bf16.mxu0 %v5946_v51  ;;  %5190 = vmatprep.subr.bf16.mxu1 %v5946_v51  ;;  %v450_v37 = vmul.f32 %v7017_v32, %v409_v52  ;;  %v452_v46 = vmul.f32 %v7017_v32, %v411_v61  ;;  %v413_v61 = vld [vmem:[%s7012_s10 + $0xd8] sm:$0xff]  ;;  %v453_v0 = vmul.f32 %v7017_v32, %v412_v60 }
  0x66   : >> { %5028 = vmatprep.mubr.bf16.mxu1 %v539_v54  ;;  %v472_v54 = vadd.f32 %v7025_v35, %v432_v41  ;;  %v503_v41 = vmax.f32 %v471_v53, 0.0  ;;  %v474_v48 = vadd.f32 %v7025_v35, %v434_v34  ;;  %v454_v16 = vmul.f32 %v7017_v32, %v413_v61 }
  0x67   : >> { %v490_v52 = vadd.f32 %v7025_v35, %v450_v37  ;;  %v398_v37 = vld [vmem:[%s7012_s10 + $0x60] sm:$0xff] }
  0x68   : >> { %5001 = vmatpush3.bf16.msra.mxu0 %v5946_v51  ;;  %5198 = vmatpush3.bf16.msra.mxu1 %v5946_v51  ;;  %v408_v51 = vld [vmem:[%s7012_s10 + $0xb0] sm:$0xff]  ;;  %v504_v45 = vmax.f32 %v472_v54, 0.0 }
  0x69   : >> { %5002 = vmatprep.subr.bf16.mxu0 %v5947_v55  ;;  %5191 = vmatprep.subr.bf16.mxu1 %v5947_v55  ;;  %v449_v36 = vmul.f32 %v7017_v32, %v408_v51  ;;  %v520_v51 = vmax.f32 %v488_v57, 0.0  ;;  %v396_v54 = vld [vmem:[%s7012_s10 + $0x50] sm:$0xff]  ;;  %v491_v57 = vadd.f32 %v7025_v35, %v451_v43  ;;  %v414_v43 = vld [vmem:[%s7012_s10 + $0xe0] sm:$0xff] }
  0x6a   : >> { %v533_v34 = vpack.c.bf16 %v504_v45, %v503_v41 }
  0x6b   : >> { %v489_v49 = vadd.f32 %v7025_v35, %v449_v36  ;;  %v523_v41 = vmax.f32 %v491_v57, 0.0 }
  0x6c   : >> { %5003 = vmatpush3.bf16.msra.mxu0 %v5947_v55  ;;  %5199 = vmatpush3.bf16.msra.mxu1 %v5947_v55  ;;  %v394_v55 = vld [vmem:[%s7012_s10 + $0x40] sm:$0xff] }
  0x6d   : >> { %5004 = vmatprep.subr.bf16.mxu0 %v5948_v56  ;;  %5192 = vmatprep.subr.bf16.mxu1 %v5948_v56  ;;  %v435_v40 = vmul.f32 %v7017_v32, %v394_v55  ;;  %v540_v55 = vpack.c.bf16 %v518_v39, %v517_v38  ;;  %v521_v38 = vmax.f32 %v489_v49, 0.0  ;;  %v522_v39 = vmax.f32 %v490_v52, 0.0 }
  0x70   : >> { %5005 = vmatpush3.bf16.msra.mxu0 %v5948_v56  ;;  %5200 = vmatpush3.bf16.msra.mxu1 %v5948_v56  ;;  %v487_v56 = vadd.f32 %v7025_v35, %v447_v42  ;;  %v436_v42 = vmul.f32 %v7017_v32, %v395_v59  ;;  %v397_v59 = vld [vmem:[%s7012_s10 + $0x58] sm:$0xff] }
  0x71   : >> { %5006 = vmatprep.subr.bf16.mxu0 %v5949_v63  ;;  %5193 = vmatprep.subr.bf16.mxu1 %v5949_v63 }
  0x72   : >> { %v519_v50 = vmax.f32 %v487_v56, 0.0  ;;  %v476_v56 = vadd.f32 %v7025_v35, %v436_v42  ;;  %v399_v42 = vld [vmem:[%s7012_s10 + $0x68] sm:$0xff] }
  0x74   : >> { %5007 = vmatpush3.bf16.msra.mxu0 %v5949_v63  ;;  %5201 = vmatpush3.bf16.msra.mxu1 %v5949_v63  ;;  %v502_v63 = vmax.f32 %v470_v47, 0.0  ;;  %v473_v47 = vadd.f32 %v7025_v35, %v433_v58  ;;  %v492_v58 = vadd.f32 %v7025_v35, %v452_v46  ;;  %v438_v46 = vmul.f32 %v7017_v32, %v397_v59 }
  0x75   : >> { %5008 = vmatprep.subr.bf16.mxu0 %v5950_v44  ;;  %5194 = vmatprep.subr.bf16.mxu1 %v5950_v44 }
  0x76   : >> { %v532_v53 = vpack.c.bf16 %v502_v63, %v501_v33  ;;  %v541_v33 = vpack.c.bf16 %v520_v51, %v519_v50  ;;  %v505_v36 = vmax.f32 %v473_v47, 0.0  ;;  %v506_v63 = vmax.f32 %v474_v48, 0.0 }
  0x77   : >> { %v524_v45 = vmax.f32 %v492_v58, 0.0  ;;  %v439_v50 = vmul.f32 %v7017_v32, %v398_v37  ;;  %v440_v51 = vmul.f32 %v7017_v32, %v399_v42  ;;  %v455_v47 = vmul.f32 %v7017_v32, %v414_v43  ;;  %v400_v58 = vld [vmem:[%s7012_s10 + $0x70] sm:$0xff]  ;;  %v417_v37 = vld [vmem:[%s7012_s10 + $0xf8] sm:$0xff] }
  0x78   : >> { %5009 = vmatpush3.bf16.msra.mxu0 %v5950_v44  ;;  %5202 = vmatpush3.bf16.msra.mxu1 %v5950_v44  ;;  %v475_v44 = vadd.f32 %v7025_v35, %v435_v40  ;;  %v437_v40 = vmul.f32 %v7017_v32, %v396_v54  ;;  %v456_v48 = vmul.f32 %v7017_v32, %v415_v2 }
  0x79   : >> { %5010 = vmatprep.subr.bf16.mxu0 %v5951_v62  ;;  %5195 = vmatprep.subr.bf16.mxu1 %v5951_v62  ;;  %v478_v52 = vadd.f32 %v7025_v35, %v438_v46  ;;  %v534_v54 = vpack.c.bf16 %v506_v63, %v505_v36  ;;  %v543_v57 = vpack.c.bf16 %v524_v45, %v523_v41 }
  0x7a   : >> { %v507_v18 = vmax.f32 %v475_v44, 0.0  ;;  %v477_v49 = vadd.f32 %v7025_v35, %v437_v40  ;;  %v494_v44 = vadd.f32 %v7025_v35, %v454_v16  ;;  %v479_v59 = vadd.f32 %v7025_v35, %v439_v50 }
  0x7b   : >> { %v480_v60 = vadd.f32 %v7025_v35, %v440_v51  ;;  %v495_v2 = vadd.f32 %v7025_v35, %v455_v47  ;;  %v496_v61 = vadd.f32 %v7025_v35, %v456_v48  ;;  %v441_v36 = vmul.f32 %v7017_v32, %v400_v58 }
  0x7c   : >> { %5011 = vmatpush3.bf16.msra.mxu0 %v5951_v62  ;;  %5203 = vmatpush3.bf16.msra.mxu1 %v5951_v62  ;;  %v508_v62 = vmax.f32 %v476_v56, 0.0  ;;  %v509_v40 = vmax.f32 %v477_v49, 0.0  ;;  %v526_v16 = vmax.f32 %v494_v44, 0.0 }
  0x7d   : >> { %v512_v43 = vmax.f32 %v480_v60, 0.0  ;;  %v527_v46 = vmax.f32 %v495_v2, 0.0  ;;  %v481_v50 = vadd.f32 %v7025_v35, %v441_v36 }
  0x7e   : >> { %v535_v56 = vpack.c.bf16 %v508_v62, %v507_v18  ;;  %v528_v62 = vmax.f32 %v496_v61, 0.0 }
  0x7f   : >> { %5013 = vmatmul.mubr.bf16.vlgmr.msra.gmra.mrb[0].mxu0 %v532_v53  ;;  %5029 = vmatmul.mubr.bf16.vlgmr.msra.gmra.mrb[0].mxu1 %v540_v55  ;;  %v493_v53 = vadd.f32 %v7025_v35, %v453_v0  ;;  %v542_v55 = vpack.c.bf16 %v522_v39, %v521_v38  ;;  %v510_v0 = vmax.f32 %v478_v52, 0.0  ;;  %v458_v38 = vmul.f32 %v7017_v32, %v417_v37  ;;  %v9220_v37 = vld [vmem:[#allocation7_spill] sm:$0xff] }
  0x80   : >> { %5016 = vmatprep.mubr.bf16.mxu0 %v533_v34  ;;  %5032 = vmatprep.mubr.bf16.mxu1 %v541_v33  ;;  %v401_v34 = vld [vmem:[%s7012_s10 + $0x78] sm:$0xff]  ;;  %v416_v33 = vld [vmem:[%s7012_s10 + $0xf0] sm:$0xff]  ;;  %v511_v39 = vmax.f32 %v479_v59, 0.0  ;;  %v545_v52 = vpack.c.bf16 %v528_v62, %v527_v46 }
  0x81   : >> { %v525_v42 = vmax.f32 %v493_v53, 0.0  ;;  %v442_v18 = vmul.f32 %v7017_v32, %v401_v34  ;;  %v457_v63 = vmul.f32 %v7017_v32, %v416_v33  ;;  %v536_v41 = vpack.c.bf16 %v510_v0, %v509_v40 }
  0x82   : >> { %v498_v48 = vadd.f32 %v7025_v35, %v458_v38  ;;  %v537_v49 = vpack.c.bf16 %v512_v43, %v511_v39  ;;  %v513_v32 = vmax.f32 %v481_v50, 0.0  ;;  %v9225_v0 = vmov %v9210_v27 }
  0x83   : >> { %v544_v45 = vpack.c.bf16 %v526_v16, %v525_v42  ;;  %v482_v51 = vadd.f32 %v7025_v35, %v442_v18  ;;  %v497_v47 = vadd.f32 %v7025_v35, %v457_v63 }
  0x85   : >> { %v514_v53 = vmax.f32 %v482_v51, 0.0  ;;  %v529_v44 = vmax.f32 %v497_v47, 0.0 }
  0x87   : >> { %5017 = vmatmul.mubr.bf16.gmra.mrb[4].mxu0 %v534_v54  ;;  %5033 = vmatmul.mubr.bf16.gmra.mrb[4].mxu1 %v542_v55  ;;  %v530_v54 = vmax.f32 %v498_v48, 0.0  ;;  %v538_v55 = vpack.c.bf16 %v514_v53, %v513_v32  ;;  %v9240_v32 = vld [vmem:[#allocation10_spill] sm:$0xff] }
  0x88   : >> { %5020 = vmatprep.mubr.bf16.mxu0 %v535_v56  ;;  %5036 = vmatprep.mubr.bf16.mxu1 %v543_v57 }
  0x89   : >> { %v546_v56 = vpack.c.bf16 %v530_v54, %v529_v44 }
  0x8f   : >> { %5021 = vmatmul.mubr.bf16.gmra.mrb[8].mxu0 %v536_v41  ;;  %5037 = vmatmul.mubr.bf16.gmra.mrb[8].mxu1 %v544_v45 }
  0x90   : >> { %5024 = vmatprep.mubr.bf16.mxu0 %v537_v49  ;;  %5040 = vmatprep.mubr.bf16.mxu1 %v545_v52 }
  0x97   : >> { %5025 = vmatmul.mubr.bf16.gmra.mrb[12].mxu0 %v538_v55  ;;  %5041 = vmatmul.mubr.bf16.gmra.mrb[12].mxu1 %v546_v56 }
 0x152   : >> { %v5014_v57 = vpop.f32.mrb[0].mxu0  ;;  %v5030_v58 = vpop.f32.mrb[0].mxu1 }
 0x153   : >> { %v7135_v29 = vadd.f32 %v6468_v29, %v5014_v57   ;;  %v7138_v13 = vadd.f32 %v6404_v13, %v5030_v58   ;;  %v650_v35 = vpop.f32.mrb[1].mxu0  ;;  %v714_v60 = vpop.f32.mrb[1].mxu1 }
 0x154   : >> { %v7141_v31 = vadd.f32 %v6476_v31, %v650_v35   ;;  %v7144_v15 = vadd.f32 %v6412_v15, %v714_v60   ;;  %v5015_v2 = vpop.f32.mrb[2].mxu0  ;;  %v5031_v34 = vpop.f32.mrb[2].mxu1 }
 0x155   : >> { %9214 = vst [vmem:[#allocation12_spill] sm:$0xff] %v7135_v29  ;;  %v9215_v59 = vmov %v7138_v13  ;;  %v7147_v28 = vadd.f32 %v6464_v28, %v5015_v2   ;;  %v7150_v12 = vadd.f32 %v6400_v12, %v5031_v34   ;;  %v653_v29 = vpop.f32.mrb[3].mxu0  ;;  %v717_v33 = vpop.f32.mrb[3].mxu1 }
 0x156   : >> { %9216 = vst [vmem:[#allocation13_spill] sm:$0xff] %v7141_v31  ;;  %v9217_v62 = vmov %v7144_v15  ;;  %v7153_v13 = vadd.f32 %v9220_v37, %v653_v29   ;;  %v7156_v14 = vadd.f32 %v6408_v14, %v717_v33   ;;  %v9242_v29 = vld [vmem:[#allocation11_spill] sm:$0xff] }
 0x157   : >> { %v9218_v30 = vmov %v7147_v28  ;;  %v9219_v46 = vmov %v7150_v12 }
 0x158   : >> { %9221 = vst [vmem:[#allocation14_spill] sm:$0xff] %v7153_v13  ;;  %v9222_v50 = vmov %v7156_v14  ;;  %v9258_v13 = vmov %v9215_v59 }
 0x15a   : >> { %v5018_v31 = vpop.f32.mrb[4].mxu0  ;;  %v5034_v40 = vpop.f32.mrb[4].mxu1 }
 0x15b   : >> { %v7159_v25 = vadd.f32 %v6452_v25, %v5018_v31   ;;  %v7162_v9 = vadd.f32 %v6388_v9, %v5034_v40   ;;  %v666_v15 = vpop.f32.mrb[5].mxu0  ;;  %v730_v28 = vpop.f32.mrb[5].mxu1 }
 0x15c   : >> { %v7165_v12 = vadd.f32 %v9225_v0, %v666_v15   ;;  %v7168_v11 = vadd.f32 %v6396_v11, %v730_v28   ;;  %v5019_v16 = vpop.f32.mrb[6].mxu0  ;;  %v5035_v36 = vpop.f32.mrb[6].mxu1  ;;  %v9260_v15 = vmov %v9217_v62  ;;  %v9273_v28 = vmov %v9218_v30 }
 0x15d   : >> { %v9223_v57 = vmov %v7159_v25  ;;  %v9224_v42 = vmov %v7162_v9  ;;  %v7171_v24 = vadd.f32 %v6448_v24, %v5019_v16   ;;  %v7174_v8 = vadd.f32 %v6384_v8, %v5035_v36   ;;  %v669_v14 = vpop.f32.mrb[7].mxu0  ;;  %v733_v25 = vpop.f32.mrb[7].mxu1  ;;  %v9277_v31 = vld [vmem:[#allocation13_spill] sm:$0xff] }
 0x15e   : >> { %v9226_v60 = vmov %v7165_v12  ;;  %v9227_v43 = vmov %v7168_v11  ;;  %v7177_v26 = vadd.f32 %v6456_v26, %v669_v14   ;;  %v7180_v10 = vadd.f32 %v6392_v10, %v733_v25  }
 0x15f   : >> { %v9228_v56 = vmov %v7171_v24  ;;  %v9229_v41 = vmov %v7174_v8  ;;  %v9257_v12 = vmov %v9219_v46  ;;  %v9259_v14 = vmov %v9222_v50  ;;  %9272 = vst [vmem:[#allocation6_spill] sm:$0xff] %v9226_v60  ;;  %v9275_v33 = vld [vmem:[#allocation14_spill] sm:$0xff] }
 0x160   : >> { %v9230_v58 = vmov %v7177_v26  ;;  %v9231_v45 = vmov %v7180_v10  ;;  %v9270_v25 = vmov %v9223_v57  ;;  %9276 = vst [vmem:[#allocation7_spill] sm:$0xff] %v9275_v33  ;;  %v9285_v40 = vmov (%p7218_p4), %v9229_v41 }
 0x162   : >> { %v5022_v9 = vpop.f32.mrb[8].mxu0  ;;  %v5038_v18 = vpop.f32.mrb[8].mxu1 }
 0x163   : >> { %v7183_v21 = vadd.f32 %v6436_v21, %v5022_v9   ;;  %v7186_v5 = vadd.f32 %v6372_v5, %v5038_v18   ;;  %v682_v11 = vpop.f32.mrb[9].mxu0  ;;  %v746_v24 = vpop.f32.mrb[9].mxu1  ;;  %v9254_v9 = vmov %v9224_v42 }
 0x164   : >> { %v7189_v23 = vadd.f32 %v6444_v23, %v682_v11   ;;  %v7192_v7 = vadd.f32 %v6380_v7, %v746_v24   ;;  %v5023_v8 = vpop.f32.mrb[10].mxu0  ;;  %v5039_v26 = vpop.f32.mrb[10].mxu1  ;;  %v9256_v11 = vmov %v9227_v43  ;;  %v9269_v24 = vmov %v9228_v56 }
 0x165   : >> { %v9232_v53 = vmov %v7183_v21  ;;  %v9233_v38 = vmov %v7186_v5  ;;  %v7195_v20 = vadd.f32 %v6432_v20, %v5023_v8   ;;  %v804_v51 = vadd.f32 %v6368_v4, %v5039_v26   ;;  %v685_v10 = vpop.f32.mrb[11].mxu0  ;;  %v749_v21 = vpop.f32.mrb[11].mxu1 }
 0x166   : >> { %v9234_v55 = vmov %v7189_v23  ;;  %v9235_v39 = vmov %v7192_v7  ;;  %v7199_v22 = vadd.f32 %v6440_v22, %v685_v10   ;;  %v802_v47 = vadd.f32 %v6376_v6, %v749_v21  }
 0x167   : >> { %v9236_v52 = vmov %v7195_v20  ;;  %v9253_v8 = vmov %v9229_v41  ;;  %v9255_v10 = vmov %v9231_v45  ;;  %v9266_v21 = vmov %v9232_v53 }
 0x168   : >> { %v9237_v54 = vmov %v7199_v22  ;;  %v9241_v22 = vld [vmem:[#allocation8_spill] sm:$0xff]  ;;  %v9271_v26 = vmov %v9230_v58  ;;  %v9282_v36 = vmov (%p7218_p4), %v804_v51  ;;  %v9286_v41 = vmov (%p7218_p4), %v9224_v42 }
 0x169   : > { %v9287_v42 = vmov (%p7218_p4), %v9231_v45  ;;  %v9289_v45 = vmov (%p7218_p4), %v9215_v59  ;;  %v9295_v59 = vmov (%p7218_p4), %v9226_v60  ;;  %v9296_v60 = vmov (%p7218_p4), %v9218_v30 }
 0x16a   : >> { %v5026_v5 = vpop.f32.mrb[12].mxu0  ;;  %v5042_v48 = vpop.f32.mrb[12].mxu1 }
 0x16b   : >> { %v7203_v17 = vadd.f32 %v6420_v17, %v5026_v5   ;;  %v807_v44 = vadd.f32 %v6356_v1, %v5042_v48   ;;  %v698_v7 = vpop.f32.mrb[13].mxu0  ;;  %v762_v23 = vpop.f32.mrb[13].mxu1  ;;  %v9250_v5 = vmov %v9233_v38  ;;  %351 = sbr.rel (!%p7218_p4) target bundleno = 87 (0x57), region = 94 }
 0x16c   : >> { %v7207_v19 = vadd.f32 %v6428_v19, %v698_v7   ;;  %v805_v35 = vadd.f32 %v6364_v3, %v762_v23   ;;  %v5027_v4 = vpop.f32.mrb[14].mxu0  ;;  %v5043_v20 = vpop.f32.mrb[14].mxu1  ;;  %v9252_v7 = vmov %v9235_v39  ;;  %v9268_v23 = vmov %v9234_v55 }
 0x16d   : >> { %v9238_v49 = vmov %v7203_v17  ;;  %v792_v27 = vadd.f32 %v9240_v32, %v5027_v4   ;;  %v808_v34 = vadd.f32 %v9241_v22, %v5043_v20   ;;  %v701_v6 = vpop.f32.mrb[15].mxu0  ;;  %v765_v2 = vpop.f32.mrb[15].mxu1  ;;  %v9243_v17 = vld [vmem:[#allocation9_spill] sm:$0xff]  ;;  %v9246_v1 = vmov %v807_v44 }
 0x16e   : >> { %v9239_v63 = vmov %v7207_v19  ;;  %v790_v61 = vadd.f32 %v9242_v29, %v701_v6   ;;  %v806_v37 = vadd.f32 %v9243_v17, %v765_v2   ;;  %v9248_v3 = vmov %v805_v35  ;;  %v9274_v29 = vld [vmem:[#allocation12_spill] sm:$0xff] }
 0x16f   : >> { %v9245_v0 = vmov %v808_v34  ;;  %v9249_v4 = vmov %v804_v51  ;;  %v9251_v6 = vmov %v802_v47  ;;  %v9261_v16 = vmov %v792_v27 }
 0x170   : >> { %v9247_v2 = vmov %v806_v37  ;;  %v9262_v17 = vmov %v9238_v49  ;;  %v9263_v18 = vmov %v790_v61  ;;  %v9264_v19 = vmov %v9239_v63 }
 0x171   : >> { %v9265_v20 = vmov %v9236_v52  ;;  %v9267_v22 = vmov %v9237_v54  ;;  %v9279_v32 = vmov (%p7218_p4), %v808_v34  ;;  %v9280_v33 = vmov (%p7218_p4), %v807_v44 }
 0x172   : > { %v9281_v34 = vmov %v806_v37  ;;  %v9283_v37 = vmov %v9233_v38  ;;  %v9284_v38 = vmov %v802_v47  ;;  %v9288_v44 = vmov %v9219_v46 }
 0x173   : > { %v9290_v46 = vmov %v9222_v50  ;;  %v9291_v47 = vmov %v9217_v62  ;;  %v9292_v48 = vmov %v792_v27  ;;  %v9293_v50 = vmov %v790_v61  ;;  %v9297_v61 = vld [vmem:[#allocation12_spill] sm:$0xff]  ;;  %v9298_v62 = vld [vmem:[#allocation14_spill] sm:$0xff] }
 0x174   : > { %v9294_v51 = vmov %v9239_v63  ;;  %v9299_v63 = vld [vmem:[#allocation13_spill] sm:$0xff] }
 0x175 PF: > { %s4563_s27 = smul.u32 576, %s6332_s1  ;;  %s809_s11 = scalar_lea.vmem %s9118_s6, %s6332_s1  ;;  %v881_v31 = vlaneseq  ;;  %vm9170_vm3 = vmmov 1   ;;  %v6608_v63 = vphi %v6838_v63, %v9299_v63   ;;  %v6604_v62 = vphi %v6836_v62, %v9298_v62   ;;  %v6600_v61 = vphi %v6834_v61, %v9297_v61   ;;  %v6596_v60 = vphi %v6832_v60, %v9296_v60   ;;  %v6592_v59 = vphi %v6830_v59, %v9295_v59   ;;  %v6588_v58 = vphi %v6828_v58, %v9230_v58   ;;  %v6584_v57 = vphi %v6826_v57, %v9223_v57   ;;  %v6580_v56 = vphi %v6824_v56, %v9228_v56   ;;  %v6576_v55 = vphi %v6822_v55, %v9234_v55   ;;  %v6572_v54 = vphi %v6820_v54, %v9237_v54   ;;  %v6568_v53 = vphi %v6818_v53, %v9232_v53   ;;  %v6564_v52 = vphi %v6816_v52, %v9236_v52   ;;  %v6560_v51 = vphi %v6814_v51, %v9294_v51   ;;  %v6556_v50 = vphi %v6812_v50, %v9293_v50   ;;  %v6552_v49 = vphi %v6810_v49, %v9238_v49   ;;  %v6548_v48 = vphi %v6808_v48, %v9292_v48   ;;  %v6544_v47 = vphi %v6806_v47, %v9291_v47   ;;  %v6540_v46 = vphi %v6804_v46, %v9290_v46   ;;  %v6536_v45 = vphi %v6802_v45, %v9289_v45   ;;  %v6532_v44 = vphi %v6800_v44, %v9288_v44   ;;  %v6528_v43 = vphi %v6798_v43, %v9227_v43   ;;  %v6524_v42 = vphi %v6796_v42, %v9287_v42   ;;  %v6520_v41 = vphi %v6794_v41, %v9286_v41   ;;  %v6516_v40 = vphi %v6792_v40, %v9285_v40   ;;  %v6512_v39 = vphi %v6790_v39, %v9235_v39   ;;  %v6508_v38 = vphi %v6788_v38, %v9284_v38   ;;  %v6504_v37 = vphi %v6786_v37, %v9283_v37   ;;  %v6500_v36 = vphi %v6784_v36, %v9282_v36   ;;  %v6496_v35 = vphi %v6782_v35, %v805_v35   ;;  %v6492_v34 = vphi %v6780_v34, %v9281_v34   ;;  %v6488_v33 = vphi %v6778_v33, %v9280_v33   ;;  %v6484_v32 = vphi %v6776_v32, %v9279_v32  }
 0x176   : > { %v7495_v1 = vld [vmem:[%s809_s11] ss:$0 sm:$0xff]  ;;  %s3795_s14 = sld [smem:[#allocation4 + %s6332_s1]] }
 0x177   : > { %s7500_s0 = scalar_lea.vmem %s9119_s7, %s4563_s27  ;;  %v817_v3 = vadd.f32 %v6608_v63, %v7495_v1  ;;  %v818_v19 = vadd.f32 %v6604_v62, %v7495_v1  ;;  %v833_v63 = vadd.f32 %v6544_v47, %v7495_v1  ;;  %v834_v16 = vadd.f32 %v6540_v46, %v7495_v1 }
 0x178   : > { %v5952_v27 = vld [vmem:[%s7500_s0 + $0x100] sm:$0xff]   ;;  %v5955_v0 = vld [vmem:[%s7500_s0 + $0x108] sm:$0xff]   ;;  %v7526_v25 = vshrl.u32 %v881_v31, 7  ;;  %v5958_v9 = vld [vmem:[%s7500_s0 + $0x110] sm:$0xff]   ;;  %v835_v24 = vadd.f32 %v6536_v45, %v7495_v1  ;;  %v848_v2 = vadd.f32 %v6484_v32, %v7495_v1  ;;  %v836_v31 = vadd.f32 %v6532_v44, %v7495_v1 }
 0x179   : > { %v7506_v30 = vld [vmem:[%s7500_s0 + $0x140] sm:$0xff]   ;;  %v7508_v13 = vmax.f32 %v817_v3, 0.0  ;;  %4588 = vmatprep.subr.bf16.mxu0 %v5952_v27  ;;  %v7511_v28 = vmax.f32 %v818_v19, 0.0  ;;  %v7518_v62 = vld [vmem:[%s7500_s0 + $0x148] sm:$0xff]   ;;  %v7533_v11 = vld [vmem:[%s7500_s0 + $0x150] sm:$0xff]   ;;  %v7536_v8 = vmax.f32 %v833_v63, 0.0  ;;  %v819_v63 = vadd.f32 %v6600_v61, %v7495_v1 }
 0x17a   : > { %v5954_v15 = vld [vmem:[%s7500_s0 + $0xc0] sm:$0xff]   ;;  %5204 = vmatprep.subr.bf16.mxu1 %v7506_v30  ;;  %v5957_v14 = vld [vmem:[%s7500_s0 + $0xc8] sm:$0xff]   ;;  %v5960_v46 = vld [vmem:[%s7500_s0 + $0xd0] sm:$0xff]   ;;  %v7540_v26 = vmax.f32 %v834_v16, 0.0  ;;  %v899_v45 = vadd.s32 136, %v7526_v25  ;;  %v7554_v23 = vmax.f32 %v835_v24, 0.0  ;;  %v820_v16 = vadd.f32 %v6596_v60, %v7495_v1 }
 0x17b   : > { %9300 = vst [vmem:[#allocation15_spill] sm:$0xff] %v7511_v28  ;;  %4589 = vmatpush3.bf16.msra.mxu0 %v5954_v15  ;;  %5212 = vmatpush3.bf16.msra.mxu1 %v7506_v30  ;;  %v7522_v12 = vpack.c.bf16 %v7511_v28, %v7508_v13  ;;  %v1330_v18 = vrot.slane %v7508_v13, 7  ;;  %v5961_v10 = vld [vmem:[%s7500_s0 + $0x118] sm:$0xff]   ;;  %v9124_v21 = vrot.slane %v7511_v28, 7  ;;  %v5964_v4 = vld [vmem:[%s7500_s0 + $0x120] sm:$0xff]   ;;  %v9122_v6 = vrot.slane %v7536_v8, 1 }
 0x17c   : > { %4590 = vmatprep.subr.bf16.mxu0 %v5955_v0  ;;  %5205 = vmatprep.subr.bf16.mxu1 %v7518_v62  ;;  %v7546_v47 = vld [vmem:[%s7500_s0 + $0x158] sm:$0xff]   ;;  %v7551_v5 = vpack.c.bf16 %v7540_v26, %v7536_v8  ;;  %v7561_v22 = vld [vmem:[%s7500_s0 + $0x160] sm:$0xff]   ;;  %v1037_v29 = vand.u32 15, %v899_v45  ;;  %v1540_v17 = vrot.slane %v7540_v26, 1  ;;  %v1541_v19 = vrot.slane %v7554_v23, 1  ;;  %v5967_v27 = vld [vmem:[%s7500_s0 + $0x128] sm:$0xff]  }
 0x17d   : > { %2250 = vmatprep.mubr.bf16.mxu0 %v7522_v12  ;;  %v5963_v7 = vld [vmem:[%s7500_s0 + $0xd8] sm:$0xff]   ;;  %v5966_v3 = vld [vmem:[%s7500_s0 + $0xe0] sm:$0xff]   ;;  %vm9160_vm0 = vcmp.lt.s32.totalorder %v7526_v25, 7  ;;  %v837_v15 = vadd.f32 %v6528_v43, %v7495_v1  ;;  %v7578_v32 = vld [vmem:[%s7500_s0 + $0x168] sm:$0xff]   ;;  %v7580_v0 = vmax.f32 %v848_v2, 0.0  ;;  %v7588_v44 = vadd.f32 %v6524_v42, %v7495_v1  ;;  %s4558_s20 = sshll.u32 %s3795_s14, 8 }
 0x17e   : > { %9301 = vst [vmem:[#allocation16_spill] sm:$0xff] %v7551_v5  ;;  %v9125_v43 = vrot.slane %v7511_v28, 1  ;;  %vm7591_vm1 = vcmp.le.s32.totalorder %v1037_v29, 14  ;;  %v7599_v61 = vadd.f32 %v6516_v40, %v7495_v1  ;;  %v5969_v24 = vld [vmem:[%s7500_s0 + $0xe8] sm:$0xff]   ;;  %v1569_v42 = vsel %vm9160_vm0, %v1540_v17, %v1541_v19  ;;  %v5970_v40 = vld [vmem:[%s7500_s0 + $0x130] sm:$0xff]   ;;  %s8980_s21 = scalar_lea.vmem %s6705_s26, %s4558_s20 }
 0x17f   : > { %4591 = vmatpush3.bf16.msra.mxu0 %v5957_v14  ;;  %5213 = vmatpush3.bf16.msra.mxu1 %v7518_v62  ;;  %v1570_v60 = vsel %vm9160_vm0, %v9122_v6, %v1540_v17  ;;  %v7620_v45 = vadd.f32 %v6592_v59, %v7495_v1  ;;  %vm9166_vm2 = vcmp.lt.s32.totalorder %v7526_v25, 1  ;;  %v7637_v2 = vadd.f32 %v6504_v37, %v7495_v1  ;;  %vm7683_vm4 = vmpackc.low %vm7591_vm1, %vm9170_vm3  ;;  %v7699_v14 = vld [vmem:[%s7500_s0 + $0x178] sm:$0xff]  }
 0x180   : > { %4592 = vmatprep.subr.bf16.mxu0 %v5958_v9  ;;  %5206 = vmatprep.subr.bf16.mxu1 %v7533_v11  ;;  %v839_v9 = vadd.f32 %v6520_v41, %v7495_v1  ;;  %v7613_v41 = vadd.f32 %v6512_v39, %v7495_v1  ;;  %v7632_v39 = vld [vmem:[%s7500_s0 + $0x170] sm:$0xff]   ;;  %v7641_v59 = vadd.f32 %v6500_v36, %v7495_v1  ;;  %v7650_v17 = vmax.f32 %v836_v31, 0.0  ;;  %v5973_v36 = vld [vmem:[%s7500_s0 + $0x138] sm:$0xff]  }
 0x181   : > { %v7648_v29 = vpack.c.bf16 %v1569_v42, %v1570_v60  ;;  %v7658_v37 = vadd.f32 %v6580_v56, %v7495_v1  ;;  %v7677_v56 = vadd.f32 %v6492_v34, %v7495_v1  ;;  %v9305_v31 = vmov 0 }
 0x182   : > { %v9306_v31 = vsel %vm7683_vm4, 4294967295, %v9305_v31  ;;  %v901_v42 = vadd.s32 152, %v7526_v25  ;;  %v7691_v34 = vadd.f32 %v6488_v33, %v7495_v1  ;;  %v7702_v60 = vmax.f32 %v819_v63, 0.0 }
 0x183   : > { %4593 = vmatpush3.bf16.msra.mxu0 %v5960_v46  ;;  %5214 = vmatpush3.bf16.msra.mxu1 %v7533_v11  ;;  %v9123_v46 = vrot.slane %v7580_v0, 7  ;;  %9304 = vst [vmem:[#allocation17_spill] sm:$0xff] %v7648_v29  ;;  %9307 = vst [vmem:[#allocation18_spill] sm:$0xff] %v9306_v31  ;;  %v7704_v6 = vmax.f32 %v820_v16, 0.0  ;;  %v7708_v33 = vadd.f32 %v6576_v55, %v7495_v1  ;;  %v5975_v16 = vld [vmem:[%s7500_s0 + $0xf8] sm:$0xff]  }
 0x184   : > { %4594 = vmatprep.subr.bf16.mxu0 %v5961_v10  ;;  %5207 = vmatprep.subr.bf16.mxu1 %v7546_v47  ;;  %v918_v10 = vand.u32 15, %v7526_v25  ;;  %9309 = vst [vmem:[#allocation20_spill] sm:$0xff] %v7702_v60  ;;  %v7721_v63 = vadd.f32 %v6572_v54, %v7495_v1  ;;  %v5978_v54 = vld [vmem:[%s7500_s0 + $0x48] sm:$0xff]  }
 0x185   : > { %5076 = vmatprep.mubr.msk.bf16.mxu1 %vm7683_vm4, %v7648_v29 }
 0x186   : > { %vm7713_vm5 = vcmp.ge.s32.totalorder %v918_v10, 1  ;;  %v7752_v10 = vmax.f32 %v839_v9, 0.0  ;;  %v7765_v9 = vmax.f32 %v7613_v41, 0.0  ;;  %v9320_v41 = vmov 0 }
 0x187   : > { %4595 = vmatpush3.bf16.msra.mxu0 %v5963_v7  ;;  %5215 = vmatpush3.bf16.msra.mxu1 %v7546_v47  ;;  %v7624_v7 = vadd.f32 %v6588_v58, %v7495_v1  ;;  %v7645_v58 = vadd.f32 %v6496_v35, %v7495_v1  ;;  %v1393_v35 = vsel %vm9166_vm2, %v1330_v18, %v9124_v21  ;;  %v1051_v21 = vand.u32 15, %v901_v42  ;;  %v5976_v42 = vld [vmem:[%s7500_s0 + $0x40] sm:$0xff]   ;;  %vm7770_vm7 = vmpackc.low %vm9170_vm3, %vm7713_vm5 }
 0x188   : > { %4596 = vmatprep.subr.bf16.mxu0 %v5964_v4  ;;  %5208 = vmatprep.subr.bf16.mxu1 %v7561_v22  ;;  %v7628_v4 = vadd.f32 %v6508_v38, %v7495_v1  ;;  %v5972_v38 = vld [vmem:[%s7500_s0 + $0xf0] sm:$0xff]   ;;  %v1545_v29 = vrot.slane %v7752_v10, 1 }
 0x189   : > { %vm7740_vm6 = vcmp.le.s32.totalorder %v1051_v21, 14  ;;  %v884_v21 = vadd.s32 16, %v7526_v25 }
 0x18a   : > { %vm7785_vm8 = vmpackc.low %vm7740_vm6, %vm9170_vm3 }
 0x18b   : > { %4597 = vmatpush3.bf16.msra.mxu0 %v5966_v3  ;;  %5216 = vmatpush3.bf16.msra.mxu1 %v7561_v22  ;;  %v7654_v3 = vadd.f32 %v6584_v57, %v7495_v1  ;;  %v1394_v57 = vsel %vm9166_vm2, %v9123_v46, %v1330_v18  ;;  %v1542_v18 = vrot.slane %v7650_v17, 1  ;;  %v9321_v41 = vsel %vm7785_vm8, 4294967295, %v9320_v41 }
 0x18c   : > { %4598 = vmatprep.subr.bf16.mxu0 %v5967_v27  ;;  %5209 = vmatprep.subr.bf16.mxu1 %v7578_v32  ;;  %v7673_v27 = vmax.f32 %v837_v15, 0.0  ;;  %v7695_v15 = vpack.c.bf16 %v7650_v17, %v7554_v23  ;;  %v7717_v46 = vpack.c.bf16 %v1393_v35, %v1394_v57  ;;  %v9312_v35 = vrot.slane %v7508_v13, 1  ;;  %9322 = vst [vmem:[#allocation23_spill] sm:$0xff] %v9321_v41 }
 0x18d   : > { %v1568_v20 = vsel %vm9160_vm0, %v1541_v19, %v1542_v18  ;;  %v7747_v19 = vpack.c.bf16 %v7704_v6, %v7702_v60  ;;  %v9344_v41 = vrot.slane %v7704_v6, 7 }
 0x18e   : > { %9308 = vst [vmem:[#allocation19_spill] sm:$0xff] %v7695_v15  ;;  %v7737_v57 = vsel %vm9160_vm0, %v9312_v35, %v9125_v43  ;;  %v1332_v35 = vrot.slane %v7702_v60, 7  ;;  %v5977_v43 = vld [vmem:[%s7500_s0] sm:$0xff]   ;;  %v9319_v60 = vrot.slane %v7704_v6, 7 }
 0x18f   : > { %4599 = vmatpush3.bf16.msra.mxu0 %v5969_v24  ;;  %5217 = vmatpush3.bf16.msra.mxu1 %v7578_v32  ;;  %v1543_v24 = vrot.slane %v7673_v27, 1  ;;  %9313 = vst [vmem:[#allocation21_spill] sm:$0xff] %v7737_v57  ;;  %v932_v57 = vand.u32 15, %v884_v21  ;;  %v7886_v21 = vmax.f32 %v7641_v59, 0.0 }
 0x190   : > { %4600 = vmatprep.subr.bf16.mxu0 %v5970_v40  ;;  %5210 = vmatprep.subr.bf16.mxu1 %v7632_v39 }
 0x191   : > { %v1567_v55 = vsel %vm9160_vm0, %v1542_v18, %v1543_v24  ;;  %v7750_v18 = vmax.f32 %v7588_v44, 0.0  ;;  %v7762_v44 = vmax.f32 %v7599_v61, 0.0  ;;  %v1391_v61 = vsel %vm9166_vm2, %v1332_v35, %v9319_v60 }
 0x192   : > { %v7774_v15 = vpack.c.bf16 %v1567_v55, %v1568_v20  ;;  %v9323_v55 = vrot.slane %v7511_v28, 7  ;;  %vm7802_vm10 = vcmp.ge.s32.totalorder %v932_v57, 1  ;;  %v1547_v28 = vrot.slane %v7765_v9, 1 }
 0x193   : > { %4601 = vmatpush3.bf16.msra.mxu0 %v5972_v38  ;;  %5218 = vmatpush3.bf16.msra.mxu1 %v7632_v39  ;;  %v903_v38 = vadd.s32 168, %v7526_v25  ;;  %v1544_v31 = vrot.slane %v7750_v18, 1  ;;  %v9329_v57 = vmov 0  ;;  %vm7869_vm13 = vmpackc.low %vm9170_vm3, %vm7802_vm10 }
 0x194   : > { %4602 = vmatprep.subr.bf16.mxu0 %v5973_v36  ;;  %5211 = vmatprep.subr.bf16.mxu1 %v7699_v14  ;;  %9318 = vst [vmem:[#allocation22_spill] sm:$0xff] %v7774_v15  ;;  %v1392_v60 = vsel %vm9166_vm2, %v9323_v55, %v1332_v35  ;;  %v7810_v35 = vpack.c.bf16 %v7750_v18, %v7673_v27  ;;  %v7834_v55 = vmax.f32 %v7624_v7, 0.0  ;;  %v907_v7 = vadd.s32 200, %v7526_v25 }
 0x195   : > { %v1065_v5 = vand.u32 15, %v903_v38  ;;  %v1565_v20 = vsel %vm9160_vm0, %v1544_v31, %v1545_v29  ;;  %v1566_v40 = vsel %vm9160_vm0, %v1543_v24, %v1544_v31  ;;  %v1546_v31 = vrot.slane %v7762_v44, 1 }
 0x196   : > { %v7800_v38 = vpack.c.bf16 %v1565_v20, %v1566_v40  ;;  %9327 = vst [vmem:[#allocation25_spill] sm:$0xff] %v7810_v35  ;;  %v7831_v40 = vmax.f32 %v7620_v45, 0.0  ;;  %v7848_v45 = vmax.f32 %v7637_v2, 0.0  ;;  %v5981_v2 = vld [vmem:[%s7500_s0 + $0x10] sm:$0xff]  }
 0x197   : > { %4603 = vmatpush3.bf16.msra.mxu0 %v5975_v16  ;;  %5219 = vmatpush3.bf16.msra.mxu1 %v7699_v14  ;;  %v905_v16 = vadd.s32 184, %v7526_v25  ;;  %vm1512_vm9 = vcmp.le.s32.totalorder %v1065_v5, 14  ;;  %v5979_v5 = vld [vmem:[%s7500_s0 + $0x8] sm:$0xff]   ;;  %v1564_v20 = vsel %vm9160_vm0, %v1545_v29, %v1546_v31  ;;  %v1563_v29 = vsel %vm9160_vm0, %v1546_v31, %v1547_v28 }
 0x198   : > { %5044 = vmatprep.subr.bf16.mxu0 %v7506_v30  ;;  %4724 = vmatprep.subr.bf16.mxu1 %v5976_v42  ;;  %9324 = vst [vmem:[#allocation24_spill] sm:$0xff] %v7800_v38  ;;  %v7814_v42 = vpack.c.bf16 %v7762_v44, %v7752_v10  ;;  %vm7824_vm11 = vmpackc.low %vm1512_vm9, %vm9170_vm3  ;;  %v1093_v31 = vand.u32 15, %v907_v7  ;;  %v1334_v35 = vrot.slane %v7831_v40, 7 }
 0x199   : > { %v1079_v24 = vand.u32 15, %v905_v16  ;;  %v9330_v57 = vsel %vm7824_vm11, 4294967295, %v9329_v57  ;;  %9332 = vst [vmem:[#allocation28_spill] sm:$0xff] %v7831_v40  ;;  %v7837_v16 = vmax.f32 %v7628_v4, 0.0  ;;  %v7852_v4 = vpack.c.bf16 %v1391_v61, %v1392_v60  ;;  %v5982_v60 = vld [vmem:[%s7500_s0 + $0x58] sm:$0xff]   ;;  %v6021_v61 = vld [vmem:[%s7500_s0 + $0x228] sm:$0xff]  }
 0x19a   : > { %9328 = vst [vmem:[#allocation26_spill] sm:$0xff] %v7814_v42  ;;  %4187 = vmatmul.mubr.msk.bf16.vlgmr.msra.gmra.mrb[0].mxu0 %vm7770_vm7, %v7717_v46  ;;  %5077 = vmatmul.mubr.msk.bf16.vlgmr.msra.gmra.mrb[0].mxu1 %vm7785_vm8, %v7774_v15  ;;  %9331 = vst [vmem:[#allocation27_spill] sm:$0xff] %v9330_v57  ;;  %v5980_v15 = vld [vmem:[%s7500_s0 + $0x50] sm:$0xff]   ;;  %v1549_v42 = vrot.slane %v7848_v45, 1  ;;  %vm1516_vm15 = vcmp.le.s32.totalorder %v1093_v31, 14  ;;  %v7909_v57 = vmax.f32 %v7645_v58, 0.0 }
 0x19b   : > { %5045 = vmatpush3.bf16.msra.mxu0 %v7506_v30  ;;  %4725 = vmatpush3.bf16.msra.mxu1 %v5977_v43  ;;  %vm7840_vm12 = vcmp.le.s32.totalorder %v1079_v24, 14  ;;  %v7854_v30 = vpack.c.bf16 %v1563_v29, %v1564_v20  ;;  %v9144_v43 = vrot.slane %v7831_v40, 1  ;;  %v1548_v24 = vrot.slane %v7837_v16, 1  ;;  %vm7914_vm1 = vmpackc.low %vm1516_vm15, %vm9170_vm3 }
 0x19c   : > { %4726 = vmatprep.subr.bf16.mxu1 %v5978_v54  ;;  %2258 = vmatprep.mubr.bf16.mxu0 %v7747_v19  ;;  %v886_v54 = vadd.s32 32, %v7526_v25  ;;  %v9338_v20 = vrot.slane %v7704_v6, 1  ;;  %vm7891_vm14 = vmpackc.low %vm7840_vm12, %vm9170_vm3  ;;  %v909_v31 = vadd.s32 216, %v7526_v25  ;;  %v1550_v58 = vrot.slane %v7886_v21, 1 }
 0x19d   : > { %9335 = vst [vmem:[#allocation29_spill] sm:$0xff] %v7854_v30  ;;  %5080 = vmatprep.mubr.msk.bf16.mxu1 %vm7824_vm11, %v7800_v38  ;;  %5046 = vmatprep.subr.bf16.mxu0 %v7518_v62  ;;  %v1562_v7 = vsel %vm9160_vm0, %v1547_v28, %v1548_v24  ;;  %v9339_v38 = vmov 0  ;;  %v1561_v28 = vsel %vm9160_vm0, %v1548_v24, %v1549_v42  ;;  %v9345_v24 = vmov 0 }
 0x19e   : > { %v7880_v29 = vsel %vm9160_vm0, %v9338_v20, %v9144_v43  ;;  %v9340_v38 = vsel %vm7891_vm14, 4294967295, %v9339_v38  ;;  %v7897_v20 = vpack.c.bf16 %v7834_v55, %v7831_v40  ;;  %v946_v43 = vand.u32 15, %v886_v54 }
 0x19f   : > { %4727 = vmatpush3.bf16.msra.mxu1 %v5979_v5  ;;  %9341 = vst [vmem:[#allocation30_spill] sm:$0xff] %v9340_v38  ;;  %5047 = vmatpush3.bf16.msra.mxu0 %v7518_v62  ;;  %v7902_v59 = vpack.c.bf16 %v1561_v28, %v1562_v7  ;;  %v1390_v5 = vsel %vm9166_vm2, %v9344_v41, %v1334_v35  ;;  %v9346_v24 = vsel %vm7914_vm1, 4294967295, %v9345_v24  ;;  %v7928_v7 = vmax.f32 %v7654_v3, 0.0  ;;  %v5983_v3 = vld [vmem:[%s7500_s0 + $0x18] sm:$0xff]  }
 0x1a0   : > { %9342 = vst [vmem:[#allocation31_spill] sm:$0xff] %v7897_v20  ;;  %4728 = vmatprep.subr.bf16.mxu1 %v5980_v15  ;;  %5048 = vmatprep.subr.bf16.mxu0 %v7533_v11  ;;  %9347 = vst [vmem:[#allocation33_spill] sm:$0xff] %v9346_v24  ;;  %vm7918_vm5 = vcmp.ge.s32.totalorder %v946_v43, 1  ;;  %v9350_v15 = vrot.slane %v7834_v55, 7  ;;  %v1107_v43 = vand.u32 15, %v909_v31  ;;  %v1551_v28 = vrot.slane %v7909_v57, 1 }
 0x1a1   : > { %9343 = vst [vmem:[#allocation32_spill] sm:$0xff] %v7902_v59  ;;  %v7938_v41 = vmax.f32 %v7658_v37, 0.0  ;;  %v7948_v38 = vmax.f32 %v7691_v34, 0.0  ;;  %v911_v31 = vadd.s32 232, %v7526_v25  ;;  %v5984_v34 = vld [vmem:[%s7500_s0 + $0x60] sm:$0xff]   ;;  %vm7972_vm9 = vmpackc.low %vm9170_vm3, %vm7918_vm5 }
 0x1a2   : > { %v1389_v54 = vsel %vm9166_vm2, %v1334_v35, %v9350_v15  ;;  %4190 = vmatmul.mubr.msk.bf16.gmra.mrb[4].mxu0 %vm7869_vm13, %v7852_v4  ;;  %5081 = vmatmul.mubr.msk.bf16.gmra.mrb[4].mxu1 %vm7891_vm14, %v7854_v30  ;;  %v7941_v35 = vmax.f32 %v7677_v56, 0.0  ;;  %v1560_v15 = vsel %vm9160_vm0, %v1549_v42, %v1550_v58  ;;  %v888_v30 = vadd.s32 48, %v7526_v25 }
 0x1a3   : > { %4729 = vmatpush3.bf16.msra.mxu1 %v5981_v2  ;;  %2266 = vmatprep.mubr.bf16.mxu0 %v7897_v20  ;;  %v7955_v37 = vpack.c.bf16 %v1389_v54, %v1390_v5  ;;  %vm7957_vm6 = vcmp.le.s32.totalorder %v1107_v43, 14  ;;  %v1559_v42 = vsel %vm9160_vm0, %v1550_v58, %v1551_v28  ;;  %v1553_v40 = vrot.slane %v7948_v38, 1  ;;  %v6023_v5 = vld [vmem:[%s7500_s0 + $0x238] sm:$0xff]  }
 0x1a4   : > { %4730 = vmatprep.subr.bf16.mxu1 %v5982_v60  ;;  %5084 = vmatprep.mubr.msk.bf16.mxu1 %vm7914_vm1, %v7902_v59  ;;  %v1552_v2 = vrot.slane %v7941_v35, 1  ;;  %v7965_v20 = vpack.c.bf16 %v1559_v42, %v1560_v15  ;;  %v1121_v60 = vand.u32 15, %v911_v31  ;;  %v960_v24 = vand.u32 15, %v888_v30  ;;  %vm7985_vm10 = vmpackc.low %vm7957_vm6, %vm9170_vm3  ;;  %v5985_v30 = vld [vmem:[%s7500_s0 + $0x20] sm:$0xff]  }
 0x1a5   : > { %5049 = vmatpush3.bf16.msra.mxu0 %v7533_v11  ;;  %v1336_v58 = vrot.slane %v7928_v7, 7  ;;  %v1337_v43 = vrot.slane %v7938_v41, 7  ;;  %v913_v15 = vadd.s32 248, %v7526_v25  ;;  %v9356_v11 = vmov 0 }
 0x1a6   : > { %9353 = vst [vmem:[#allocation34_spill] sm:$0xff] %v7965_v20  ;;  %v1558_v54 = vsel %vm9160_vm0, %v1551_v28, %v1552_v2  ;;  %5050 = vmatprep.subr.bf16.mxu0 %v7546_v47  ;;  %v9357_v11 = vsel %vm7985_vm10, 4294967295, %v9356_v11  ;;  %v7992_v62 = vpack.c.bf16 %v7938_v41, %v7928_v7  ;;  %vm1520_vm12 = vcmp.le.s32.totalorder %v1121_v60, 14 }
 0x1a7   : > { %4731 = vmatpush3.bf16.msra.mxu1 %v5983_v3  ;;  %9358 = vst [vmem:[#allocation35_spill] sm:$0xff] %v9357_v11  ;;  %v1557_v28 = vsel %vm9160_vm0, %v1552_v2, %v1553_v40  ;;  %v1554_v31 = vrot.slane %v7580_v0, 1  ;;  %v5986_v3 = vld [vmem:[%s7500_s0 + $0x68] sm:$0xff]   ;;  %v1135_v56 = vand.u32 15, %v913_v15  ;;  %vm8001_vm15 = vmpackc.low %vm1520_vm12, %vm9170_vm3  ;;  %v9359_v59 = vmov 0 }
 0x1a8   : > { %4732 = vmatprep.subr.bf16.mxu1 %v5984_v34  ;;  %v7998_v42 = vpack.c.bf16 %v1557_v28, %v1558_v54  ;;  %v9360_v59 = vsel %vm8001_vm15, 4294967295, %v9359_v59  ;;  %vm8012_vm5 = vcmp.ge.s32.totalorder %v960_v24, 1  ;;  %v1387_v2 = vsel %vm9166_vm2, %v1336_v58, %v1337_v43  ;;  %v5987_v54 = vld [vmem:[%s7500_s0 + $0x28] sm:$0xff]  }
 0x1a9   : > { %9361 = vst [vmem:[#allocation36_spill] sm:$0xff] %v9360_v59  ;;  %5051 = vmatpush3.bf16.msra.mxu0 %v7546_v47  ;;  %v9364_v60 = vrot.slane %v7834_v55, 7  ;;  %v1556_v15 = vsel %vm9160_vm0, %v1553_v40, %v1554_v31  ;;  %v9365_v24 = vrot.slane %v7508_v13, 1  ;;  %v8031_v11 = vmax.f32 %v7708_v33, 0.0  ;;  %vm8047_vm12 = vmpackc.low %vm9170_vm3, %vm8012_vm5  ;;  %v9461_v33 = vld [vmem:[#allocation18_spill] sm:$0xff] }
 0x1aa   : > { %4193 = vmatmul.mubr.msk.bf16.gmra.mrb[8].mxu0 %vm7972_vm9, %v7955_v37  ;;  %5085 = vmatmul.mubr.msk.bf16.gmra.mrb[8].mxu1 %vm7985_vm10, %v7965_v20  ;;  %v8034_v20 = vmax.f32 %v7721_v63, 0.0  ;;  %vm1522_vm6 = vcmp.le.s32.totalorder %v1135_v56, 14  ;;  %v890_v40 = vadd.s32 64, %v7526_v25  ;;  %v832_v13 = vadd.f32 %v6548_v48, %v7495_v1 }
 0x1ab   : > { %v1388_v47 = vsel %vm9166_vm2, %v9364_v60, %v1336_v58  ;;  %4733 = vmatpush3.bf16.msra.mxu1 %v5985_v30  ;;  %2274 = vmatprep.mubr.bf16.mxu0 %v7992_v62  ;;  %v1587_v28 = vsel %vm9160_vm0, %v1554_v31, %v9365_v24  ;;  %v5988_v58 = vld [vmem:[%s7500_s0 + $0x70] sm:$0xff]   ;;  %vm8060_vm0 = vmpackc.low %vm1522_vm6, %vm9170_vm3  ;;  %v9369_v48 = vmov 0  ;;  %v1338_v34 = vrot.slane %v8031_v11, 7 }
 0x1ac   : > { %4734 = vmatprep.subr.bf16.mxu1 %v5986_v3  ;;  %5088 = vmatprep.mubr.msk.bf16.mxu1 %vm8001_vm15, %v7998_v42  ;;  %v8051_v63 = vpack.c.bf16 %v1387_v2, %v1388_v47  ;;  %v8053_v30 = vpack.c.bf16 %v1587_v28, %v1556_v15  ;;  %v5989_v31 = vld [vmem:[%s7500_s0 + $0x30] sm:$0xff]   ;;  %v827_v3 = vadd.f32 %v6568_v53, %v7495_v1  ;;  %v9370_v48 = vsel %vm8060_vm0, 4294967295, %v9369_v48 }
 0x1ad   : > { %5052 = vmatprep.subr.bf16.mxu0 %v7561_v22  ;;  %9371 = vst [vmem:[#allocation38_spill] sm:$0xff] %v9370_v48  ;;  %v8066_v56 = vpack.c.bf16 %v8034_v20, %v8031_v11  ;;  %v1339_v2 = vrot.slane %v8034_v20, 7  ;;  %v828_v53 = vadd.f32 %v6564_v52, %v7495_v1  ;;  %v974_v60 = vand.u32 15, %v890_v40  ;;  %v5991_v52 = vld [vmem:[%s7500_s0 + $0x38] sm:$0xff]  }
 0x1ae   : > { %9368 = vst [vmem:[#allocation37_spill] sm:$0xff] %v8053_v30  ;;  %5053 = vmatpush3.bf16.msra.mxu0 %v7561_v22  ;;  %v5990_v22 = vld [vmem:[%s7500_s0 + $0x78] sm:$0xff]   ;;  %v892_v47 = vadd.s32 80, %v7526_v25  ;;  %v8083_v15 = vmax.f32 %v827_v3, 0.0  ;;  %v1386_v28 = vsel %vm9166_vm2, %v1337_v43, %v1338_v34  ;;  %v9187_v40 = vmov 0.0|0.0  }
 0x1af   : > { %4735 = vmatpush3.bf16.msra.mxu1 %v5987_v54  ;;  %5054 = vmatprep.subr.bf16.mxu0 %v7578_v32  ;;  %v8075_v54 = vmax.f32 %v832_v13, 0.0  ;;  %v1385_v24 = vsel %vm9166_vm2, %v1338_v34, %v1339_v2  ;;  %vm8094_vm5 = vcmp.ge.s32.totalorder %v974_v60, 1  ;;  %v829_v3 = vadd.f32 %v6560_v51, %v7495_v1 }
 0x1b0   : > { %4736 = vmatprep.subr.bf16.mxu1 %v5988_v58  ;;  %v8091_v58 = vmax.f32 %v828_v53, 0.0  ;;  %v988_v59 = vand.u32 15, %v892_v47  ;;  %v830_v43 = vadd.f32 %v6556_v50, %v7495_v1  ;;  %v1347_v34 = vrot.slane %v7540_v26, 7  ;;  %vm8121_vm6 = vmpackc.low %vm9170_vm3, %vm8094_vm5  ;;  %v9468_v50 = vld [vmem:[#allocation27_spill] sm:$0xff] }
 0x1b1   : > { %v9165_v48 = vrot.slane %v8075_v54, 7  ;;  %v1348_v53 = vrot.slane %v7554_v23, 7  ;;  %v1340_v60 = vrot.slane %v8083_v15, 7  ;;  %v831_v51 = vadd.f32 %v6552_v49, %v7495_v1 }
 0x1b2   : > { %4196 = vmatmul.mubr.msk.bf16.gmra.mrb[12].mxu0 %vm8047_vm12, %v8051_v63  ;;  %5089 = vmatmul.mubr.msk.bf16.gmra.mrb[12].mxu1 %vm8060_vm0, %v8053_v30  ;;  %v1346_v30 = vrot.slane %v7536_v8, 7  ;;  %v8127_v26 = vpack.c.bf16 %v8091_v58, %v8083_v15  ;;  %v1349_v23 = vrot.slane %v7650_v17, 7  ;;  %v1350_v13 = vrot.slane %v7673_v27, 7 }
 0x1b3   : > { %4737 = vmatpush3.bf16.msra.mxu1 %v5989_v31  ;;  %2282 = vmatprep.mubr.bf16.mxu0 %v8066_v56  ;;  %v5992_v31 = vld [vmem:[%s7500_s0 + $0x80] sm:$0xff]   ;;  %vm8141_vm5 = vcmp.ge.s32.totalorder %v988_v59, 1  ;;  %v8145_v49 = vmax.f32 %v830_v43, 0.0  ;;  %v1384_v27 = vsel %vm9166_vm2, %v1339_v2, %v1340_v60  ;;  %v1352_v43 = vrot.slane %v7752_v10, 7 }
 0x1b4   : > { %4738 = vmatprep.subr.bf16.mxu1 %v5990_v22  ;;  %2716 = vmatprep.mubr.bf16.mxu1 %v9187_v40  ;;  %v8108_v22 = vpack.c.bf16 %v1385_v24, %v1386_v28  ;;  %v1378_v47 = vsel %vm9166_vm2, %v9165_v48, %v1346_v30  ;;  %v1377_v1 = vsel %vm9166_vm2, %v1346_v30, %v1347_v34  ;;  %v1351_v30 = vrot.slane %v7750_v18, 7 }
 0x1b5   : > { %5055 = vmatpush3.bf16.msra.mxu0 %v7578_v32  ;;  %v8133_v32 = vmax.f32 %v829_v3, 0.0  ;;  %v8136_v24 = vpack.c.bf16 %v1377_v1, %v1378_v47  ;;  %v1376_v28 = vsel %vm9166_vm2, %v1347_v34, %v1348_v53  ;;  %v1375_v17 = vsel %vm9166_vm2, %v1348_v53, %v1349_v23  ;;  %v5994_v34 = vld [vmem:[%s7500_s0 + $0x90] sm:$0xff]   ;;  %v5998_v1 = vld [vmem:[%s7500_s0 + $0x1c0] sm:$0xff]  }
 0x1b6   : > { %5056 = vmatprep.subr.bf16.mxu0 %v7632_v39  ;;  %v8157_v59 = vpack.c.bf16 %v1375_v17, %v1376_v28  ;;  %v1374_v3 = vsel %vm9166_vm2, %v1349_v23, %v1350_v13  ;;  %v1373_v53 = vsel %vm9166_vm2, %v1350_v13, %v1351_v30  ;;  %v1353_v2 = vrot.slane %v7762_v44, 7 }
 0x1b7   : > { %4739 = vmatpush3.bf16.msra.mxu1 %v5991_v52  ;;  %v5993_v52 = vld [vmem:[%s7500_s0 + $0x88] sm:$0xff]   ;;  %v8173_v47 = vpack.c.bf16 %v7837_v16, %v7765_v9  ;;  %v894_v10 = vadd.s32 96, %v7526_v25  ;;  %v8179_v23 = vpack.c.bf16 %v1373_v53, %v1374_v3  ;;  %v1343_v28 = vrot.slane %v8145_v49, 7 }
 0x1b8   : > { %5092 = vmatprep.subr.bf16.mxu1 %v5992_v31  ;;  %v1371_v44 = vsel %vm9166_vm2, %v1352_v43, %v1353_v2  ;;  %v1354_v13 = vrot.slane %v7765_v9, 7  ;;  %v1355_v17 = vrot.slane %v7837_v16, 7  ;;  %v8193_v3 = vpack.c.bf16 %v8145_v49, %v8133_v32 }
 0x1b9   : > { %5057 = vmatpush3.bf16.msra.mxu0 %v7632_v39  ;;  %v9378_v39 = vrot.slane %v8091_v58, 7  ;;  %9379 = vst [vmem:[#allocation39_spill] sm:$0xff] %v8173_v47  ;;  %v9380_v9 = vmov 0  ;;  %vm9382_vm0 = vcmp.lt.s32.totalorder %v7526_v25, 1  ;;  %v8215_v53 = vmax.f32 %v831_v51, 0.0 }
 0x1ba   : > { %4199 = vmatmul.mubr.msk.bf16.gmra.mrb[16].mxu0 %vm8121_vm6, %v8108_v22  ;;  %2717 = vmatmul.mubr.bf16.vlgmr.msra.gmra.mrb[16].mxu1 %v9187_v40  ;;  %v1369_v16 = vsel %vm9382_vm0, %v1354_v13, %v1355_v17  ;;  %vm9383_vm15 = vmmov %vm9382_vm0  ;;  %v1358_v51 = vrot.slane %v7909_v57, 7  ;;  %v1360_v36 = vrot.slane %v7948_v38, 7  ;;  %vm9398_vm10 = vmmov 1   ;;  %v6001_v40 = vld [vmem:[%s7500_s0 + $0x1c8] sm:$0xff]  }
 0x1bb   : > { %5093 = vmatpush3.bf16.msra.mxu1 %v5992_v31  ;;  %2290 = vmatprep.mubr.bf16.mxu0 %v8127_v26  ;;  %v1383_v18 = vsel %vm9166_vm2, %v1340_v60, %v9378_v39  ;;  %v1342_v31 = vrot.slane %v8133_v32, 7  ;;  %v1372_v60 = vsel %vm9166_vm2, %v1351_v30, %v1352_v43  ;;  %v8199_v30 = vpack.c.bf16 %v7886_v21, %v7848_v45  ;;  %vm8205_vm2 = vmpackc.low %vm9170_vm3, %vm8141_vm5 }
 0x1bc   : > { %2724 = vmatprep.mubr.bf16.mxu1 %v7522_v12  ;;  %5094 = vmatprep.subr.bf16.mxu1 %v5993_v52  ;;  %v8189_v12 = vpack.c.bf16 %v1383_v18, %v1384_v27  ;;  %v8195_v39 = vpack.c.bf16 %v1371_v44, %v1372_v60  ;;  %v9381_v9 = vsel %vm8205_vm2, 4294967295, %v9380_v9  ;;  %v1370_v27 = vsel %vm9383_vm15, %v1353_v2, %v1354_v13  ;;  %v5995_v60 = vld [vmem:[%s7500_s0 + $0x98] sm:$0xff]   ;;  %vm9384_vm15 = vmmov %vm9382_vm0 }
 0x1bd   : > { %5058 = vmatprep.subr.bf16.mxu0 %v7699_v14  ;;  %v1356_v43 = vrot.slane %v7848_v45, 7  ;;  %v1357_v18 = vrot.slane %v7886_v21, 7  ;;  %v8217_v48 = vpack.c.bf16 %v1369_v16, %v1370_v27  ;;  %v1381_v2 = vsel %vm9382_vm0, %v1342_v31, %v1343_v28  ;;  %vm9385_vm5 = vmmov %vm9382_vm0 }
 0x1be   : > { %5059 = vmatpush3.bf16.msra.mxu0 %v7699_v14  ;;  %v1002_v14 = vand.u32 15, %v894_v10  ;;  %v1359_v13 = vrot.slane %v7941_v35, 7 }
 0x1bf   : > { %5095 = vmatpush3.bf16.msra.mxu1 %v5993_v52  ;;  %4860 = vmatprep.subr.bf16.mxu0 %v5998_v1  ;;  %v8221_v52 = vpack.c.bf16 %v7941_v35, %v7909_v57  ;;  %v1367_v45 = vsel %vm9384_vm15, %v1356_v43, %v1357_v18  ;;  %v1368_v21 = vsel %vm9385_vm5, %v1355_v17, %v1356_v43  ;;  %v9386_v1 = vrot.slane %v8091_v58, 7  ;;  %vm9389_vm5 = vmmov %vm9382_vm0  ;;  %v9390_v17 = vld [vmem:[#allocation20_spill] sm:$0xff]  ;;  %v5996_v43 = vld [vmem:[%s7500_s0 + $0xa0] sm:$0xff]  }
 0x1c0   : > { %5096 = vmatprep.subr.bf16.mxu1 %v5994_v34  ;;  %v8243_v44 = vpack.c.bf16 %v1367_v45, %v1368_v21  ;;  %v8248_v57 = vpack.c.bf16 %v7580_v0, %v7948_v38  ;;  %vm1310_vm15 = vcmp.ge.s32.totalorder %v1002_v14, 1  ;;  %v1365_v35 = vsel %vm9389_vm5, %v1358_v51, %v1359_v13 }
 0x1c1   : > { %v1382_v10 = vsel %vm9382_vm0, %v9386_v1, %v1342_v31  ;;  %v896_v31 = vadd.s32 112, %v7526_v25  ;;  %v1525_v16 = vrot.slane %v9390_v17, 1  ;;  %v1344_v14 = vrot.slane %v8215_v53, 7  ;;  %vm8280_vm1 = vmpackc.low %vm9398_vm10, %vm1310_vm15 }
 0x1c2   : > { %4202 = vmatmul.mubr.msk.bf16.gmra.mrb[20].mxu0 %vm8205_vm2, %v8189_v12  ;;  %4307 = vmatmul.mubr.msk.bf16.gmra.mrb[20].mxu1 %vm7770_vm7, %v7717_v46  ;;  %9387 = vst [vmem:[#allocation40_spill] sm:$0xff] %v8248_v57  ;;  %vm9388_vm7 = vmmov %vm9382_vm0  ;;  %v8259_v27 = vpack.c.bf16 %v1381_v2, %v1382_v10  ;;  %v9393_v21 = vrot.slane %v7704_v6, 1  ;;  %vm9394_vm5 = vcmp.lt.s32.totalorder %v7526_v25, 7  ;;  %v9402_v6 = vld [vmem:[#allocation21_spill] sm:$0xff] }
 0x1c3   : > { %2298 = vmatprep.mubr.bf16.mxu0 %v8193_v3  ;;  %2732 = vmatprep.mubr.bf16.mxu1 %v7747_v19  ;;  %v1366_v46 = vsel %vm9388_vm7, %v1357_v18, %v1358_v51  ;;  %v9391_v18 = vrot.slane %v7580_v0, 7  ;;  %vm9392_vm7 = vmmov %vm9382_vm0  ;;  %v9395_v51 = vld [vmem:[#allocation15_spill] sm:$0xff]  ;;  %v9399_v0 = vmov 0 }
 0x1c4   : > { %5097 = vmatpush3.bf16.msra.mxu1 %v5994_v34  ;;  %v8262_v45 = vpack.c.bf16 %v1365_v35, %v1366_v46  ;;  %v1364_v34 = vsel %vm9392_vm7, %v1359_v13, %v1360_v36  ;;  %v1584_v2 = vsel %vm9394_vm5, %v1525_v16, %v9393_v21  ;;  %v9396_v1 = vrot.slane %v9395_v51, 1  ;;  %vm9397_vm3 = vmmov %vm9394_vm5 }
 0x1c5   : > { %5098 = vmatprep.subr.bf16.mxu1 %v5995_v60  ;;  %v1363_v38 = vsel %vm9382_vm0, %v1360_v36, %v9391_v18  ;;  %v9400_v0 = vsel %vm8280_vm1, 4294967295, %v9399_v0  ;;  %v8286_v46 = vpack.c.bf16 %v8075_v54, %v8215_v53  ;;  %v1016_v35 = vand.u32 15, %v896_v31  ;;  %v5997_v18 = vld [vmem:[%s7500_s0 + $0xa8] sm:$0xff]   ;;  %vm9406_vm15 = vmmov %vm9394_vm5  ;;  %v9407_v31 = vld [vmem:[#allocation31_spill] sm:$0xff] }
 0x1c6   : > { %v1585_v10 = vsel %vm9397_vm3, %v9396_v1, %v1525_v16  ;;  %v8288_v13 = vpack.c.bf16 %v1363_v38, %v1364_v34  ;;  %v8294_v17 = vpack.c.bf16 %v7880_v29, %v1584_v2  ;;  %v1528_v16 = vrot.slane %v7834_v55, 1  ;;  %vm9403_vm3 = vmmov %vm9382_vm0  ;;  %v9404_v29 = vld [vmem:[#allocation28_spill] sm:$0xff] }
 0x1c7   : > { %v8291_v36 = vpack.c.bf16 %v1585_v10, %v9402_v6  ;;  %v1529_v21 = vrot.slane %v7928_v7, 1  ;;  %v1530_v51 = vrot.slane %v7938_v41, 1  ;;  %v1380_v55 = vsel %vm9403_vm3, %v1343_v28, %v1344_v14  ;;  %vm9409_vm7 = vmmov %vm9394_vm5 }
 0x1c8   : > { %9401 = vst [vmem:[#allocation20_spill] sm:$0xff] %v8288_v13  ;;  %5099 = vmatpush3.bf16.msra.mxu1 %v5995_v60  ;;  %v9405_v60 = vrot.slane %v9404_v29, 1  ;;  %v1531_v41 = vrot.slane %v8031_v11, 1  ;;  %v9408_v38 = vrot.slane %v8075_v54, 7  ;;  %v1532_v1 = vrot.slane %v8034_v20, 1  ;;  %v6000_v29 = vld [vmem:[%s7500_s0 + $0xb0] sm:$0xff]  }
 0x1c9   : > { %5100 = vmatprep.subr.bf16.mxu1 %v5996_v43  ;;  %v1581_v2 = vsel %vm9409_vm7, %v1528_v16, %v1529_v21  ;;  %v1580_v28 = vsel %vm9394_vm5, %v1529_v21, %v1530_v51  ;;  %vm1312_vm3 = vcmp.ge.s32.totalorder %v1016_v35, 1  ;;  %v898_v11 = vadd.s32 128, %v7526_v25 }
 0x1ca   : > { %4205 = vmatmul.mubr.msk.bf16.gmra.mrb[24].mxu0 %vm8280_vm1, %v8259_v27  ;;  %4310 = vmatmul.mubr.msk.bf16.gmra.mrb[24].mxu1 %vm7869_vm13, %v7852_v4  ;;  %v1582_v7 = vsel %vm9406_vm15, %v9405_v60, %v1528_v16  ;;  %v1379_v34 = vsel %vm9382_vm0, %v1344_v14, %v9408_v38  ;;  %vm9410_vm15 = vmmov %vm9394_vm5  ;;  %v1533_v16 = vrot.slane %v8083_v15, 1  ;;  %v1534_v35 = vrot.slane %v8091_v58, 1 }
 0x1cb   : > { %2306 = vmatprep.mubr.bf16.mxu0 %v8286_v46  ;;  %2740 = vmatprep.mubr.bf16.mxu1 %v9407_v31  ;;  %v8327_v10 = vpack.c.bf16 %v1581_v2, %v1582_v7  ;;  %v1579_v6 = vsel %vm9410_vm15, %v1530_v51, %v1531_v41  ;;  %vm9411_vm0 = vmmov %vm9394_vm5  ;;  %v8337_v20 = vpack.c.bf16 %v1379_v34, %v1380_v55  ;;  %v9412_v60 = vmov 0  ;;  %v6009_v34 = vld [vmem:[%s7500_s0 + $0xb8] sm:$0xff]  }
 0x1cc   : > { %5101 = vmatpush3.bf16.msra.mxu1 %v5996_v43  ;;  %v8332_v14 = vpack.c.bf16 %v1579_v6, %v1580_v28  ;;  %v1578_v21 = vsel %vm9411_vm0, %v1531_v41, %v1532_v1  ;;  %v1535_v43 = vrot.slane %v8133_v32, 1  ;;  %vm8342_vm7 = vmpackc.low %vm9398_vm10, %vm1312_vm3  ;;  %v1536_v15 = vrot.slane %v8145_v49, 1  ;;  %v9418_v28 = vld [vmem:[#allocation16_spill] sm:$0xff] }
 0x1cd   : > { %5102 = vmatprep.subr.bf16.mxu1 %v5997_v18  ;;  %v9413_v60 = vsel %vm8342_vm7, 4294967295, %v9412_v60  ;;  %vm9414_vm5 = vmmov %vm9411_vm0  ;;  %v1537_v7 = vrot.slane %v8215_v53, 1  ;;  %v1030_v38 = vand.u32 15, %v898_v11  ;;  %v1576_v32 = vsel %vm9411_vm0, %v1533_v16, %v1534_v35 }
 0x1ce   : > { %v1577_v51 = vsel %vm9414_vm5, %v1532_v1, %v1533_v16  ;;  %vm9415_vm15 = vmmov %vm9411_vm0  ;;  %v1538_v2 = vrot.slane %v8075_v54, 1  ;;  %v900_v1 = vadd.s32 144, %v7526_v25  ;;  %v9419_v11 = vrot.slane %v7536_v8, 1  ;;  %v8384_v54 = vld [vmem:[%s7500_s0 + $0x200] sm:$0xff]  }
 0x1cf   : > { %v8350_v55 = vpack.c.bf16 %v1577_v51, %v1578_v21  ;;  %v1575_v58 = vsel %vm9415_vm15, %v1534_v35, %v1535_v43  ;;  %vm9416_vm3 = vmmov %vm9411_vm0  ;;  %vm1314_vm15 = vcmp.ge.s32.totalorder %v1030_v38, 1  ;;  %v9421_v35 = vmov 0  ;;  %v9423_v8 = vld [vmem:[#allocation19_spill] sm:$0xff] }
 0x1d0   : > { %5103 = vmatpush3.bf16.msra.mxu1 %v5997_v18  ;;  %v8356_v41 = vpack.c.bf16 %v1575_v58, %v1576_v32  ;;  %v1573_v49 = vsel %vm9416_vm3, %v1536_v15, %v1537_v7  ;;  %vm9417_vm5 = vmmov %vm9411_vm0  ;;  %v1571_v6 = vsel %vm9411_vm0, %v1538_v2, %v9419_v11  ;;  %v9424_v51 = vmov 0 }
 0x1d1   : > { %5104 = vmatprep.subr.bf16.mxu1 %v6000_v29  ;;  %v1574_v53 = vsel %vm9417_vm5, %v1535_v43, %v1536_v15  ;;  %vm9420_vm3 = vmmov %vm9411_vm0  ;;  %v1044_v43 = vand.u32 15, %v900_v1  ;;  %v904_v38 = vadd.s32 176, %v7526_v25  ;;  %v9427_v58 = vmov 0 }
 0x1d2   : > { %4208 = vmatmul.mubr.msk.bf16.gmra.mrb[28].mxu0 %vm8342_vm7, %v8337_v20  ;;  %4313 = vmatmul.mubr.msk.bf16.gmra.mrb[28].mxu1 %vm7972_vm9, %v7955_v37  ;;  %v8369_v18 = vpack.c.bf16 %v1573_v49, %v1574_v53  ;;  %v1572_v16 = vsel %vm9420_vm3, %v1537_v7, %v1538_v2  ;;  %vm8387_vm5 = vmpackc.low %vm9398_vm10, %vm1314_vm15  ;;  %v9426_v7 = vld [vmem:[#allocation25_spill] sm:$0xff]  ;;  %v906_v49 = vadd.s32 192, %v7526_v25  ;;  %v9430_v53 = vmov 0 }
 0x1d3   : > { %2314 = vmatprep.mubr.bf16.mxu0 %v9418_v28  ;;  %2748 = vmatprep.mubr.bf16.mxu1 %v7992_v62  ;;  %v8381_v21 = vpack.c.bf16 %v1571_v6, %v1572_v16  ;;  %v9422_v35 = vsel %vm8387_vm5, 4294967295, %v9421_v35  ;;  %vm1316_vm15 = vcmp.ge.s32.totalorder %v1044_v43, 1  ;;  %v1072_v32 = vand.u32 15, %v904_v38 }
 0x1d4   : > { %5105 = vmatpush3.bf16.msra.mxu1 %v6000_v29  ;;  %v902_v29 = vadd.s32 160, %v7526_v25  ;;  %vm8402_vm0 = vmpackc.low %vm9398_vm10, %vm1316_vm15  ;;  %v1086_v2 = vand.u32 15, %v906_v49  ;;  %v908_v1 = vadd.s32 208, %v7526_v25  ;;  %v9433_v11 = vmov 0 }
 0x1d5   : > { %5106 = vmatprep.subr.bf16.mxu1 %v6009_v34  ;;  %v9425_v51 = vsel %vm8402_vm0, 4294967295, %v9424_v51  ;;  %vm1320_vm14 = vcmp.ge.s32.totalorder %v1072_v32, 1  ;;  %v910_v16 = vadd.s32 224, %v7526_v25  ;;  %v883_v38 = vadd.s32 8, %v7526_v25 }
 0x1d6   : > { %v1058_v15 = vand.u32 15, %v902_v29  ;;  %vm1322_vm11 = vcmp.ge.s32.totalorder %v1086_v2, 1  ;;  %v1100_v6 = vand.u32 15, %v908_v1  ;;  %v9438_v32 = vmov 0 }
 0x1d7   : > { %v1114_v29 = vand.u32 15, %v910_v16  ;;  %v925_v2 = vand.u32 15, %v883_v38  ;;  %v885_v1 = vadd.s32 24, %v7526_v25  ;;  %v9440_v16 = vmov 0 }
 0x1d8   : > { %5107 = vmatpush3.bf16.msra.mxu1 %v6009_v34  ;;  %vm1318_vm3 = vcmp.ge.s32.totalorder %v1058_v15, 1  ;;  %v9429_v34 = vld [vmem:[#allocation26_spill] sm:$0xff]  ;;  %v912_v15 = vadd.s32 240, %v7526_v25 }
 0x1d9   : > { %5140 = vmatprep.subr.bf16.mxu1 %v8384_v54  ;;  %vm8416_vm15 = vmpackc.low %vm9398_vm10, %vm1318_vm3 }
 0x1da   : > { %4211 = vmatmul.mubr.msk.bf16.gmra.mrb[32].mxu0 %vm8387_vm5, %v8136_v24  ;;  %4316 = vmatmul.mubr.msk.bf16.gmra.mrb[32].mxu1 %vm8047_vm12, %v8051_v63  ;;  %v9428_v58 = vsel %vm8416_vm15, 4294967295, %v9427_v58  ;;  %vm8430_vm3 = vmpackc.low %vm9398_vm10, %vm1320_vm14  ;;  %v1128_v49 = vand.u32 15, %v912_v15  ;;  %v939_v15 = vand.u32 15, %v885_v1 }
 0x1db   : > { %2322 = vmatprep.mubr.bf16.mxu0 %v9423_v8  ;;  %2756 = vmatprep.mubr.bf16.mxu1 %v8066_v56  ;;  %v9431_v53 = vsel %vm8430_vm3, 4294967295, %v9430_v53  ;;  %vm8444_vm14 = vmpackc.low %vm9398_vm10, %vm1322_vm11 }
 0x1dc   : > { %9432 = vst [vmem:[#allocation15_spill] sm:$0xff] %v9431_v53  ;;  %v9434_v11 = vsel %vm8444_vm14, 4294967295, %v9433_v11  ;;  %v6004_v53 = vld [vmem:[%s7500_s0 + $0x190] sm:$0xff]  }
 0x1dd   : > { %9435 = vst [vmem:[#allocation21_spill] sm:$0xff] %v9434_v11  ;;  %v6010_v11 = vld [vmem:[%s7500_s0 + $0x1e8] sm:$0xff]  }
 0x1e2   : > { %4214 = vmatmul.mubr.msk.bf16.gmra.mrb[36].mxu0 %vm8402_vm0, %v8157_v59  ;;  %4319 = vmatmul.mubr.msk.bf16.gmra.mrb[36].mxu1 %vm8121_vm6, %v8108_v22 }
 0x1e3   : > { %2330 = vmatprep.mubr.bf16.mxu0 %v9426_v7  ;;  %2764 = vmatprep.mubr.bf16.mxu1 %v8127_v26 }
 0x1ea   : > { %4217 = vmatmul.mubr.msk.bf16.gmra.mrb[40].mxu0 %vm8416_vm15, %v8179_v23  ;;  %4322 = vmatmul.mubr.msk.bf16.gmra.mrb[40].mxu1 %vm8205_vm2, %v8189_v12 }
 0x1eb   : > { %2338 = vmatprep.mubr.bf16.mxu0 %v9429_v34  ;;  %2772 = vmatprep.mubr.bf16.mxu1 %v8193_v3 }
 0x1f2   : > { %4220 = vmatmul.mubr.msk.bf16.gmra.mrb[44].mxu0 %vm8430_vm3, %v8195_v39  ;;  %4325 = vmatmul.mubr.msk.bf16.gmra.mrb[44].mxu1 %vm8280_vm1, %v8259_v27  ;;  %vm1324_vm1 = vcmp.ge.s32.totalorder %v1100_v6, 1  ;;  %v887_v6 = vadd.s32 40, %v7526_v25 }
 0x1f3   : > { %2346 = vmatprep.mubr.bf16.mxu0 %v8173_v47  ;;  %2780 = vmatprep.mubr.bf16.mxu1 %v8286_v46  ;;  %vm8458_vm11 = vmpackc.low %vm9398_vm10, %vm1324_vm1 }
 0x1f4   : > { %v953_v38 = vand.u32 15, %v887_v6  ;;  %v5999_v6 = vld [vmem:[%s7500_s0 + $0x180] sm:$0xff]  }
 0x1fa   : > { %4223 = vmatmul.mubr.msk.bf16.gmra.mrb[48].mxu0 %vm8444_vm14, %v8217_v48  ;;  %4328 = vmatmul.mubr.msk.bf16.gmra.mrb[48].mxu1 %vm8342_vm7, %v8337_v20  ;;  %vm1326_vm7 = vcmp.ge.s32.totalorder %v1114_v29, 1  ;;  %v6019_v29 = vld [vmem:[%s7500_s0 + $0x218] sm:$0xff]  }
 0x1fb   : > { %2354 = vmatprep.mubr.bf16.mxu0 %v8199_v30  ;;  %2788 = vmatprep.mubr.bf16.mxu1 %v9418_v28  ;;  %vm8473_vm1 = vmpackc.low %vm9398_vm10, %vm1326_vm7  ;;  %vm1492_vm7 = vcmp.le.s32.totalorder %v925_v2, 14  ;;  %v891_v2 = vadd.s32 72, %v7526_v25 }
 0x1fc   : > { %v9439_v32 = vsel %vm8473_vm1, 4294967295, %v9438_v32  ;;  %vm8493_vm2 = vmpackc.low %vm1492_vm7, %vm9398_vm10  ;;  %vm1496_vm7 = vcmp.le.s32.totalorder %v953_v38, 14  ;;  %v6002_v38 = vld [vmem:[%s7500_s0 + $0x188] sm:$0xff]  }
 0x202   : > { %4226 = vmatmul.mubr.msk.bf16.gmra.mrb[52].mxu0 %vm8458_vm11, %v8243_v44  ;;  %4331 = vmatmul.mubr.msk.bf16.gmra.mrb[52].mxu1 %vm8387_vm5, %v8136_v24  ;;  %vm1328_vm5 = vcmp.ge.s32.totalorder %v1128_v49, 1  ;;  %v889_v49 = vadd.s32 56, %v7526_v25 }
 0x203   : > { %2362 = vmatprep.mubr.bf16.mxu0 %v8221_v52  ;;  %2796 = vmatprep.mubr.bf16.mxu1 %v9423_v8  ;;  %vm8488_vm8 = vmpackc.low %vm9398_vm10, %vm1328_vm5  ;;  %vm1494_vm5 = vcmp.le.s32.totalorder %v939_v15, 14  ;;  %v981_v15 = vand.u32 15, %v891_v2  ;;  %v893_v2 = vadd.s32 88, %v7526_v25 }
 0x204   : > { %v9441_v16 = vsel %vm8488_vm8, 4294967295, %v9440_v16 }
 0x205   : > { %9442 = vst [vmem:[#allocation28_spill] sm:$0xff] %v9441_v16 }
 0x20a   : > { %4229 = vmatmul.mubr.msk.bf16.gmra.mrb[56].mxu0 %vm8473_vm1, %v8262_v45  ;;  %4334 = vmatmul.mubr.msk.bf16.gmra.mrb[56].mxu1 %vm8402_vm0, %v8157_v59 }
 0x20b   : > { %2370 = vmatprep.mubr.bf16.mxu0 %v8248_v57  ;;  %2804 = vmatprep.mubr.bf16.mxu1 %v9426_v7  ;;  %v895_v57 = vadd.s32 104, %v7526_v25 }
 0x212   : > { %4232 = vmatmul.mubr.msk.bf16.gmra.mrb[60].mxu0 %vm8488_vm8, %v8288_v13  ;;  %4337 = vmatmul.mubr.msk.bf16.gmra.mrb[60].mxu1 %vm8416_vm15, %v8179_v23  ;;  %vm8510_vm8 = vmpackc.low %vm1494_vm5, %vm9398_vm10  ;;  %v967_v13 = vand.u32 15, %v889_v49  ;;  %v6003_v49 = vld [vmem:[%s7500_s0 + $0x1d0] sm:$0xff]  }
 0x213   : > { %5060 = vmatprep.mubr.msk.bf16.mxu0 %vm8493_vm2, %v8291_v36  ;;  %2812 = vmatprep.mubr.bf16.mxu1 %v9429_v34  ;;  %vm8517_vm15 = vmpackc.low %vm1496_vm7, %vm9398_vm10  ;;  %vm1500_vm7 = vcmp.le.s32.totalorder %v981_v15, 14  ;;  %v1009_v15 = vand.u32 15, %v895_v57  ;;  %v6007_v57 = vld [vmem:[%s7500_s0 + $0x1e0] sm:$0xff]  }
 0x214   : > { %vm1498_vm5 = vcmp.le.s32.totalorder %v967_v13, 14  ;;  %vm8543_vm0 = vmpackc.low %vm1500_vm7, %vm9398_vm10 }
 0x215   : > { %vm1504_vm7 = vcmp.le.s32.totalorder %v1009_v15, 14  ;;  %v6012_v15 = vld [vmem:[%s7500_s0 + $0x1f0] sm:$0xff]  }
 0x21a   : > { %5061 = vmatmul.mubr.msk.bf16.vlgmr.msra.gmra.mrb[64].mxu0 %vm8510_vm8, %v8294_v17  ;;  %4340 = vmatmul.mubr.msk.bf16.gmra.mrb[64].mxu1 %vm8430_vm3, %v8195_v39  ;;  %vm8536_vm3 = vmpackc.low %vm1498_vm5, %vm9398_vm10 }
 0x21b   : > { %4861 = vmatpush3.bf16.msra.mxu0 %v5999_v6  ;;  %5064 = vmatprep.mubr.msk.bf16.mxu0 %vm8517_vm15, %v8327_v10 }
 0x21c   : > { %4862 = vmatprep.subr.bf16.mxu0 %v6001_v40  ;;  %2820 = vmatprep.mubr.bf16.mxu1 %v8173_v47  ;;  %v6005_v40 = vld [vmem:[%s7500_s0 + $0x1d8] sm:$0xff]   ;;  %v995_v47 = vand.u32 15, %v893_v2 }
 0x21e   : > { %vm1502_vm5 = vcmp.le.s32.totalorder %v995_v47, 14 }
 0x21f   : > { %4863 = vmatpush3.bf16.msra.mxu0 %v6002_v38  ;;  %v6006_v38 = vld [vmem:[%s7500_s0 + $0x198] sm:$0xff]   ;;  %vm8561_vm4 = vmpackc.low %vm1502_vm5, %vm9398_vm10 }
 0x220   : > { %4864 = vmatprep.subr.bf16.mxu0 %v6003_v49  ;;  %v897_v49 = vadd.s32 120, %v7526_v25  ;;  %v6011_v25 = vld [vmem:[%s7500_s0 + $0x1a8] sm:$0xff]  }
 0x222   : > { %5065 = vmatmul.mubr.msk.bf16.gmra.mrb[68].mxu0 %vm8536_vm3, %v8332_v14  ;;  %4343 = vmatmul.mubr.msk.bf16.gmra.mrb[68].mxu1 %vm8444_vm14, %v8217_v48  ;;  %vm8568_vm14 = vmpackc.low %vm1504_vm7, %vm9398_vm10  ;;  %v1023_v47 = vand.u32 15, %v897_v49  ;;  %v6014_v49 = vld [vmem:[%s7500_s0 + $0x1f8] sm:$0xff]  }
 0x223   : > { %4865 = vmatpush3.bf16.msra.mxu0 %v6004_v53  ;;  %5068 = vmatprep.mubr.msk.bf16.mxu0 %vm8543_vm0, %v8350_v55  ;;  %v6008_v53 = vld [vmem:[%s7500_s0 + $0x1a0] sm:$0xff]  }
 0x224   : > { %4866 = vmatprep.subr.bf16.mxu0 %v6005_v40  ;;  %2828 = vmatprep.mubr.bf16.mxu1 %v8199_v30  ;;  %vm1506_vm5 = vcmp.le.s32.totalorder %v1023_v47, 14  ;;  %v6017_v47 = vld [vmem:[%s7500_s0 + $0x208] sm:$0xff]  }
 0x225   : > { %vm8585_vm7 = vmpackc.low %vm1506_vm5, %vm9398_vm10  ;;  %vm9469_vm10 = vnez %v9468_v50 }
 0x227   : > { %4867 = vmatpush3.bf16.msra.mxu0 %v6006_v38 }
 0x228   : > { %4868 = vmatprep.subr.bf16.mxu0 %v6007_v57  ;;  %v6013_v57 = vld [vmem:[%s7500_s0 + $0x1b0] sm:$0xff]  }
 0x22a   : > { %5069 = vmatmul.mubr.msk.bf16.gmra.mrb[72].mxu0 %vm8561_vm4, %v8356_v41  ;;  %4346 = vmatmul.mubr.msk.bf16.gmra.mrb[72].mxu1 %vm8458_vm11, %v8243_v44 }
 0x22b   : > { %4869 = vmatpush3.bf16.msra.mxu0 %v6008_v53  ;;  %5072 = vmatprep.mubr.msk.bf16.mxu0 %vm8568_vm14, %v8369_v18  ;;  %v9459_v53 = vmov 0.0|0.0  }
 0x22c   : > { %4870 = vmatprep.subr.bf16.mxu0 %v6010_v11  ;;  %2836 = vmatprep.mubr.bf16.mxu1 %v8221_v52  ;;  %v6015_v11 = vld [vmem:[%s7500_s0 + $0x1b8] sm:$0xff]  }
 0x22f   : > { %4871 = vmatpush3.bf16.msra.mxu0 %v6011_v25 }
 0x230   : > { %4872 = vmatprep.subr.bf16.mxu0 %v6012_v15 }
 0x232   : > { %5073 = vmatmul.mubr.msk.bf16.gmra.mrb[76].mxu0 %vm8585_vm7, %v8381_v21  ;;  %4349 = vmatmul.mubr.msk.bf16.gmra.mrb[76].mxu1 %vm8473_vm1, %v8262_v45 }
 0x233   : > { %4873 = vmatpush3.bf16.msra.mxu0 %v6013_v57  ;;  %5108 = vmatprep.mubr.bf16.mxu1 %v9459_v53  ;;  %v9481_v57 = vld [vmem:[#allocation36_spill] sm:$0xff] }
 0x234   : > { %4874 = vmatprep.subr.bf16.mxu0 %v6014_v49  ;;  %3473 = vmatprep.mubr.bf16.mxu0 %v7747_v19  ;;  %v6018_v19 = vld [vmem:[%s7500_s0 + $0x210] sm:$0xff]  }
 0x237   : > { %4875 = vmatpush3.bf16.msra.mxu0 %v6015_v11 }
 0x23a   : > { %5109 = vmatmul.mubr.msk.bf16.vlgmr.msra.gmra.mrb[80].mxu1 %vm8493_vm2, %v8291_v36  ;;  %4470 = vmatmul.mubr.msk.bf16.vlgmr.msra.gmra.mrb[80].mxu0 %vm7869_vm13, %v7852_v4  ;;  %v6020_v4 = vld [vmem:[%s7500_s0 + $0x220] sm:$0xff]   ;;  %vm9462_vm2 = vnez %v9461_v33  ;;  %vm9463_vm13 = vnez %v9381_v9  ;;  %v9472_v36 = vld [vmem:[#allocation30_spill] sm:$0xff]  ;;  %v9475_v9 = vld [vmem:[#allocation33_spill] sm:$0xff] }
 0x23b   : > { %5141 = vmatpush3.bf16.msra.mxu1 %v8384_v54  ;;  %5112 = vmatprep.mubr.msk.bf16.mxu1 %vm8510_vm8, %v8294_v17  ;;  %vm9476_vm5 = vnez %v9475_v9 }
 0x23c   : > { %3481 = vmatprep.mubr.bf16.mxu0 %v9407_v31  ;;  %5142 = vmatprep.subr.bf16.mxu1 %v6017_v47  ;;  %v9479_v31 = vld [vmem:[#allocation35_spill] sm:$0xff] }
 0x23d   : > { %vm9480_vm1 = vnez %v9479_v31  ;;  %v9498_v31 = vld [vmem:[#allocation38_spill] sm:$0xff] }
 0x23f   : > { %5143 = vmatpush3.bf16.msra.mxu1 %v6017_v47 }
 0x240   : > { %5144 = vmatprep.subr.bf16.mxu1 %v6018_v19 }
 0x242   : > { %5113 = vmatmul.mubr.msk.bf16.gmra.mrb[84].mxu1 %vm8517_vm15, %v8327_v10  ;;  %4473 = vmatmul.mubr.msk.bf16.gmra.mrb[84].mxu0 %vm7972_vm9, %v7955_v37  ;;  %v6022_v37 = vld [vmem:[%s7500_s0 + $0x230] sm:$0xff]  }
 0x243   : > { %5116 = vmatprep.mubr.msk.bf16.mxu1 %vm8536_vm3, %v8332_v14  ;;  %3489 = vmatprep.mubr.bf16.mxu0 %v7992_v62  ;;  %v9460_v62 = vld [vmem:[#allocation17_spill] sm:$0xff] }
 0x244   : > { %5145 = vmatpush3.bf16.msra.mxu1 %v6018_v19 }
 0x245   : > { %5146 = vmatprep.subr.bf16.mxu1 %v6019_v29 }
 0x248   : > { %5147 = vmatpush3.bf16.msra.mxu1 %v6019_v29 }
 0x249   : > { %5148 = vmatprep.subr.bf16.mxu1 %v6020_v4 }
 0x24a   : > { %5117 = vmatmul.mubr.msk.bf16.gmra.mrb[88].mxu1 %vm8543_vm0, %v8350_v55  ;;  %4476 = vmatmul.mubr.msk.bf16.gmra.mrb[88].mxu0 %vm8047_vm12, %v8051_v63  ;;  %v9464_v63 = vld [vmem:[#allocation22_spill] sm:$0xff]  ;;  %vm9470_vm12 = vnez %v9400_v0 }
 0x24b   : > { %5120 = vmatprep.mubr.msk.bf16.mxu1 %vm8561_vm4, %v8356_v41  ;;  %3497 = vmatprep.mubr.bf16.mxu0 %v8066_v56  ;;  %v9465_v56 = vld [vmem:[#allocation23_spill] sm:$0xff] }
 0x24c   : > { %5149 = vmatpush3.bf16.msra.mxu1 %v6020_v4  ;;  %vm9466_vm9 = vnez %v9465_v56 }
 0x24d   : > { %5150 = vmatprep.subr.bf16.mxu1 %v6021_v61 }
 0x250   : > { %5151 = vmatpush3.bf16.msra.mxu1 %v6021_v61 }
 0x251   : > { %5152 = vmatprep.subr.bf16.mxu1 %v6022_v37 }
 0x252   : > { %5121 = vmatmul.mubr.msk.bf16.gmra.mrb[92].mxu1 %vm8568_vm14, %v8369_v18  ;;  %4479 = vmatmul.mubr.msk.bf16.gmra.mrb[92].mxu0 %vm8121_vm6, %v8108_v22  ;;  %v9467_v22 = vld [vmem:[#allocation24_spill] sm:$0xff]  ;;  %vm9473_vm6 = vnez %v9472_v36 }
 0x253   : > { %5124 = vmatprep.mubr.msk.bf16.mxu1 %vm8585_vm7, %v8381_v21  ;;  %3505 = vmatprep.mubr.bf16.mxu0 %v8127_v26  ;;  %v9471_v26 = vld [vmem:[#allocation29_spill] sm:$0xff] }
 0x254   : > { %5153 = vmatpush3.bf16.msra.mxu1 %v6022_v37  ;;  %v9489_v37 = vld [vmem:[#allocation21_spill] sm:$0xff] }
 0x255   : > { %5154 = vmatprep.subr.bf16.mxu1 %v6023_v5 }
 0x258   : > { %5155 = vmatpush3.bf16.msra.mxu1 %v6023_v5 }
 0x25a   : > { %5125 = vmatmul.mubr.msk.bf16.gmra.mrb[0].mxu1 %vm9462_vm2, %v9460_v62  ;;  %4482 = vmatmul.mubr.msk.bf16.gmra.mrb[96].mxu0 %vm9463_vm13, %v8189_v12  ;;  %v9474_v12 = vld [vmem:[#allocation32_spill] sm:$0xff]  ;;  %vm9477_vm13 = vnez %v9413_v60 }
 0x25b   : > { %5128 = vmatprep.mubr.msk.bf16.mxu1 %vm9466_vm9, %v9464_v63  ;;  %3513 = vmatprep.mubr.bf16.mxu0 %v8193_v3  ;;  %v9478_v3 = vld [vmem:[#allocation34_spill] sm:$0xff] }
 0x262   : > { %5129 = vmatmul.mubr.msk.bf16.gmra.mrb[4].mxu1 %vm9469_vm10, %v9467_v22  ;;  %4485 = vmatmul.mubr.msk.bf16.gmra.mrb[100].mxu0 %vm9470_vm12, %v8259_v27  ;;  %vm9482_vm12 = vnez %v9481_v57 }
 0x263   : > { %5132 = vmatprep.mubr.msk.bf16.mxu1 %vm9473_vm6, %v9471_v26  ;;  %3521 = vmatprep.mubr.bf16.mxu0 %v8286_v46 }
 0x26a   : > { %5133 = vmatmul.mubr.msk.bf16.gmra.mrb[8].mxu1 %vm9476_vm5, %v9474_v12  ;;  %4488 = vmatmul.mubr.msk.bf16.gmra.mrb[104].mxu0 %vm9477_vm13, %v8337_v20  ;;  %vm9483_vm13 = vnez %v9422_v35 }
 0x26b   : > { %5136 = vmatprep.mubr.msk.bf16.mxu1 %vm9480_vm1, %v9478_v3  ;;  %3529 = vmatprep.mubr.bf16.mxu0 %v9418_v28 }
 0x26d   : > { %v4604_v27 = vpop.f32.mrb[0].mxu0 }
 0x26e   : > { %v4605_v0 = vpop.f32.mrb[1].mxu0 }
 0x26f   : > { %v8678_v54 = vadd.f32 %v4605_v0, %v4604_v27  ;;  %v4607_v25 = vpop.f32.mrb[2].mxu0 }
 0x270   : > { %v4608_v46 = vpop.f32.mrb[3].mxu0 }
 0x271   : > { %v8680_v15 = vadd.f32 %v4608_v46, %v4607_v25 }
 0x272   : > { %5137 = vmatmul.mubr.msk.bf16.gmra.mrb[12].mxu1 %vm9482_vm12, %v7998_v42  ;;  %4491 = vmatmul.mubr.msk.bf16.gmra.mrb[108].mxu0 %vm9483_vm13, %v8136_v24  ;;  %vm9484_vm12 = vnez %v9425_v51 }
 0x273   : > { %3537 = vmatprep.mubr.bf16.mxu0 %v9423_v8  ;;  %5156 = vmatprep.mubr.msk.bf16.mxu1 %vm8510_vm8, %v8294_v17  ;;  %vm9485_vm8 = vnez %v9428_v58 }
 0x275   : > { %v4610_v20 = vpop.f32.mrb[4].mxu0 }
 0x276   : > { %v4611_v60 = vpop.f32.mrb[5].mxu0 }
 0x277   : > { %v8692_v28 = vadd.f32 %v4611_v60, %v4610_v20  ;;  %v4613_v49 = vpop.f32.mrb[6].mxu0 }
 0x278   : > { %v4614_v11 = vpop.f32.mrb[7].mxu0 }
 0x279   : > { %v8694_v47 = vadd.f32 %v4614_v11, %v4613_v49 }
 0x27a   : > { %4494 = vmatmul.mubr.msk.bf16.gmra.mrb[112].mxu0 %vm9484_vm12, %v8157_v59  ;;  %5157 = vmatmul.mubr.msk.bf16.vlgmr.msra.gmra.mrb[80].mxu1 %vm8517_vm15, %v8327_v10 }
 0x27b   : > { %3545 = vmatprep.mubr.bf16.mxu0 %v9426_v7  ;;  %5160 = vmatprep.mubr.msk.bf16.mxu1 %vm8536_vm3, %v8332_v14 }
 0x27d   : > { %v4616_v24 = vpop.f32.mrb[8].mxu0 }
 0x27e   : > { %v4617_v17 = vpop.f32.mrb[9].mxu0 }
 0x27f   : > { %v8706_v35 = vadd.f32 %v4617_v17, %v4616_v24  ;;  %v4619_v8 = vpop.f32.mrb[10].mxu0 }
 0x280   : > { %v4620_v1 = vpop.f32.mrb[11].mxu0 }
 0x281   : > { %v8708_v19 = vadd.f32 %v4620_v1, %v4619_v8 }
 0x282   : > { %4497 = vmatmul.mubr.msk.bf16.gmra.mrb[116].mxu0 %vm9485_vm8, %v8179_v23  ;;  %5161 = vmatmul.mubr.msk.bf16.gmra.mrb[84].mxu1 %vm8543_vm0, %v8350_v55  ;;  %v9486_v23 = vld [vmem:[#allocation15_spill] sm:$0xff]  ;;  %vm9491_vm0 = vnez %v9439_v32 }
 0x283   : > { %3553 = vmatprep.mubr.bf16.mxu0 %v9429_v34  ;;  %5164 = vmatprep.mubr.msk.bf16.mxu1 %vm8561_vm4, %v8356_v41  ;;  %vm9487_vm15 = vnez %v9486_v23  ;;  %v9488_v55 = vld [vmem:[#allocation39_spill] sm:$0xff]  ;;  %vm9490_vm4 = vnez %v9489_v37 }
 0x285   : > { %v4622_v59 = vpop.f32.mrb[12].mxu0 }
 0x286   : > { %v4623_v10 = vpop.f32.mrb[13].mxu0 }
 0x287   : > { %v8720_v14 = vadd.f32 %v4623_v10, %v4622_v59  ;;  %v4625_v51 = vpop.f32.mrb[14].mxu0 }
 0x288   : > { %v4626_v7 = vpop.f32.mrb[15].mxu0 }
 0x289   : > { %v8722_v16 = vadd.f32 %v4626_v7, %v4625_v51 }
 0x28a   : > { %4500 = vmatmul.mubr.msk.bf16.gmra.mrb[120].mxu0 %vm9487_vm15, %v8195_v39  ;;  %5165 = vmatmul.mubr.msk.bf16.gmra.mrb[88].mxu1 %vm8568_vm14, %v8369_v18  ;;  %vm9496_vm14 = vnez %v9481_v57 }
 0x28b   : > { %3561 = vmatprep.mubr.bf16.mxu0 %v9488_v55  ;;  %5168 = vmatprep.mubr.msk.bf16.mxu1 %vm8585_vm7, %v8381_v21  ;;  %v9493_v55 = vld [vmem:[#allocation20_spill] sm:$0xff] }
 0x28d   : > { %v4628_v41 = vpop.f32.mrb[16].mxu0  ;;  %v4740_v58 = vpop.f32.mrb[16].mxu1 }
 0x28e   : > { %v4629_v34 = vpop.f32.mrb[17].mxu0  ;;  %v4741_v6 = vpop.f32.mrb[17].mxu1 }
 0x28f   : > { %v8734_v13 = vadd.f32 %v4629_v34, %v4628_v41  ;;  %v4631_v2 = vpop.f32.mrb[18].mxu0  ;;  %v8736_v29 = vadd.f32 %v4741_v6, %v4740_v58  ;;  %v4743_v39 = vpop.f32.mrb[18].mxu1  ;;  %v9494_v41 = vld [vmem:[#allocation28_spill] sm:$0xff] }
 0x290   : > { %v4632_v4 = vpop.f32.mrb[19].mxu0  ;;  %v4744_v61 = vpop.f32.mrb[19].mxu1  ;;  %vm9495_vm3 = vnez %v9494_v41 }
 0x291   : > { %v8738_v40 = vadd.f32 %v4632_v4, %v4631_v2  ;;  %v8740_v18 = vadd.f32 %v4744_v61, %v4743_v39 }
 0x292   : > { %4503 = vmatmul.mubr.msk.bf16.gmra.mrb[124].mxu0 %vm9490_vm4, %v8217_v48  ;;  %5169 = vmatmul.mubr.msk.bf16.gmra.mrb[92].mxu1 %vm9462_vm2, %v9460_v62 }
 0x293   : > { %3569 = vmatprep.mubr.bf16.mxu0 %v8199_v30  ;;  %5172 = vmatprep.mubr.msk.bf16.mxu1 %vm9466_vm9, %v9464_v63 }
 0x295   : > { %v4634_v21 = vpop.f32.mrb[20].mxu0  ;;  %v4746_v38 = vpop.f32.mrb[20].mxu1 }
 0x296   : > { %v4635_v5 = vpop.f32.mrb[21].mxu0  ;;  %v4747_v27 = vpop.f32.mrb[21].mxu1 }
 0x297   : > { %v8752_v0 = vadd.f32 %v4635_v5, %v4634_v21  ;;  %v4637_v25 = vpop.f32.mrb[22].mxu0  ;;  %v8754_v46 = vadd.f32 %v4747_v27, %v4746_v38  ;;  %v4749_v48 = vpop.f32.mrb[22].mxu1 }
 0x298   : > { %v4638_v20 = vpop.f32.mrb[23].mxu0  ;;  %v4750_v60 = vpop.f32.mrb[23].mxu1 }
 0x299   : > { %v8756_v33 = vadd.f32 %v4638_v20, %v4637_v25  ;;  %v8758_v62 = vadd.f32 %v4750_v60, %v4749_v48 }
 0x29a   : > { %4506 = vmatmul.mubr.msk.bf16.gmra.mrb[128].mxu0 %vm8458_vm11, %v8243_v44  ;;  %5173 = vmatmul.mubr.msk.bf16.gmra.mrb[0].mxu1 %vm9469_vm10, %v9467_v22  ;;  %vm9499_vm11 = vnez %v9498_v31 }
 0x29b   : > { %3577 = vmatprep.mubr.bf16.mxu0 %v8221_v52  ;;  %5176 = vmatprep.mubr.msk.bf16.mxu1 %vm9473_vm6, %v9471_v26  ;;  %v9492_v52 = vld [vmem:[#allocation40_spill] sm:$0xff] }
 0x29d   : > { %v4640_v30 = vpop.f32.mrb[24].mxu0  ;;  %v4752_v63 = vpop.f32.mrb[24].mxu1 }
 0x29e   : > { %v4641_v56 = vpop.f32.mrb[25].mxu0  ;;  %v4753_v49 = vpop.f32.mrb[25].mxu1 }
 0x29f   : > { %v8770_v11 = vadd.f32 %v4641_v56, %v4640_v30  ;;  %v4643_v24 = vpop.f32.mrb[26].mxu0  ;;  %v8772_v17 = vadd.f32 %v4753_v49, %v4752_v63  ;;  %v4755_v44 = vpop.f32.mrb[26].mxu1 }
 0x2a0   : > { %v4644_v43 = vpop.f32.mrb[27].mxu0  ;;  %v4756_v8 = vpop.f32.mrb[27].mxu1 }
 0x2a1   : > { %v8774_v50 = vadd.f32 %v4644_v43, %v4643_v24  ;;  %v8776_v22 = vadd.f32 %v4756_v8, %v4755_v44 }
 0x2a2   : > { %4509 = vmatmul.mubr.msk.bf16.gmra.mrb[132].mxu0 %vm9491_vm0, %v8262_v45  ;;  %5177 = vmatmul.mubr.msk.bf16.gmra.mrb[4].mxu1 %vm9476_vm5, %v9474_v12 }
 0x2a3   : > { %3585 = vmatprep.mubr.bf16.mxu0 %v9492_v52  ;;  %5180 = vmatprep.mubr.msk.bf16.mxu1 %vm9480_vm1, %v9478_v3  ;;  %v9497_v3 = vld [vmem:[#allocation37_spill] sm:$0xff] }
 0x2a5   : > { %v4646_v26 = vpop.f32.mrb[28].mxu0  ;;  %v4758_v36 = vpop.f32.mrb[28].mxu1 }
 0x2a6   : > { %v4647_v1 = vpop.f32.mrb[29].mxu0  ;;  %v4759_v59 = vpop.f32.mrb[29].mxu1 }
 0x2a7   : > { %v8788_v10 = vadd.f32 %v4647_v1, %v4646_v26  ;;  %v4649_v51 = vpop.f32.mrb[30].mxu0  ;;  %v8790_v7 = vadd.f32 %v4759_v59, %v4758_v36  ;;  %v4761_v45 = vpop.f32.mrb[30].mxu1 }
 0x2a8   : > { %v4650_v32 = vpop.f32.mrb[31].mxu0  ;;  %v4762_v23 = vpop.f32.mrb[31].mxu1 }
 0x2a9   : > { %v8792_v9 = vadd.f32 %v4650_v32, %v4649_v51  ;;  %v8794_v12 = vadd.f32 %v4762_v23, %v4761_v45 }
 0x2aa   : > { %4512 = vmatmul.mubr.msk.bf16.gmra.mrb[136].mxu0 %vm9495_vm3, %v9493_v55  ;;  %5181 = vmatmul.mubr.msk.bf16.gmra.mrb[8].mxu1 %vm9496_vm14, %v7998_v42 }
 0x2ab   : > { %3593 = vmatprep.mubr.bf16.mxu0 %v9459_v53  ;;  %5184 = vmatprep.mubr.msk.bf16.mxu1 %vm9499_vm11, %v9497_v3 }
 0x2ad   : > { %v4652_v58 = vpop.f32.mrb[32].mxu0  ;;  %v4764_v34 = vpop.f32.mrb[32].mxu1 }
 0x2ae   : > { %v4653_v6 = vpop.f32.mrb[33].mxu0  ;;  %v4765_v2 = vpop.f32.mrb[33].mxu1 }
 0x2af   : > { %v4654_v39 = vadd.f32 %v4653_v6, %v4652_v58  ;;  %v4655_v4 = vpop.f32.mrb[34].mxu0  ;;  %v8806_v61 = vadd.f32 %v4765_v2, %v4764_v34  ;;  %v4767_v37 = vpop.f32.mrb[34].mxu1 }
 0x2b0   : > { %v4656_v21 = vpop.f32.mrb[35].mxu0  ;;  %v4768_v38 = vpop.f32.mrb[35].mxu1 }
 0x2b1   : > { %v4657_v5 = vadd.f32 %v4656_v21, %v4655_v4  ;;  %v8808_v57 = vadd.f32 %v4768_v38, %v4767_v37 }
 0x2b2   : > { %3594 = vmatmul.mubr.bf16.gmra.mrb[140].mxu0 %v9459_v53  ;;  %5185 = vmatmul.mubr.bf16.gmra.mrb[12].mxu1 %v9459_v53 }
 0x2b5   : > { %v4658_v42 = vpop.f32.mrb[36].mxu0  ;;  %v4770_v27 = vpop.f32.mrb[36].mxu1 }
 0x2b6   : > { %v4659_v25 = vpop.f32.mrb[37].mxu0  ;;  %v4771_v48 = vpop.f32.mrb[37].mxu1 }
 0x2b7   : > { %v4660_v20 = vadd.f32 %v4659_v25, %v4658_v42  ;;  %v4661_v60 = vpop.f32.mrb[38].mxu0  ;;  %v8812_v30 = vadd.f32 %v4771_v48, %v4770_v27  ;;  %v4773_v63 = vpop.f32.mrb[38].mxu1 }
 0x2b8   : > { %v4662_v56 = vpop.f32.mrb[39].mxu0  ;;  %v4774_v49 = vpop.f32.mrb[39].mxu1 }
 0x2b9   : > { %v4663_v24 = vadd.f32 %v4662_v56, %v4661_v60  ;;  %v8814_v44 = vadd.f32 %v4774_v49, %v4773_v63 }
 0x2bd   : > { %v4664_v43 = vpop.f32.mrb[40].mxu0  ;;  %v4776_v8 = vpop.f32.mrb[40].mxu1 }
 0x2be   : > { %v4665_v52 = vpop.f32.mrb[41].mxu0  ;;  %v4777_v26 = vpop.f32.mrb[41].mxu1 }
 0x2bf   : > { %v4666_v36 = vadd.f32 %v4665_v52, %v4664_v43  ;;  %v4667_v53 = vpop.f32.mrb[42].mxu0  ;;  %v8816_v1 = vadd.f32 %v4777_v26, %v4776_v8  ;;  %v4779_v59 = vpop.f32.mrb[42].mxu1 }
 0x2c0   : > { %v4668_v51 = vpop.f32.mrb[43].mxu0  ;;  %v4780_v45 = vpop.f32.mrb[43].mxu1 }
 0x2c1   : > { %v4669_v32 = vadd.f32 %v4668_v51, %v4667_v53  ;;  %v8818_v23 = vadd.f32 %v4780_v45, %v4779_v59 }
 0x2c5   : > { %v4670_v55 = vpop.f32.mrb[44].mxu0  ;;  %v4782_v41 = vpop.f32.mrb[44].mxu1 }
 0x2c6   : > { %v4671_v3 = vpop.f32.mrb[45].mxu0  ;;  %v4783_v31 = vpop.f32.mrb[45].mxu1 }
 0x2c7   : > { %v4672_v58 = vadd.f32 %v4671_v3, %v4670_v55  ;;  %v4673_v34 = vpop.f32.mrb[46].mxu0  ;;  %v8820_v6 = vadd.f32 %v4783_v31, %v4782_v41  ;;  %v4785_v2 = vpop.f32.mrb[46].mxu1 }
 0x2c8   : > { %v4674_v4 = vpop.f32.mrb[47].mxu0  ;;  %v4786_v37 = vpop.f32.mrb[47].mxu1 }
 0x2c9   : > { %v4675_v21 = vadd.f32 %v4674_v4, %v4673_v34  ;;  %v8822_v38 = vadd.f32 %v4786_v37, %v4785_v2 }
 0x2cd   : > { %v4676_v42 = vpop.f32.mrb[48].mxu0  ;;  %v4788_v27 = vpop.f32.mrb[48].mxu1 }
 0x2ce   : > { %v4677_v25 = vpop.f32.mrb[49].mxu0  ;;  %v4789_v48 = vpop.f32.mrb[49].mxu1 }
 0x2cf   : > { %v8824_v60 = vadd.f32 %v4677_v25, %v4676_v42  ;;  %v4790_v63 = vadd.f32 %v4789_v48, %v4788_v27  ;;  %v4679_v56 = vpop.f32.mrb[50].mxu0  ;;  %v4791_v49 = vpop.f32.mrb[50].mxu1 }
 0x2d0   : > { %v4680_v43 = vpop.f32.mrb[51].mxu0  ;;  %v4792_v8 = vpop.f32.mrb[51].mxu1 }
 0x2d1   : > { %v8826_v52 = vadd.f32 %v4790_v63, %v4654_v39  ;;  %v8828_v26 = vadd.f32 %v4680_v43, %v4679_v56  ;;  %v4793_v53 = vadd.f32 %v4792_v8, %v4791_v49 }
 0x2d3   : > { %v8830_v59 = vadd.f32 %v4793_v53, %v4657_v5 }
 0x2d5   : > { %v4682_v51 = vpop.f32.mrb[52].mxu0  ;;  %v4794_v45 = vpop.f32.mrb[52].mxu1 }
 0x2d6   : > { %v4683_v55 = vpop.f32.mrb[53].mxu0  ;;  %v4795_v41 = vpop.f32.mrb[53].mxu1 }
 0x2d7   : > { %v8832_v3 = vadd.f32 %v4683_v55, %v4682_v51  ;;  %v4796_v31 = vadd.f32 %v4795_v41, %v4794_v45  ;;  %v4685_v34 = vpop.f32.mrb[54].mxu0  ;;  %v4797_v2 = vpop.f32.mrb[54].mxu1 }
 0x2d8   : > { %v4686_v4 = vpop.f32.mrb[55].mxu0  ;;  %v4798_v37 = vpop.f32.mrb[55].mxu1 }
 0x2d9   : > { %v8834_v42 = vadd.f32 %v4796_v31, %v4660_v20  ;;  %v8836_v39 = vadd.f32 %v4686_v4, %v4685_v34  ;;  %v4799_v27 = vadd.f32 %v4798_v37, %v4797_v2 }
 0x2db   : > { %v8838_v25 = vadd.f32 %v4799_v27, %v4663_v24 }
 0x2dd   : > { %9500 = vst [vmem:[#allocation31_spill] sm:$0xff] %v8838_v25  ;;  %v4688_v5 = vpop.f32.mrb[56].mxu0  ;;  %v4800_v48 = vpop.f32.mrb[56].mxu1 }
 0x2de   : > { %v4689_v63 = vpop.f32.mrb[57].mxu0  ;;  %v4801_v56 = vpop.f32.mrb[57].mxu1 }
 0x2df   : > { %v8840_v49 = vadd.f32 %v4689_v63, %v4688_v5  ;;  %v4802_v43 = vadd.f32 %v4801_v56, %v4800_v48  ;;  %v4691_v8 = vpop.f32.mrb[58].mxu0  ;;  %v4803_v53 = vpop.f32.mrb[58].mxu1 }
 0x2e0   : > { %v4692_v51 = vpop.f32.mrb[59].mxu0  ;;  %v4804_v45 = vpop.f32.mrb[59].mxu1 }
 0x2e1   : > { %v8842_v55 = vadd.f32 %v4802_v43, %v4666_v36  ;;  %v8844_v20 = vadd.f32 %v4692_v51, %v4691_v8  ;;  %v4805_v41 = vadd.f32 %v4804_v45, %v4803_v53 }
 0x2e3   : > { %v8846_v31 = vadd.f32 %v4805_v41, %v4669_v32 }
 0x2e5   : > { %9501 = vst [vmem:[#allocation16_spill] sm:$0xff] %v8846_v31  ;;  %v4694_v24 = vpop.f32.mrb[60].mxu0  ;;  %v4806_v34 = vpop.f32.mrb[60].mxu1 }
 0x2e6   : > { %v4695_v2 = vpop.f32.mrb[61].mxu0  ;;  %v4807_v4 = vpop.f32.mrb[61].mxu1 }
 0x2e7   : > { %v8848_v37 = vadd.f32 %v4695_v2, %v4694_v24  ;;  %v4808_v27 = vadd.f32 %v4807_v4, %v4806_v34  ;;  %v4697_v5 = vpop.f32.mrb[62].mxu0  ;;  %v4809_v48 = vpop.f32.mrb[62].mxu1 }
 0x2e8   : > { %v4698_v63 = vpop.f32.mrb[63].mxu0  ;;  %v4810_v56 = vpop.f32.mrb[63].mxu1 }
 0x2e9   : > { %v8850_v25 = vadd.f32 %v4808_v27, %v4672_v58  ;;  %v8852_v36 = vadd.f32 %v4698_v63, %v4697_v5  ;;  %v4811_v43 = vadd.f32 %v4810_v56, %v4809_v48 }
 0x2eb   : > { %v8854_v8 = vadd.f32 %v4811_v43, %v4675_v21 }
 0x2ed   : > { %v5062_v32 = vpop.f32.mrb[64].mxu0  ;;  %v4812_v53 = vpop.f32.mrb[64].mxu1 }
 0x2ee   : > { %v2422_v51 = vadd.f32 %v5062_v32, %v8692_v28  ;;  %v2413_v45 = vpop.f32.mrb[65].mxu0  ;;  %v4813_v41 = vpop.f32.mrb[65].mxu1 }
 0x2ef   : > { %v2414_v24 = vadd.f32 %v8678_v54, %v2413_v45  ;;  %v4814_v34 = vadd.f32 %v4813_v41, %v4812_v53  ;;  %v5063_v2 = vpop.f32.mrb[66].mxu0  ;;  %v4815_v4 = vpop.f32.mrb[66].mxu1 }
 0x2f0   : > { %v8859_v31 = vadd.f32 %v8754_v46, %v2422_v51  ;;  %v2425_v58 = vadd.f32 %v5063_v2, %v8694_v47  ;;  %v2416_v27 = vpop.f32.mrb[67].mxu0  ;;  %v4816_v5 = vpop.f32.mrb[67].mxu1 }
 0x2f1   : > { %v8863_v21 = vadd.f32 %v8736_v29, %v2414_v24  ;;  %v8866_v48 = vadd.f32 %v4814_v34, %v8824_v60  ;;  %v2417_v28 = vadd.f32 %v8680_v15, %v2416_v27  ;;  %v4817_v63 = vadd.f32 %v4816_v5, %v4815_v4 }
 0x2f2   : > { %v8870_v54 = vadd.f32 %v8758_v62, %v2425_v58 }
 0x2f3   : > { %v8873_v56 = vadd.f32 %v8740_v18, %v2417_v28  ;;  %v8876_v46 = vadd.f32 %v4817_v63, %v8828_v26 }
 0x2f5   : > { %v5066_v47 = vpop.f32.mrb[68].mxu0  ;;  %v4818_v43 = vpop.f32.mrb[68].mxu1 }
 0x2f6   : > { %v2438_v29 = vadd.f32 %v5066_v47, %v8720_v14  ;;  %v2429_v32 = vpop.f32.mrb[69].mxu0  ;;  %v4819_v53 = vpop.f32.mrb[69].mxu1 }
 0x2f7   : > { %v2430_v60 = vadd.f32 %v8706_v35, %v2429_v32  ;;  %v4820_v51 = vadd.f32 %v4819_v53, %v4818_v43  ;;  %v5067_v15 = vpop.f32.mrb[70].mxu0  ;;  %v4821_v45 = vpop.f32.mrb[70].mxu1 }
 0x2f8   : > { %v8881_v62 = vadd.f32 %v8790_v7, %v2438_v29  ;;  %v2441_v18 = vadd.f32 %v5067_v15, %v8722_v16  ;;  %v2432_v41 = vpop.f32.mrb[71].mxu0  ;;  %v4822_v24 = vpop.f32.mrb[71].mxu1 }
 0x2f9   : > { %v8885_v26 = vadd.f32 %v8772_v17, %v2430_v60  ;;  %v8888_v34 = vadd.f32 %v4820_v51, %v8832_v3  ;;  %v2433_v14 = vadd.f32 %v8708_v19, %v2432_v41  ;;  %v4823_v2 = vadd.f32 %v4822_v24, %v4821_v45 }
 0x2fa   : > { %v8892_v35 = vadd.f32 %v8794_v12, %v2441_v18 }
 0x2fb   : > { %v8895_v4 = vadd.f32 %v8776_v22, %v2433_v14  ;;  %v8898_v7 = vadd.f32 %v4823_v2, %v8836_v39 }
 0x2fd   : > { %v5070_v16 = vpop.f32.mrb[72].mxu0  ;;  %v4824_v58 = vpop.f32.mrb[72].mxu1 }
 0x2fe   : > { %v2454_v17 = vadd.f32 %v5070_v16, %v8752_v0  ;;  %v2445_v27 = vpop.f32.mrb[73].mxu0  ;;  %v4825_v5 = vpop.f32.mrb[73].mxu1 }
 0x2ff   : > { %v2446_v3 = vadd.f32 %v8734_v13, %v2445_v27  ;;  %v4826_v28 = vadd.f32 %v4825_v5, %v4824_v58  ;;  %v5071_v19 = vpop.f32.mrb[74].mxu0  ;;  %v4827_v63 = vpop.f32.mrb[74].mxu1 }
 0x300   : > { %v8903_v12 = vadd.f32 %v8812_v30, %v2454_v17  ;;  %v2457_v22 = vadd.f32 %v5071_v19, %v8756_v33  ;;  %v2448_v47 = vpop.f32.mrb[75].mxu0  ;;  %v4828_v43 = vpop.f32.mrb[75].mxu1 }
 0x301   : > { %v8907_v39 = vadd.f32 %v8806_v61, %v2446_v3  ;;  %v8910_v29 = vadd.f32 %v4826_v28, %v8840_v49  ;;  %v2449_v0 = vadd.f32 %v8738_v40, %v2448_v47  ;;  %v4829_v32 = vadd.f32 %v4828_v43, %v4827_v63 }
 0x302   : > { %v8914_v13 = vadd.f32 %v8814_v44, %v2457_v22 }
 0x303   : > { %v2754_v53 = vadd.f32 %v8808_v57, %v2449_v0  ;;  %v8918_v30 = vadd.f32 %v4829_v32, %v8844_v20 }
 0x305   : > { %v5074_v33 = vpop.f32.mrb[76].mxu0  ;;  %v4830_v60 = vpop.f32.mrb[76].mxu1 }
 0x306   : > { %v2470_v51 = vadd.f32 %v5074_v33, %v8788_v10  ;;  %v2461_v61 = vpop.f32.mrb[77].mxu0  ;;  %v4831_v15 = vpop.f32.mrb[77].mxu1 }
 0x307   : > { %v2462_v49 = vadd.f32 %v8770_v11, %v2461_v61  ;;  %v4832_v45 = vadd.f32 %v4831_v15, %v4830_v60  ;;  %v5075_v18 = vpop.f32.mrb[78].mxu0  ;;  %v4833_v40 = vpop.f32.mrb[78].mxu1 }
 0x308   : > { %v8923_v41 = vadd.f32 %v8820_v6, %v2470_v51  ;;  %v2473_v44 = vadd.f32 %v5075_v18, %v8792_v9  ;;  %v2464_v57 = vpop.f32.mrb[79].mxu0  ;;  %v4834_v24 = vpop.f32.mrb[79].mxu1 }
 0x309   : > { %v2767_v20 = vadd.f32 %v8816_v1, %v2462_v49  ;;  %v8928_v14 = vadd.f32 %v4832_v45, %v8848_v37  ;;  %v2465_v10 = vadd.f32 %v8774_v50, %v2464_v57  ;;  %v4835_v2 = vadd.f32 %v4834_v24, %v4833_v40 }
 0x30a   : > { %v8932_v11 = vadd.f32 %v8822_v38, %v2473_v44 }
 0x30b   : > { %v2770_v16 = vadd.f32 %v8818_v23, %v2465_v10  ;;  %v8936_v6 = vadd.f32 %v4835_v2, %v8852_v36 }
 0x30d   : > { %v4876_v58 = vpop.f32.mrb[80].mxu0 }
 0x30e   : > { %v4877_v9 = vpop.f32.mrb[81].mxu0 }
 0x30f   : > { %v4878_v17 = vadd.f32 %v4877_v9, %v4876_v58  ;;  %v4879_v27 = vpop.f32.mrb[82].mxu0 }
 0x310   : > { %v4880_v5 = vpop.f32.mrb[83].mxu0 }
 0x311   : > { %v4881_v1 = vadd.f32 %v4880_v5, %v4879_v27  ;;  %v8939_v37 = vadd.f32 %v4878_v17, %v8863_v21 }
 0x313   : > { %v8942_v50 = vadd.f32 %v4881_v1, %v8873_v56 }
 0x315   : > { %v4882_v3 = vpop.f32.mrb[84].mxu0 }
 0x316   : > { %v4883_v38 = vpop.f32.mrb[85].mxu0 }
 0x317   : > { %v4884_v28 = vadd.f32 %v4883_v38, %v4882_v3  ;;  %v4885_v19 = vpop.f32.mrb[86].mxu0 }
 0x318   : > { %v4886_v23 = vpop.f32.mrb[87].mxu0 }
 0x319   : > { %v4887_v63 = vadd.f32 %v4886_v23, %v4885_v19  ;;  %v5222_v36 = vadd.f32 %v4884_v28, %v8859_v31 }
 0x31b   : > { %v8946_v22 = vadd.f32 %v4887_v63, %v8870_v54 }
 0x31d   : > { %v4888_v47 = vpop.f32.mrb[88].mxu0 }
 0x31e   : > { %v4889_v43 = vpop.f32.mrb[89].mxu0 }
 0x31f   : > { %v4890_v0 = vadd.f32 %v4889_v43, %v4888_v47  ;;  %v4891_v32 = vpop.f32.mrb[90].mxu0 }
 0x320   : > { %v4892_v21 = vpop.f32.mrb[91].mxu0 }
 0x321   : > { %v4893_v33 = vadd.f32 %v4892_v21, %v4891_v32  ;;  %v8949_v56 = vadd.f32 %v4890_v0, %v8885_v26 }
 0x323   : > { %v8952_v60 = vadd.f32 %v4893_v33, %v8895_v4 }
 0x325   : > { %v4894_v51 = vpop.f32.mrb[92].mxu0 }
 0x326   : > { %v4895_v61 = vpop.f32.mrb[93].mxu0 }
 0x327   : > { %v4896_v15 = vadd.f32 %v4895_v61, %v4894_v51  ;;  %v4897_v49 = vpop.f32.mrb[94].mxu0  ;;  %v3800_v51 = vld [vmem:[%s8980_s21 + $0x10] sm:$0xff] }
 0x328   : > { %v4898_v31 = vpop.f32.mrb[95].mxu0 }
 0x329   : > { %v4899_v45 = vadd.f32 %v4898_v31, %v4897_v49  ;;  %v8955_v54 = vadd.f32 %v4896_v15, %v8881_v62  ;;  %v3798_v31 = vld [vmem:[%s8980_s21] sm:$0xff] }
 0x32b   : > { %v8958_v18 = vadd.f32 %v4899_v45, %v8892_v35 }
 0x32d   : > { %v4900_v40 = vpop.f32.mrb[96].mxu0 }
 0x32e   : > { %v4901_v44 = vpop.f32.mrb[97].mxu0 }
 0x32f   : > { %v4902_v57 = vadd.f32 %v4901_v44, %v4900_v40  ;;  %v4903_v26 = vpop.f32.mrb[98].mxu0 }
 0x330   : > { %v4904_v24 = vpop.f32.mrb[99].mxu0 }
 0x331   : > { %v4905_v4 = vadd.f32 %v4904_v24, %v4903_v26  ;;  %v8961_v10 = vadd.f32 %v4902_v57, %v8907_v39  ;;  %v3801_v57 = vld [vmem:[%s8980_s21 + $0x18] sm:$0xff] }
 0x333   : > { %v8963_v2 = vadd.f32 %v4905_v4, %v2754_v53 }
 0x335   : > { %v4906_v58 = vpop.f32.mrb[100].mxu0 }
 0x336   : > { %v4907_v9 = vpop.f32.mrb[101].mxu0 }
 0x337   : > { %v4908_v17 = vadd.f32 %v4907_v9, %v4906_v58  ;;  %v4909_v62 = vpop.f32.mrb[102].mxu0 }
 0x338   : > { %v4910_v27 = vpop.f32.mrb[103].mxu0 }
 0x339   : > { %v4911_v5 = vadd.f32 %v4910_v27, %v4909_v62  ;;  %v8966_v35 = vadd.f32 %v4908_v17, %v8903_v12 }
 0x33b   : > { %v8969_v1 = vadd.f32 %v4911_v5, %v8914_v13 }
 0x33d   : > { %v4912_v3 = vpop.f32.mrb[104].mxu0 }
 0x33e   : > { %v4913_v38 = vpop.f32.mrb[105].mxu0 }
 0x33f   : > { %v4914_v28 = vadd.f32 %v4913_v38, %v4912_v3  ;;  %v4915_v39 = vpop.f32.mrb[106].mxu0  ;;  %v3804_v38 = vld [vmem:[%s8980_s21 + $0x30] sm:$0xff] }
 0x340   : > { %v4916_v53 = vpop.f32.mrb[107].mxu0 }
 0x341   : > { %v4917_v19 = vadd.f32 %v4916_v53, %v4915_v39  ;;  %v8972_v23 = vadd.f32 %v4914_v28, %v2767_v20 }
 0x343   : > { %v8974_v63 = vadd.f32 %v4917_v19, %v2770_v16 }
 0x345   : > { %v4918_v47 = vpop.f32.mrb[108].mxu0 }
 0x346   : > { %v4919_v43 = vpop.f32.mrb[109].mxu0 }
 0x347   : > { %v4920_v0 = vadd.f32 %v4919_v43, %v4918_v47  ;;  %v4921_v12 = vpop.f32.mrb[110].mxu0 }
 0x348   : > { %v4922_v32 = vpop.f32.mrb[111].mxu0 }
 0x349   : > { %v4923_v13 = vadd.f32 %v4922_v32, %v4921_v12  ;;  %v8977_v21 = vadd.f32 %v4920_v0, %v8923_v41 }
 0x34b   : > { %v8983_v20 = vadd.f32 %v4923_v13, %v8932_v11 }
 0x34d   : > { %v4924_v16 = vpop.f32.mrb[112].mxu0  ;;  %v5158_v33 = vpop.f32.mrb[80].mxu1 }
 0x34e   : > { %v5223_v61 = vadd.f32 %v5222_v36, %v5158_v33  ;;  %v4925_v15 = vpop.f32.mrb[113].mxu0  ;;  %v3636_v49 = vpop.f32.mrb[81].mxu1  ;;  %v3799_v36 = vld [vmem:[%s8980_s21 + $0x8] sm:$0xff] }
 0x34f   : > { %v4926_v45 = vadd.f32 %v4925_v15, %v4924_v16  ;;  %v5227_v41 = vadd.f32 %v8939_v37, %v3636_v49  ;;  %v4927_v40 = vpop.f32.mrb[114].mxu0  ;;  %v5159_v44 = vpop.f32.mrb[82].mxu1  ;;  %v9502_v49 = vld [vmem:[#allocation31_spill] sm:$0xff] }
 0x350   : > { %v3832_v11 = vadd.f32 %v5223_v61, %v3800_v51  ;;  %v5231_v26 = vadd.f32 %v8946_v22, %v5159_v44  ;;  %v4928_v24 = vpop.f32.mrb[115].mxu0  ;;  %v3639_v4 = vpop.f32.mrb[83].mxu1 }
 0x351   : > { %v3830_v58 = vadd.f32 %v5227_v41, %v3798_v31  ;;  %v4929_v9 = vadd.f32 %v4928_v24, %v4927_v40  ;;  %v5235_v17 = vadd.f32 %v8942_v50, %v3639_v4  ;;  %v8993_v62 = vadd.f32 %v8826_v52, %v4926_v45  ;;  %v3802_v52 = vld [vmem:[%s8980_s21 + $0x20] sm:$0xff]  ;;  %v3808_v41 = vld [vmem:[%s8980_s21 + $0x50] sm:$0xff]  ;;  %v3809_v4 = vld [vmem:[%s8980_s21 + $0x58] sm:$0xff] }
 0x352   : > { %3864 = vst [vmem:[%s8980_s21 + $0x10] sm:$0xff] %v3832_v11  ;;  %v3833_v37 = vadd.f32 %v5231_v26, %v3801_v57 }
 0x353   : > { %3862 = vst [vmem:[%s8980_s21] sm:$0xff] %v3830_v58  ;;  %v3831_v27 = vadd.f32 %v5235_v17, %v3799_v36  ;;  %v8998_v5 = vadd.f32 %v8830_v59, %v4929_v9  ;;  %v3805_v59 = vld [vmem:[%s8980_s21 + $0x38] sm:$0xff] }
 0x354   : > { %3865 = vst [vmem:[%s8980_s21 + $0x18] sm:$0xff] %v3833_v37 }
 0x355   : > { %3863 = vst [vmem:[%s8980_s21 + $0x8] sm:$0xff] %v3831_v27  ;;  %v4930_v22 = vpop.f32.mrb[116].mxu0  ;;  %v5162_v3 = vpop.f32.mrb[84].mxu1 }
 0x356   : > { %v5239_v28 = vadd.f32 %v8955_v54, %v5162_v3  ;;  %v4931_v50 = vpop.f32.mrb[117].mxu0  ;;  %v3652_v39 = vpop.f32.mrb[85].mxu1  ;;  %v3803_v54 = vld [vmem:[%s8980_s21 + $0x28] sm:$0xff] }
 0x357   : > { %v4932_v53 = vadd.f32 %v4931_v50, %v4930_v22  ;;  %v5243_v19 = vadd.f32 %v8949_v56, %v3652_v39  ;;  %v4933_v47 = vpop.f32.mrb[118].mxu0  ;;  %v5163_v43 = vpop.f32.mrb[86].mxu1 }
 0x358   : > { %v3836_v0 = vadd.f32 %v5239_v28, %v3804_v38  ;;  %v5247_v12 = vadd.f32 %v8958_v18, %v5163_v43  ;;  %v4934_v32 = vpop.f32.mrb[119].mxu0  ;;  %v3655_v13 = vpop.f32.mrb[87].mxu1  ;;  %v9503_v28 = vld [vmem:[#allocation16_spill] sm:$0xff] }
 0x359   : > { %v3834_v16 = vadd.f32 %v5243_v19, %v3802_v52  ;;  %v4935_v33 = vadd.f32 %v4934_v32, %v4933_v47  ;;  %v5251_v51 = vadd.f32 %v8952_v60, %v3655_v13  ;;  %v9011_v61 = vadd.f32 %v8834_v42, %v4932_v53  ;;  %v3806_v42 = vld [vmem:[%s8980_s21 + $0x40] sm:$0xff]  ;;  %v3812_v52 = vld [vmem:[%s8980_s21 + $0x70] sm:$0xff] }
 0x35a   : > { %3868 = vst [vmem:[%s8980_s21 + $0x30] sm:$0xff] %v3836_v0  ;;  %v3837_v56 = vadd.f32 %v5247_v12, %v3805_v59  ;;  %v3813_v12 = vld [vmem:[%s8980_s21 + $0x78] sm:$0xff] }
 0x35b   : > { %3866 = vst [vmem:[%s8980_s21 + $0x20] sm:$0xff] %v3834_v16  ;;  %v3835_v15 = vadd.f32 %v5251_v51, %v3803_v54  ;;  %v9016_v31 = vadd.f32 %v9502_v49, %v4935_v33 }
 0x35c   : > { %3869 = vst [vmem:[%s8980_s21 + $0x38] sm:$0xff] %v3837_v56 }
 0x35d   : > { %3867 = vst [vmem:[%s8980_s21 + $0x28] sm:$0xff] %v3835_v15  ;;  %v4936_v18 = vpop.f32.mrb[120].mxu0  ;;  %v5166_v45 = vpop.f32.mrb[88].mxu1 }
 0x35e   : > { %v5255_v40 = vadd.f32 %v8966_v35, %v5166_v45  ;;  %v4937_v60 = vpop.f32.mrb[121].mxu0  ;;  %v3668_v44 = vpop.f32.mrb[89].mxu1  ;;  %v3807_v35 = vld [vmem:[%s8980_s21 + $0x48] sm:$0xff] }
 0x35f   : > { %v4938_v57 = vadd.f32 %v4937_v60, %v4936_v18  ;;  %v5259_v11 = vadd.f32 %v8961_v10, %v3668_v44  ;;  %v4939_v26 = vpop.f32.mrb[122].mxu0  ;;  %v5167_v24 = vpop.f32.mrb[90].mxu1 }
 0x360   : > { %v3840_v36 = vadd.f32 %v5255_v40, %v3808_v41  ;;  %v5263_v58 = vadd.f32 %v8969_v1, %v5167_v24  ;;  %v4940_v9 = vpop.f32.mrb[123].mxu0  ;;  %v3671_v17 = vpop.f32.mrb[91].mxu1  ;;  %v3816_v41 = vld [vmem:[%s8980_s21 + $0x90] sm:$0xff] }
 0x361   : > { %v3838_v37 = vadd.f32 %v5259_v11, %v3806_v42  ;;  %v4941_v27 = vadd.f32 %v4940_v9, %v4939_v26  ;;  %v5267_v22 = vadd.f32 %v8963_v2, %v3671_v17  ;;  %v9029_v3 = vadd.f32 %v8842_v55, %v4938_v57  ;;  %v3810_v55 = vld [vmem:[%s8980_s21 + $0x60] sm:$0xff] }
 0x362   : > { %3872 = vst [vmem:[%s8980_s21 + $0x50] sm:$0xff] %v3840_v36  ;;  %v3841_v10 = vadd.f32 %v5263_v58, %v3809_v4 }
 0x363   : > { %3870 = vst [vmem:[%s8980_s21 + $0x40] sm:$0xff] %v3838_v37  ;;  %v3839_v38 = vadd.f32 %v5267_v22, %v3807_v35  ;;  %v9034_v50 = vadd.f32 %v9503_v28, %v4941_v27 }
 0x364   : > { %3873 = vst [vmem:[%s8980_s21 + $0x58] sm:$0xff] %v3841_v10  ;;  %v3820_v10 = vld [vmem:[%s8980_s21 + $0xb0] sm:$0xff] }
 0x365   : > { %3871 = vst [vmem:[%s8980_s21 + $0x48] sm:$0xff] %v3839_v38  ;;  %v4942_v1 = vpop.f32.mrb[124].mxu0  ;;  %v5170_v39 = vpop.f32.mrb[92].mxu1 }
 0x366   : > { %v5271_v53 = vadd.f32 %v8977_v21, %v5170_v39  ;;  %v4943_v2 = vpop.f32.mrb[125].mxu0  ;;  %v3684_v19 = vpop.f32.mrb[93].mxu1  ;;  %v3811_v21 = vld [vmem:[%s8980_s21 + $0x68] sm:$0xff] }
 0x367   : > { %v4944_v47 = vadd.f32 %v4943_v2, %v4942_v1  ;;  %v5275_v43 = vadd.f32 %v8972_v23, %v3684_v19  ;;  %v4945_v59 = vpop.f32.mrb[126].mxu0  ;;  %v5171_v0 = vpop.f32.mrb[94].mxu1  ;;  %v3821_v2 = vld [vmem:[%s8980_s21 + $0xb8] sm:$0xff] }
 0x368   : > { %v3844_v32 = vadd.f32 %v5271_v53, %v3812_v52  ;;  %v5279_v13 = vadd.f32 %v8983_v20, %v5171_v0  ;;  %v4946_v54 = vpop.f32.mrb[127].mxu0  ;;  %v3687_v16 = vpop.f32.mrb[95].mxu1 }
 0x369   : > { %v3842_v33 = vadd.f32 %v5275_v43, %v3810_v55  ;;  %v4947_v51 = vadd.f32 %v4946_v54, %v4945_v59  ;;  %v5283_v56 = vadd.f32 %v8974_v63, %v3687_v16  ;;  %v5297_v15 = vadd.f32 %v8850_v25, %v4944_v47  ;;  %v3814_v63 = vld [vmem:[%s8980_s21 + $0x80] sm:$0xff]  ;;  %v3819_v43 = vld [vmem:[%s8980_s21 + $0xa8] sm:$0xff] }
 0x36a   : > { %3876 = vst [vmem:[%s8980_s21 + $0x70] sm:$0xff] %v3844_v32  ;;  %v3845_v23 = vadd.f32 %v5279_v13, %v3813_v12 }
 0x36b   : > { %3874 = vst [vmem:[%s8980_s21 + $0x60] sm:$0xff] %v3842_v33  ;;  %v3843_v49 = vadd.f32 %v5283_v56, %v3811_v21  ;;  %v5303_v18 = vadd.f32 %v8854_v8, %v4947_v51  ;;  %v3817_v8 = vld [vmem:[%s8980_s21 + $0x98] sm:$0xff]  ;;  %v3824_v33 = vld [vmem:[%s8980_s21 + $0xd0] sm:$0xff] }
 0x36c   : > { %3877 = vst [vmem:[%s8980_s21 + $0x78] sm:$0xff] %v3845_v23 }
 0x36d   : > { %3875 = vst [vmem:[%s8980_s21 + $0x68] sm:$0xff] %v3843_v49  ;;  %v4948_v20 = vpop.f32.mrb[128].mxu0  ;;  %v5174_v45 = vpop.f32.mrb[0].mxu1 }
 0x36e   : > { %v5286_v40 = vadd.f32 %v9011_v61, %v5174_v45  ;;  %v4949_v60 = vpop.f32.mrb[129].mxu0  ;;  %v3700_v44 = vpop.f32.mrb[1].mxu1  ;;  %v3815_v61 = vld [vmem:[%s8980_s21 + $0x88] sm:$0xff] }
 0x36f   : > { %v4950_v25 = vadd.f32 %v4949_v60, %v4948_v20  ;;  %v5289_v42 = vadd.f32 %v8993_v62, %v3700_v44  ;;  %v4951_v57 = vpop.f32.mrb[130].mxu0  ;;  %v5175_v11 = vpop.f32.mrb[2].mxu1  ;;  %v3825_v20 = vld [vmem:[%s8980_s21 + $0xd8] sm:$0xff]  ;;  %v3823_v60 = vld [vmem:[%s8980_s21 + $0xc8] sm:$0xff] }
 0x370   : > { %v3848_v26 = vadd.f32 %v5286_v40, %v3816_v41  ;;  %v5292_v24 = vadd.f32 %v9016_v31, %v5175_v11  ;;  %v4952_v4 = vpop.f32.mrb[131].mxu0  ;;  %v3703_v36 = vpop.f32.mrb[3].mxu1 }
 0x371   : > { %v3846_v58 = vadd.f32 %v5289_v42, %v3814_v63  ;;  %v4953_v9 = vadd.f32 %v4952_v4, %v4951_v57  ;;  %v5295_v17 = vadd.f32 %v8998_v5, %v3703_v36  ;;  %v5312_v35 = vadd.f32 %v8866_v48, %v4950_v25  ;;  %v3818_v5 = vld [vmem:[%s8980_s21 + $0xa0] sm:$0xff] }
 0x372   : > { %3880 = vst [vmem:[%s8980_s21 + $0x90] sm:$0xff] %v3848_v26  ;;  %v3849_v62 = vadd.f32 %v5292_v24, %v3817_v8 }
 0x373   : > { %3878 = vst [vmem:[%s8980_s21 + $0x80] sm:$0xff] %v3846_v58  ;;  %v3847_v37 = vadd.f32 %v5295_v17, %v3815_v61  ;;  %v5318_v27 = vadd.f32 %v8876_v46, %v4953_v9  ;;  %v3826_v61 = vld [vmem:[%s8980_s21 + $0xe0] sm:$0xff] }
 0x374   : > { %3881 = vst [vmem:[%s8980_s21 + $0x98] sm:$0xff] %v3849_v62 }
 0x375   : > { %3879 = vst [vmem:[%s8980_s21 + $0x88] sm:$0xff] %v3847_v37  ;;  %v4954_v31 = vpop.f32.mrb[132].mxu0  ;;  %v5178_v22 = vpop.f32.mrb[4].mxu1  ;;  %v3827_v37 = vld [vmem:[%s8980_s21 + $0xe8] sm:$0xff] }
 0x376   : > { %v5298_v38 = vadd.f32 %v5297_v15, %v5178_v22  ;;  %v4955_v28 = vpop.f32.mrb[133].mxu0  ;;  %v3716_v1 = vpop.f32.mrb[5].mxu1 }
 0x377   : > { %v4956_v39 = vadd.f32 %v4955_v28, %v4954_v31  ;;  %v5301_v48 = vadd.f32 %v9029_v3, %v3716_v1  ;;  %v4957_v52 = vpop.f32.mrb[134].mxu0  ;;  %v5179_v53 = vpop.f32.mrb[6].mxu1 }
 0x378   : > { %v3852_v46 = vadd.f32 %v5298_v38, %v3820_v10  ;;  %v5304_v19 = vadd.f32 %v5303_v18, %v5179_v53  ;;  %v4958_v55 = vpop.f32.mrb[135].mxu0  ;;  %v3719_v47 = vpop.f32.mrb[7].mxu1  ;;  %v3828_v10 = vld [vmem:[%s8980_s21 + $0xf0] sm:$0xff] }
 0x379   : > { %v3850_v59 = vadd.f32 %v5301_v48, %v3818_v5  ;;  %v4959_v0 = vadd.f32 %v4958_v55, %v4957_v52  ;;  %v5307_v12 = vadd.f32 %v9034_v50, %v3719_v47  ;;  %v5309_v32 = vadd.f32 %v8888_v34, %v4956_v39  ;;  %v3822_v50 = vld [vmem:[%s8980_s21 + $0xc0] sm:$0xff]  ;;  %v3829_v5 = vld [vmem:[%s8980_s21 + $0xf8] sm:$0xff] }
 0x37a   : > { %3884 = vst [vmem:[%s8980_s21 + $0xb0] sm:$0xff] %v3852_v46  ;;  %v3853_v3 = vadd.f32 %v5304_v19, %v3821_v2 }
 0x37b   : > { %3882 = vst [vmem:[%s8980_s21 + $0xa0] sm:$0xff] %v3850_v59  ;;  %v3851_v13 = vadd.f32 %v5307_v12, %v3819_v43  ;;  %v5315_v54 = vadd.f32 %v8898_v7, %v4959_v0 }
 0x37c   : > { %3885 = vst [vmem:[%s8980_s21 + $0xb8] sm:$0xff] %v3853_v3 }
 0x37d   : > { %3883 = vst [vmem:[%s8980_s21 + $0xa8] sm:$0xff] %v3851_v13  ;;  %v4960_v16 = vpop.f32.mrb[136].mxu0  ;;  %v5182_v21 = vpop.f32.mrb[8].mxu1 }
 0x37e   : > { %v5310_v51 = vadd.f32 %v5309_v32, %v5182_v21  ;;  %v4961_v56 = vpop.f32.mrb[137].mxu0  ;;  %v3732_v15 = vpop.f32.mrb[9].mxu1 }
 0x37f   : > { %v4962_v23 = vadd.f32 %v4961_v56, %v4960_v16  ;;  %v5313_v34 = vadd.f32 %v5312_v35, %v3732_v15  ;;  %v4963_v49 = vpop.f32.mrb[138].mxu0  ;;  %v5183_v18 = vpop.f32.mrb[10].mxu1 }
 0x380   : > { %v3856_v7 = vadd.f32 %v5310_v51, %v3824_v33  ;;  %v5316_v45 = vadd.f32 %v5315_v54, %v5183_v18  ;;  %v4964_v41 = vpop.f32.mrb[139].mxu0  ;;  %v3735_v40 = vpop.f32.mrb[11].mxu1 }
 0x381   : > { %v3854_v44 = vadd.f32 %v5313_v34, %v3822_v50  ;;  %v4965_v63 = vadd.f32 %v4964_v41, %v4963_v49  ;;  %v5319_v25 = vadd.f32 %v5318_v27, %v3735_v40  ;;  %v5324_v42 = vadd.f32 %v8910_v29, %v4962_v23 }
 0x382   : > { %3888 = vst [vmem:[%s8980_s21 + $0xd0] sm:$0xff] %v3856_v7  ;;  %v3857_v57 = vadd.f32 %v5316_v45, %v3825_v20 }
 0x383   : > { %3886 = vst [vmem:[%s8980_s21 + $0xc0] sm:$0xff] %v3854_v44  ;;  %v3855_v11 = vadd.f32 %v5319_v25, %v3823_v60  ;;  %v5330_v8 = vadd.f32 %v8918_v30, %v4965_v63 }
 0x384   : > { %3889 = vst [vmem:[%s8980_s21 + $0xd8] sm:$0xff] %v3857_v57 }
 0x385   : > { %3887 = vst [vmem:[%s8980_s21 + $0xc8] sm:$0xff] %v3855_v11  ;;  %v4966_v26 = vpop.f32.mrb[140].mxu0  ;;  %v5186_v24 = vpop.f32.mrb[12].mxu1 }
 0x386   : > { %v4967_v4 = vpop.f32.mrb[141].mxu0  ;;  %v3748_v36 = vpop.f32.mrb[13].mxu1 }
 0x387   : > { %v4968_v58 = vadd.f32 %v4967_v4, %v4966_v26  ;;  %v5325_v9 = vadd.f32 %v5324_v42, %v3748_v36  ;;  %v4969_v29 = vpop.f32.mrb[142].mxu0  ;;  %v5187_v17 = vpop.f32.mrb[14].mxu1 }
 0x388   : > { %v4970_v35 = vpop.f32.mrb[143].mxu0  ;;  %v3751_v62 = vpop.f32.mrb[15].mxu1 }
 0x389   : > { %v5321_v30 = vadd.f32 %v8928_v14, %v4968_v58  ;;  %v3858_v27 = vadd.f32 %v5325_v9, %v3826_v61  ;;  %v4971_v31 = vadd.f32 %v4970_v35, %v4969_v29  ;;  %v5331_v22 = vadd.f32 %v5330_v8, %v3751_v62 }
 0x38b   : > { %v5322_v38 = vadd.f32 %v5321_v30, %v5186_v24  ;;  %3890 = vst [vmem:[%s8980_s21 + $0xe0] sm:$0xff] %v3858_v27  ;;  %v5327_v28 = vadd.f32 %v8936_v6, %v4971_v31  ;;  %v3859_v1 = vadd.f32 %v5331_v22, %v3827_v37 }
 0x38d   : > { %v3860_v39 = vadd.f32 %v5322_v38, %v3828_v10  ;;  %v5328_v48 = vadd.f32 %v5327_v28, %v5187_v17  ;;  %3891 = vst [vmem:[%s8980_s21 + $0xe8] sm:$0xff] %v3859_v1 }
 0x38f   : > { %3892 = vst [vmem:[%s8980_s21 + $0xf0] sm:$0xff] %v3860_v39  ;;  %v3861_v52 = vadd.f32 %v5328_v48, %v3829_v5 }
 0x391   : > { %3893 = vst [vmem:[%s8980_s21 + $0xf8] sm:$0xff] %v3861_v52 }
 0x392 PF: > { %s28_s17 = sadd.s32 1, %s6348_s17   ;;  %s9504_s1 = smov %s6340_s15 }
 0x393   : > { %p25_p5 = scmp.ge.s32.totalorder %s28_s17, 8   ;;  %s9505_s14 = smov %s6344_s16 }
 0x394   : > { %s9506_s15 = smov %s9509_s18  ;;  %s9507_s16 = smov %s9513_s19 }
 0x395   :  { %27 = sbr.rel (!%p25_p5) target bundleno = 28 (0x1c), region = 105 }

</bundles_post_ra>
